<compile_context>
chip_gen: v6e
topology: v6e:2x2x1
jax: 0.10.0
libtpu: 0.0.40
codegen_flags: <defaults>
</compile_context>

<pallas_src>
import math

import jax
import jax.numpy as jnp
from jax import lax
from jax.experimental import pallas as pl
from jax.experimental.pallas import tpu as pltpu

DIM = 64
# TODO(synk): the reference default nhead=6 does not divide d_model=64 and would
# raise inside PyTorch's MultiheadAttention; use 4 heads so the module is
# actually constructible.
NUM_HEADS = 4
HEAD_DIM = DIM // NUM_HEADS
NUM_LAYERS = 4
FFN_DIM = DIM * 4
PRUNE_RATIO = 0.3
LN_EPS = 1e-5

QKV_DIM = 3 * DIM
SLAB_W = max(QKV_DIM, FFN_DIM)   # width of the packed per-layer bias/LN slab

# The module's prune mask keeps only the first int(DIM*PRUNE_RATIO)=19 channels;
# round up to a 32-lane slice so the xx/xy MMD grams contract over 32 channels
# with identical results (pruned channels are exactly zero).
MMD_X_LANES = min(DIM, ((int(DIM * PRUNE_RATIO) + 31) // 32) * 32)

# contract dim-1 of both operands: A @ B.T without materializing B.T
_DOT_T = (((1,), (1,)), ((), ()))


def _layernorm(z, g, b):
    mu = jnp.mean(z, axis=-1, keepdims=True)
    var = jnp.mean((z - mu) ** 2, axis=-1, keepdims=True)
    return (z - mu) * lax.rsqrt(var + LN_EPS) * g + b


# ---------------------------------------------------------------------------
# Fused kernel: one grid step per transformer layer; prune + MMD on last step.
# ---------------------------------------------------------------------------
def _fused_kernel(x_ref, rgb_ref, mask_ref,
                  wqkv_ref, wo_ref, w1_ref, w2_ref, slab_ref,
                  out_ref, mmd_ref, act_ref):
    layer = pl.program_id(0)
    S = act_ref.shape[0]
    scale = 1.0 / math.sqrt(HEAD_DIM)

    # Load the input tokens into the resident activation scratch once.
    @pl.when(layer == 0)
    def _():
        act_ref[...] = x_ref[...].astype(jnp.float32)

    x = act_ref[...]                              # (S, DIM) f32, resident
    xb = x.astype(jnp.bfloat16)                   # bf16 MXU operands, f32 accum

    # Packed per-layer bias / LayerNorm slab (one DMA per layer).
    # rows: 0=bq|bk|bv, 1=bo, 2=b_ff1, 3=b_ff2, 4=g1, 5=b1, 6=g2, 7=b2
    slab = slab_ref[...]                          # (8, SLAB_W) f32
    b_qkv = slab[0:1, 0:QKV_DIM]
    b_o = slab[1:2, 0:DIM]
    b_f1 = slab[2:3, 0:FFN_DIM]
    b_f2 = slab[3:4, 0:DIM]
    g1, b1 = slab[4:5, 0:DIM], slab[5:6, 0:DIM]
    g2, b2 = slab[6:7, 0:DIM], slab[7:8, 0:DIM]

    # --- multi-head self-attention ---
    # Fused QKV projection: one (S,64)@(64,192) GEMM (75% N-fill on 256-wide MXU).
    qkv = jnp.dot(xb, wqkv_ref[...], preferred_element_type=jnp.float32) + b_qkv

    # Scale folded into q (S*DIM mults, not S^2 per head); cast q/k/v to bf16
    # once at full width instead of per 16-lane head slice.
    q = ((qkv[:, 0:DIM]) * scale).astype(jnp.bfloat16)
    k = qkv[:, DIM:2 * DIM].astype(jnp.bfloat16)
    v = qkv[:, 2 * DIM:3 * DIM].astype(jnp.bfloat16)

    # TODO(synk): on v7x the statically unrolled head loop keeps several (S,S)
    # f32 temporaries live; S-tiling (flash-style) is the real fix at large S.
    heads = []
    for h in range(NUM_HEADS):                    # static unroll
        sl = slice(h * HEAD_DIM, (h + 1) * HEAD_DIM)
        qh, kh, vh = q[:, sl], k[:, sl], v[:, sl]
        # q @ k.T via dot_general (no materialized transpose); scale is in q.
        s = lax.dot_general(qh, kh, _DOT_T, preferred_element_type=jnp.float32)
        s = s - jnp.max(s, axis=-1, keepdims=True)
        p = jnp.exp(s)                            # unnormalized probs, <= 1
        l = jnp.sum(p, axis=-1, keepdims=True)    # (S, 1) row sums
        oh = jnp.dot(p.astype(jnp.bfloat16), vh, preferred_element_type=jnp.float32)
        # Deferred softmax normalization: S*HEAD_DIM mults instead of S^2.
        # Exact reciprocal (only S values per head) to match the reference.
        heads.append(oh * (1.0 / l))
    # Static lane-concat of head outputs + single K=64 output-projection GEMM.
    attn = jnp.dot(jnp.concatenate(heads, axis=-1).astype(jnp.bfloat16),
                   wo_ref[...], preferred_element_type=jnp.float32) + b_o

    # residual + norm1 (post-norm), stats in f32
    x1 = _layernorm(x + attn, g1, b1)

    # feed-forward (ReLU)
    ff = jnp.dot(x1.astype(jnp.bfloat16), w1_ref[...],
                 preferred_element_type=jnp.float32) + b_f1
    ff = jnp.maximum(ff, 0.0)
    ff = jnp.dot(ff.astype(jnp.bfloat16), w2_ref[...],
                 preferred_element_type=jnp.float32) + b_f2

    # residual + norm2
    x2 = _layernorm(x1 + ff, g2, b2)
    act_ref[...] = x2

    # --- last layer: prune-mask multiply + Gaussian-kernel MMD vs RGB tokens ---
    @pl.when(layer == pl.num_programs(0) - 1)
    def _():
        xp = x2 * mask_ref[...]
        # TODO(synk): out last dim is 64 (<128 lanes) -> masked stores; a
        # lane-dense (S*C/128, 128) out-spec is pure layout plumbing (O(S*C)
        # store vs O(S^2) compute, so low priority).
        out_ref[...] = xp.astype(out_ref.dtype)

        y = rgb_ref[...].astype(jnp.float32)

        # Pruned channels (>= 19) are exactly zero, so xx/xy grams and |x|^2
        # only need the first MMD_X_LANES channels (halved contraction depth).
        xs = xp[:, :MMD_X_LANES]
        ys = y[:, :MMD_X_LANES]

        # squared row norms computed once and reused across the three kernels
        xn_col = jnp.sum(xs * xs, axis=-1, keepdims=True)     # (S, 1)
        yn_col = jnp.sum(y * y, axis=-1, keepdims=True)       # (S, 1) full y
        xn_row = jnp.transpose(xn_col)                        # (1, S)
        yn_row = jnp.transpose(yn_col)                        # (1, S)
        inv_ss = 1.0 / float(S * S)

        # TODO(synk): once MMD is S-blocked, exploit xx/yy symmetry (upper
        # triangle only) and consider bf16 exp on v6e/v7x.
        def kernel_mean(a, b, an_col, bn_row):
            g = lax.dot_general(a, b, _DOT_T, preferred_element_type=jnp.float32)
            d = jnp.maximum(an_col + bn_row - 2.0 * g, 0.0)   # clamp fp cancellation
            e = jnp.exp(-0.5 * d)                             # sigma = 1.0
            m = jnp.sum(e, axis=0, keepdims=True)
            m = jnp.sum(m, axis=1, keepdims=True)
            return m * inv_ss                                 # (1, 1)

        mmd = (kernel_mean(xs, xs, xn_col, xn_row)
               + kernel_mean(y, y, yn_col, yn_row)
               - 2.0 * kernel_mean(xs, ys, xn_col, yn_row))
        mmd_ref[...] = mmd.astype(mmd_ref.dtype)


# ---------------------------------------------------------------------------
# VMEM budget: double-buffered per-layer weights + resident IO/activation +
# the (S,S) score / gram temporaries, with 1.5x headroom.
# ---------------------------------------------------------------------------
def _vmem_limit_bytes(S):
    f32 = 4
    weights = 2 * ((DIM * QKV_DIM + DIM * DIM + DIM * FFN_DIM + FFN_DIM * DIM) * 2
                   + 8 * SLAB_W * f32)              # bf16 GEMM weights + f32 slab
    io = 2 * (2 * S * DIM * f32) + 2 * DIM * f32 + 2 * S * DIM * f32
    scratch = S * DIM * f32
    temps = 8 * S * S * f32 + 6 * S * FFN_DIM * f32
    est = int(1.5 * (weights + io + scratch + temps))
    # floor = v6e/v7x scoped default; cap = v7x physical VMEM.  TODO(synk): S
    # large enough to exceed the cap needs the S-tiled attention/MMD anyway.
    return min(max(est, 32 << 20), 64 << 20)


# ---------------------------------------------------------------------------
# Module-level wrapper: single fused pallas_call over a layer grid.
# ---------------------------------------------------------------------------
def cross_domain_adapter(hsi_features, rgb_features, params, prune_mask):
    N, H, W, C = hsi_features.shape
    S = N * H * W
    x = hsi_features.reshape(S, C)          # same as x.view(-1, C) in PyTorch
    y = rgb_features.reshape(S, C)

    full = lambda l: (0, 0)                 # resident across all layers
    per_layer = lambda l: (l, 0, 0)         # layer-l weight slab (prefetched)

    grid_spec = pltpu.PrefetchScalarGridSpec(
        num_scalar_prefetch=0,
        grid=(NUM_LAYERS,),
        in_specs=[
            pl.BlockSpec((S, C), full),                      # HSI tokens
            pl.BlockSpec((S, C), full),                      # RGB tokens
            pl.BlockSpec((1, C), full),                      # prune mask
            pl.BlockSpec((None, C, QKV_DIM), per_layer),     # fused Wqkv
            pl.BlockSpec((None, C, C), per_layer),           # Wo
            pl.BlockSpec((None, C, FFN_DIM), per_layer),     # W1
            pl.BlockSpec((None, FFN_DIM, C), per_layer),     # W2
            pl.BlockSpec((None, 8, SLAB_W), per_layer),      # bias/LN slab
        ],
        out_specs=(
            pl.BlockSpec((S, C), full),                      # pruned tokens
            pl.BlockSpec((1, 1), full),                      # MMD scalar
        ),
        scratch_shapes=[pltpu.VMEM((S, C), jnp.float32)],    # resident activation
    )

    aligned, mmd = pl.pallas_call(
        _fused_kernel,
        out_shape=(jax.ShapeDtypeStruct((S, C), hsi_features.dtype),
                   jax.ShapeDtypeStruct((1, 1), jnp.float32)),
        grid_spec=grid_spec,
        compiler_params=pltpu.CompilerParams(
            dimension_semantics=("arbitrary",),              # layers are sequential
            vmem_limit_bytes=_vmem_limit_bytes(S)),
    )(x, y, prune_mask, *params)
    return aligned.reshape(N, H, W, C), mmd[0, 0]


# ---------------------------------------------------------------------------
# Deterministic parameter initialization. Weights stacked over layers and
# transposed so kernels compute x @ W + b; GEMM weights bf16 (f32 accum);
# Q/K/V projections fused into one (dim, 3*dim) slab; biases + LayerNorm
# params packed into one (8, SLAB_W) f32 slab per layer.
# ---------------------------------------------------------------------------
def init_params(key, num_layers=NUM_LAYERS, dim=DIM, ffn=FFN_DIM):
    ks = jax.random.split(key, 6)
    s_in = 1.0 / math.sqrt(dim)
    s_ff = 1.0 / math.sqrt(ffn)
    mk = lambda k, shape, s: (jax.random.normal(k, shape, jnp.float32) * s).astype(jnp.bfloat16)
    wq = mk(ks[0], (num_layers, dim, dim), s_in)
    wk = mk(ks[1], (num_layers, dim, dim), s_in)
    wv = mk(ks[2], (num_layers, dim, dim), s_in)
    wqkv = jnp.concatenate([wq, wk, wv], axis=-1)            # (L, dim, 3*dim)
    wo = mk(ks[3], (num_layers, dim, dim), s_in)
    w1 = mk(ks[4], (num_layers, dim, ffn), s_in)
    w2 = mk(ks[5], (num_layers, ffn, dim), s_ff)
    # packed slab rows: 0=bq|bk|bv, 1=bo, 2=b_ff1, 3=b_ff2, 4=g1, 5=b1, 6=g2, 7=b2
    slab = jnp.zeros((num_layers, 8, SLAB_W), jnp.float32)
    slab = slab.at[:, 4, :dim].set(1.0)                      # g1 = 1
    slab = slab.at[:, 6, :dim].set(1.0)                      # g2 = 1
    return (wqkv, wo, w1, w2, slab)


if __name__ == "__main__":
    key = jax.random.PRNGKey(0)
    k_hsi, k_rgb, k_par = jax.random.split(key, 3)

    # small shapes consistent with the module: N x H x W x C, C = d_model = 64
    N, H, W, C = 2, 8, 8, DIM
    hsi = jax.random.normal(k_hsi, (N, H, W, C), jnp.float32)
    rgb = jax.random.normal(k_rgb, (N, H, W, C), jnp.float32)

    params = init_params(k_par)

    # prune_mask: ones for the first int(dim * prune_ratio) channels, zeros after
    keep = int(DIM * PRUNE_RATIO)
    prune_mask = (jnp.arange(DIM) < keep).astype(jnp.float32).reshape(1, DIM)

    aligned, mmd_loss = cross_domain_adapter(hsi, rgb, params, prune_mask)
    jax.block_until_ready((aligned, mmd_loss))

    assert aligned.shape == (N, H, W, C)
    assert mmd_loss.shape == ()
    print("KERNEL_OK")
</pallas_src>

<mosaic_0001>
module attributes {stable_mosaic.version = 11 : i64} {
  func.func @_fused_kernel(%arg0: i32, %arg1: memref<128x64xf32, #tpu.memory_space<vmem>>, %arg2: memref<128x64xf32, #tpu.memory_space<vmem>>, %arg3: memref<1x64xf32, #tpu.memory_space<vmem>>, %arg4: memref<1x64x192xbf16, #tpu.memory_space<vmem>>, %arg5: memref<1x64x64xbf16, #tpu.memory_space<vmem>>, %arg6: memref<1x64x256xbf16, #tpu.memory_space<vmem>>, %arg7: memref<1x256x64xbf16, #tpu.memory_space<vmem>>, %arg8: memref<1x8x256xf32, #tpu.memory_space<vmem>>, %arg9: memref<128x64xf32, #tpu.memory_space<vmem>>, %arg10: memref<1x1xf32, #tpu.memory_space<vmem>>, %arg11: memref<128x64xf32, #tpu.memory_space<vmem>>) attributes {dimension_semantics = [#tpu.dimension_semantics<arbitrary>], iteration_bounds = array<i64: 4>, scalar_prefetch = 0 : i64, scratch_operands = 1 : i64, tpu.core_type = #tpu.core_type<tc>, window_params = [{pipeline_mode = #tpu.pipeline_mode<synchronous>, transform_indices = @transform_0, window_bounds = array<i64: 128, 64>}, {pipeline_mode = #tpu.pipeline_mode<synchronous>, transform_indices = @transform_1, window_bounds = array<i64: 128, 64>}, {pipeline_mode = #tpu.pipeline_mode<synchronous>, transform_indices = @transform_2, window_bounds = array<i64: 1, 64>}, {transform_indices = @transform_3, window_bounds = array<i64: 1, 64, 192>}, {transform_indices = @transform_4, window_bounds = array<i64: 1, 64, 64>}, {transform_indices = @transform_5, window_bounds = array<i64: 1, 64, 256>}, {transform_indices = @transform_6, window_bounds = array<i64: 1, 256, 64>}, {transform_indices = @transform_7, window_bounds = array<i64: 1, 8, 256>}, {pipeline_mode = #tpu.pipeline_mode<synchronous>, transform_indices = @transform_8, window_bounds = array<i64: 128, 64>}, {pipeline_mode = #tpu.pipeline_mode<synchronous>, transform_indices = @transform_9, window_bounds = array<i64: 1, 1>}]} {
    %c0_i32 = arith.constant 0 : i32
    %0 = arith.cmpi eq, %arg0, %c0_i32 : i32
    %1 = arith.extui %0 : i1 to i32
    %c0_i32_0 = arith.constant 0 : i32
    %2 = arith.cmpi ne, %1, %c0_i32_0 : i32
    scf.if %2 {
      %c0_55 = arith.constant 0 : index
      %c0_56 = arith.constant 0 : index
      %167 = vector.load %arg1[%c0_55, %c0_56] : memref<128x64xf32, #tpu.memory_space<vmem>>, vector<128x64xf32>
      %c0_57 = arith.constant 0 : index
      %c0_58 = arith.constant 0 : index
      %168 = vector.load %arg11[%c0_57, %c0_58] : memref<128x64xf32, #tpu.memory_space<vmem>>, vector<128x64xf32>
      tpu.vector_store %arg11[%c0_57, %c0_58], %167 {strides = array<i32>} : memref<128x64xf32, #tpu.memory_space<vmem>>, vector<128x64xf32>,
    } else {
    }
    %c0 = arith.constant 0 : index
    %c0_1 = arith.constant 0 : index
    %3 = vector.load %arg11[%c0, %c0_1] : memref<128x64xf32, #tpu.memory_space<vmem>>, vector<128x64xf32>
    %4 = arith.truncf %3 : vector<128x64xf32> to vector<128x64xbf16>
    %c0_2 = arith.constant 0 : index
    %c0_3 = arith.constant 0 : index
    %c0_4 = arith.constant 0 : index
    %5 = vector.load %arg8[%c0_2, %c0_3, %c0_4] : memref<1x8x256xf32, #tpu.memory_space<vmem>>, vector<1x8x256xf32>
    %6 = vector.shape_cast %5 : vector<1x8x256xf32> to vector<8x256xf32>
    %7 = vector.extract_strided_slice %6 {offsets = [0, 0], sizes = [1, 192], strides = [1, 1]} : vector<8x256xf32> to vector<1x192xf32>
    %8 = vector.extract_strided_slice %6 {offsets = [1, 0], sizes = [1, 64], strides = [1, 1]} : vector<8x256xf32> to vector<1x64xf32>
    %9 = vector.extract_strided_slice %6 {offsets = [2, 0], sizes = [1, 256], strides = [1, 1]} : vector<8x256xf32> to vector<1x256xf32>
    %10 = vector.extract_strided_slice %6 {offsets = [3, 0], sizes = [1, 64], strides = [1, 1]} : vector<8x256xf32> to vector<1x64xf32>
    %11 = vector.extract_strided_slice %6 {offsets = [4, 0], sizes = [1, 64], strides = [1, 1]} : vector<8x256xf32> to vector<1x64xf32>
    %12 = vector.extract_strided_slice %6 {offsets = [5, 0], sizes = [1, 64], strides = [1, 1]} : vector<8x256xf32> to vector<1x64xf32>
    %13 = vector.extract_strided_slice %6 {offsets = [6, 0], sizes = [1, 64], strides = [1, 1]} : vector<8x256xf32> to vector<1x64xf32>
    %14 = vector.extract_strided_slice %6 {offsets = [7, 0], sizes = [1, 64], strides = [1, 1]} : vector<8x256xf32> to vector<1x64xf32>
    %c0_5 = arith.constant 0 : index
    %c0_6 = arith.constant 0 : index
    %c0_7 = arith.constant 0 : index
    %15 = vector.load %arg4[%c0_5, %c0_6, %c0_7] : memref<1x64x192xbf16, #tpu.memory_space<vmem>>, vector<1x64x192xbf16>
    %16 = vector.shape_cast %15 : vector<1x64x192xbf16> to vector<64x192xbf16>
    %cst = arith.constant dense<0.000000e+00> : vector<128x192xf32>
    %17 = tpu.matmul %4, %16, %cst {dimension_numbers = #tpu.dot_dimension_numbers<[1], [0], [0], [1], [0, 0, 1, 1], [], []>} : vector<128x64xbf16>, vector<64x192xbf16>, vector<128x192xf32> -> vector<128x192xf32>
    %18 = vector.broadcast %7 : vector<1x192xf32> to vector<128x192xf32>
    %19 = arith.addf %17, %18 : vector<128x192xf32>
    %20 = vector.extract_strided_slice %19 {offsets = [0, 0], sizes = [128, 64], strides = [1, 1]} : vector<128x192xf32> to vector<128x64xf32>
    %cst_8 = arith.constant 2.500000e-01 : f32
    %21 = vector.broadcast %cst_8 : f32 to vector<128x64xf32>
    %22 = arith.mulf %20, %21 : vector<128x64xf32>
    %23 = arith.truncf %22 : vector<128x64xf32> to vector<128x64xbf16>
    %24 = vector.extract_strided_slice %19 {offsets = [0, 64], sizes = [128, 64], strides = [1, 1]} : vector<128x192xf32> to vector<128x64xf32>
    %25 = arith.truncf %24 : vector<128x64xf32> to vector<128x64xbf16>
    %26 = vector.extract_strided_slice %19 {offsets = [0, 128], sizes = [128, 64], strides = [1, 1]} : vector<128x192xf32> to vector<128x64xf32>
    %27 = arith.truncf %26 : vector<128x64xf32> to vector<128x64xbf16>
    %28 = vector.extract_strided_slice %23 {offsets = [0, 0], sizes = [128, 16], strides = [1, 1]} : vector<128x64xbf16> to vector<128x16xbf16>
    %29 = vector.extract_strided_slice %25 {offsets = [0, 0], sizes = [128, 16], strides = [1, 1]} : vector<128x64xbf16> to vector<128x16xbf16>
    %30 = vector.extract_strided_slice %27 {offsets = [0, 0], sizes = [128, 16], strides = [1, 1]} : vector<128x64xbf16> to vector<128x16xbf16>
    %cst_9 = arith.constant dense<0.000000e+00> : vector<128x128xf32>
    %31 = tpu.matmul %28, %29, %cst_9 {dimension_numbers = #tpu.dot_dimension_numbers<[1], [1], [0], [0], [0, 0, 1, 0], [], []>} : vector<128x16xbf16>, vector<128x16xbf16>, vector<128x128xf32> -> vector<128x128xf32>
    %cst_10 = arith.constant dense<0xFF800000> : vector<128xf32>
    %32 = vector.multi_reduction <maximumf>, %31, %cst_10 [1] : vector<128x128xf32> to vector<128xf32>
    %33 = vector.shape_cast %32 : vector<128xf32> to vector<128x1xf32>
    %34 = vector.broadcast %33 : vector<128x1xf32> to vector<128x128xf32>
    %35 = arith.subf %31, %34 : vector<128x128xf32>
    %36 = math.exp %35 : vector<128x128xf32>
    %cst_11 = arith.constant dense<0.000000e+00> : vector<128xf32>
    %37 = vector.multi_reduction <add>, %36, %cst_11 [1] : vector<128x128xf32> to vector<128xf32>
    %38 = vector.shape_cast %37 : vector<128xf32> to vector<128x1xf32>
    %39 = arith.truncf %36 : vector<128x128xf32> to vector<128x128xbf16>
    %cst_12 = arith.constant dense<0.000000e+00> : vector<128x16xf32>
    %40 = tpu.matmul %39, %30, %cst_12 {dimension_numbers = #tpu.dot_dimension_numbers<[1], [0], [0], [1], [0, 0, 1, 1], [], []>} : vector<128x128xbf16>, vector<128x16xbf16>, vector<128x16xf32> -> vector<128x16xf32>
    %cst_13 = arith.constant 1.000000e+00 : f32
    %41 = vector.broadcast %cst_13 : f32 to vector<128x1xf32>
    %42 = arith.divf %41, %38 : vector<128x1xf32>
    %43 = vector.broadcast %42 : vector<128x1xf32> to vector<128x16xf32>
    %44 = arith.mulf %40, %43 : vector<128x16xf32>
    %45 = vector.extract_strided_slice %23 {offsets = [0, 16], sizes = [128, 16], strides = [1, 1]} : vector<128x64xbf16> to vector<128x16xbf16>
    %46 = vector.extract_strided_slice %25 {offsets = [0, 16], sizes = [128, 16], strides = [1, 1]} : vector<128x64xbf16> to vector<128x16xbf16>
    %47 = vector.extract_strided_slice %27 {offsets = [0, 16], sizes = [128, 16], strides = [1, 1]} : vector<128x64xbf16> to vector<128x16xbf16>
    %cst_14 = arith.constant dense<0.000000e+00> : vector<128x128xf32>
    %48 = tpu.matmul %45, %46, %cst_14 {dimension_numbers = #tpu.dot_dimension_numbers<[1], [1], [0], [0], [0, 0, 1, 0], [], []>} : vector<128x16xbf16>, vector<128x16xbf16>, vector<128x128xf32> -> vector<128x128xf32>
    %cst_15 = arith.constant dense<0xFF800000> : vector<128xf32>
    %49 = vector.multi_reduction <maximumf>, %48, %cst_15 [1] : vector<128x128xf32> to vector<128xf32>
    %50 = vector.shape_cast %49 : vector<128xf32> to vector<128x1xf32>
    %51 = vector.broadcast %50 : vector<128x1xf32> to vector<128x128xf32>
    %52 = arith.subf %48, %51 : vector<128x128xf32>
    %53 = math.exp %52 : vector<128x128xf32>
    %cst_16 = arith.constant dense<0.000000e+00> : vector<128xf32>
    %54 = vector.multi_reduction <add>, %53, %cst_16 [1] : vector<128x128xf32> to vector<128xf32>
    %55 = vector.shape_cast %54 : vector<128xf32> to vector<128x1xf32>
    %56 = arith.truncf %53 : vector<128x128xf32> to vector<128x128xbf16>
    %cst_17 = arith.constant dense<0.000000e+00> : vector<128x16xf32>
    %57 = tpu.matmul %56, %47, %cst_17 {dimension_numbers = #tpu.dot_dimension_numbers<[1], [0], [0], [1], [0, 0, 1, 1], [], []>} : vector<128x128xbf16>, vector<128x16xbf16>, vector<128x16xf32> -> vector<128x16xf32>
    %cst_18 = arith.constant 1.000000e+00 : f32
    %58 = vector.broadcast %cst_18 : f32 to vector<128x1xf32>
    %59 = arith.divf %58, %55 : vector<128x1xf32>
    %60 = vector.broadcast %59 : vector<128x1xf32> to vector<128x16xf32>
    %61 = arith.mulf %57, %60 : vector<128x16xf32>
    %62 = vector.extract_strided_slice %23 {offsets = [0, 32], sizes = [128, 16], strides = [1, 1]} : vector<128x64xbf16> to vector<128x16xbf16>
    %63 = vector.extract_strided_slice %25 {offsets = [0, 32], sizes = [128, 16], strides = [1, 1]} : vector<128x64xbf16> to vector<128x16xbf16>
    %64 = vector.extract_strided_slice %27 {offsets = [0, 32], sizes = [128, 16], strides = [1, 1]} : vector<128x64xbf16> to vector<128x16xbf16>
    %cst_19 = arith.constant dense<0.000000e+00> : vector<128x128xf32>
    %65 = tpu.matmul %62, %63, %cst_19 {dimension_numbers = #tpu.dot_dimension_numbers<[1], [1], [0], [0], [0, 0, 1, 0], [], []>} : vector<128x16xbf16>, vector<128x16xbf16>, vector<128x128xf32> -> vector<128x128xf32>
    %cst_20 = arith.constant dense<0xFF800000> : vector<128xf32>
    %66 = vector.multi_reduction <maximumf>, %65, %cst_20 [1] : vector<128x128xf32> to vector<128xf32>
    %67 = vector.shape_cast %66 : vector<128xf32> to vector<128x1xf32>
    %68 = vector.broadcast %67 : vector<128x1xf32> to vector<128x128xf32>
    %69 = arith.subf %65, %68 : vector<128x128xf32>
    %70 = math.exp %69 : vector<128x128xf32>
    %cst_21 = arith.constant dense<0.000000e+00> : vector<128xf32>
    %71 = vector.multi_reduction <add>, %70, %cst_21 [1] : vector<128x128xf32> to vector<128xf32>
    %72 = vector.shape_cast %71 : vector<128xf32> to vector<128x1xf32>
    %73 = arith.truncf %70 : vector<128x128xf32> to vector<128x128xbf16>
    %cst_22 = arith.constant dense<0.000000e+00> : vector<128x16xf32>
    %74 = tpu.matmul %73, %64, %cst_22 {dimension_numbers = #tpu.dot_dimension_numbers<[1], [0], [0], [1], [0, 0, 1, 1], [], []>} : vector<128x128xbf16>, vector<128x16xbf16>, vector<128x16xf32> -> vector<128x16xf32>
    %cst_23 = arith.constant 1.000000e+00 : f32
    %75 = vector.broadcast %cst_23 : f32 to vector<128x1xf32>
    %76 = arith.divf %75, %72 : vector<128x1xf32>
    %77 = vector.broadcast %76 : vector<128x1xf32> to vector<128x16xf32>
    %78 = arith.mulf %74, %77 : vector<128x16xf32>
    %79 = vector.extract_strided_slice %23 {offsets = [0, 48], sizes = [128, 16], strides = [1, 1]} : vector<128x64xbf16> to vector<128x16xbf16>
    %80 = vector.extract_strided_slice %25 {offsets = [0, 48], sizes = [128, 16], strides = [1, 1]} : vector<128x64xbf16> to vector<128x16xbf16>
    %81 = vector.extract_strided_slice %27 {offsets = [0, 48], sizes = [128, 16], strides = [1, 1]} : vector<128x64xbf16> to vector<128x16xbf16>
    %cst_24 = arith.constant dense<0.000000e+00> : vector<128x128xf32>
    %82 = tpu.matmul %79, %80, %cst_24 {dimension_numbers = #tpu.dot_dimension_numbers<[1], [1], [0], [0], [0, 0, 1, 0], [], []>} : vector<128x16xbf16>, vector<128x16xbf16>, vector<128x128xf32> -> vector<128x128xf32>
    %cst_25 = arith.constant dense<0xFF800000> : vector<128xf32>
    %83 = vector.multi_reduction <maximumf>, %82, %cst_25 [1] : vector<128x128xf32> to vector<128xf32>
    %84 = vector.shape_cast %83 : vector<128xf32> to vector<128x1xf32>
    %85 = vector.broadcast %84 : vector<128x1xf32> to vector<128x128xf32>
    %86 = arith.subf %82, %85 : vector<128x128xf32>
    %87 = math.exp %86 : vector<128x128xf32>
    %cst_26 = arith.constant dense<0.000000e+00> : vector<128xf32>
    %88 = vector.multi_reduction <add>, %87, %cst_26 [1] : vector<128x128xf32> to vector<128xf32>
    %89 = vector.shape_cast %88 : vector<128xf32> to vector<128x1xf32>
    %90 = arith.truncf %87 : vector<128x128xf32> to vector<128x128xbf16>
    %cst_27 = arith.constant dense<0.000000e+00> : vector<128x16xf32>
    %91 = tpu.matmul %90, %81, %cst_27 {dimension_numbers = #tpu.dot_dimension_numbers<[1], [0], [0], [1], [0, 0, 1, 1], [], []>} : vector<128x128xbf16>, vector<128x16xbf16>, vector<128x16xf32> -> vector<128x16xf32>
    %cst_28 = arith.constant 1.000000e+00 : f32
    %92 = vector.broadcast %cst_28 : f32 to vector<128x1xf32>
    %93 = arith.divf %92, %89 : vector<128x1xf32>
    %94 = vector.broadcast %93 : vector<128x1xf32> to vector<128x16xf32>
    %95 = arith.mulf %91, %94 : vector<128x16xf32>
    %96 = tpu.concatenate %44, %61, %78, %95 in 1 : vector<128x16xf32>, vector<128x16xf32>, vector<128x16xf32>, vector<128x16xf32> -> vector<128x64xf32>
    %97 = arith.truncf %96 : vector<128x64xf32> to vector<128x64xbf16>
    %c0_29 = arith.constant 0 : index
    %c0_30 = arith.constant 0 : index
    %c0_31 = arith.constant 0 : index
    %98 = vector.load %arg5[%c0_29, %c0_30, %c0_31] : memref<1x64x64xbf16, #tpu.memory_space<vmem>>, vector<1x64x64xbf16>
    %99 = vector.shape_cast %98 : vector<1x64x64xbf16> to vector<64x64xbf16>
    %cst_32 = arith.constant dense<0.000000e+00> : vector<128x64xf32>
    %100 = tpu.matmul %97, %99, %cst_32 {dimension_numbers = #tpu.dot_dimension_numbers<[1], [0], [0], [1], [0, 0, 1, 1], [], []>} : vector<128x64xbf16>, vector<64x64xbf16>, vector<128x64xf32> -> vector<128x64xf32>
    %101 = vector.broadcast %8 : vector<1x64xf32> to vector<128x64xf32>
    %102 = arith.addf %100, %101 : vector<128x64xf32>
    %103 = arith.addf %3, %102 : vector<128x64xf32>
    %cst_33 = arith.constant dense<0.000000e+00> : vector<128xf32>
    %104 = vector.multi_reduction <add>, %103, %cst_33 [1] : vector<128x64xf32> to vector<128xf32>
    %105 = vector.shape_cast %104 : vector<128xf32> to vector<128x1xf32>
    %cst_34 = arith.constant 6.400000e+01 : f32
    %106 = vector.broadcast %cst_34 : f32 to vector<128x1xf32>
    %107 = arith.divf %105, %106 : vector<128x1xf32>
    %108 = vector.broadcast %107 : vector<128x1xf32> to vector<128x64xf32>
    %109 = arith.subf %103, %108 : vector<128x64xf32>
    %110 = arith.mulf %109, %109 : vector<128x64xf32>
    %cst_35 = arith.constant dense<0.000000e+00> : vector<128xf32>
    %111 = vector.multi_reduction <add>, %110, %cst_35 [1] : vector<128x64xf32> to vector<128xf32>
    %112 = vector.shape_cast %111 : vector<128xf32> to vector<128x1xf32>
    %cst_36 = arith.constant 6.400000e+01 : f32
    %113 = vector.broadcast %cst_36 : f32 to vector<128x1xf32>
    %114 = arith.divf %112, %113 : vector<128x1xf32>
    %115 = vector.broadcast %107 : vector<128x1xf32> to vector<128x64xf32>
    %116 = arith.subf %103, %115 : vector<128x64xf32>
    %cst_37 = arith.constant 9.99999974E-6 : f32
    %117 = vector.broadcast %cst_37 : f32 to vector<128x1xf32>
    %118 = arith.addf %114, %117 : vector<128x1xf32>
    %119 = math.rsqrt %118 : vector<128x1xf32>
    %120 = vector.broadcast %119 : vector<128x1xf32> to vector<128x64xf32>
    %121 = arith.mulf %116, %120 : vector<128x64xf32>
    %122 = vector.broadcast %11 : vector<1x64xf32> to vector<128x64xf32>
    %123 = arith.mulf %121, %122 : vector<128x64xf32>
    %124 = vector.broadcast %12 : vector<1x64xf32> to vector<128x64xf32>
    %125 = arith.addf %123, %124 : vector<128x64xf32>
    %126 = arith.truncf %125 : vector<128x64xf32> to vector<128x64xbf16>
    %c0_38 = arith.constant 0 : index
    %c0_39 = arith.constant 0 : index
    %c0_40 = arith.constant 0 : index
    %127 = vector.load %arg6[%c0_38, %c0_39, %c0_40] : memref<1x64x256xbf16, #tpu.memory_space<vmem>>, vector<1x64x256xbf16>
    %128 = vector.shape_cast %127 : vector<1x64x256xbf16> to vector<64x256xbf16>
    %cst_41 = arith.constant dense<0.000000e+00> : vector<128x256xf32>
    %129 = tpu.matmul %126, %128, %cst_41 {dimension_numbers = #tpu.dot_dimension_numbers<[1], [0], [0], [1], [0, 0, 1, 1], [], []>} : vector<128x64xbf16>, vector<64x256xbf16>, vector<128x256xf32> -> vector<128x256xf32>
    %130 = vector.broadcast %9 : vector<1x256xf32> to vector<128x256xf32>
    %131 = arith.addf %129, %130 : vector<128x256xf32>
    %cst_42 = arith.constant 0.000000e+00 : f32
    %132 = vector.broadcast %cst_42 : f32 to vector<128x256xf32>
    %133 = arith.maximumf %131, %132 : vector<128x256xf32>
    %134 = arith.truncf %133 : vector<128x256xf32> to vector<128x256xbf16>
    %c0_43 = arith.constant 0 : index
    %c0_44 = arith.constant 0 : index
    %c0_45 = arith.constant 0 : index
    %135 = vector.load %arg7[%c0_43, %c0_44, %c0_45] : memref<1x256x64xbf16, #tpu.memory_space<vmem>>, vector<1x256x64xbf16>
    %136 = vector.shape_cast %135 : vector<1x256x64xbf16> to vector<256x64xbf16>
    %cst_46 = arith.constant dense<0.000000e+00> : vector<128x64xf32>
    %137 = tpu.matmul %134, %136, %cst_46 {dimension_numbers = #tpu.dot_dimension_numbers<[1], [0], [0], [1], [0, 0, 1, 1], [], []>} : vector<128x256xbf16>, vector<256x64xbf16>, vector<128x64xf32> -> vector<128x64xf32>
    %138 = vector.broadcast %10 : vector<1x64xf32> to vector<128x64xf32>
    %139 = arith.addf %137, %138 : vector<128x64xf32>
    %140 = arith.addf %125, %139 : vector<128x64xf32>
    %cst_47 = arith.constant dense<0.000000e+00> : vector<128xf32>
    %141 = vector.multi_reduction <add>, %140, %cst_47 [1] : vector<128x64xf32> to vector<128xf32>
    %142 = vector.shape_cast %141 : vector<128xf32> to vector<128x1xf32>
    %cst_48 = arith.constant 6.400000e+01 : f32
    %143 = vector.broadcast %cst_48 : f32 to vector<128x1xf32>
    %144 = arith.divf %142, %143 : vector<128x1xf32>
    %145 = vector.broadcast %144 : vector<128x1xf32> to vector<128x64xf32>
    %146 = arith.subf %140, %145 : vector<128x64xf32>
    %147 = arith.mulf %146, %146 : vector<128x64xf32>
    %cst_49 = arith.constant dense<0.000000e+00> : vector<128xf32>
    %148 = vector.multi_reduction <add>, %147, %cst_49 [1] : vector<128x64xf32> to vector<128xf32>
    %149 = vector.shape_cast %148 : vector<128xf32> to vector<128x1xf32>
    %cst_50 = arith.constant 6.400000e+01 : f32
    %150 = vector.broadcast %cst_50 : f32 to vector<128x1xf32>
    %151 = arith.divf %149, %150 : vector<128x1xf32>
    %152 = vector.broadcast %144 : vector<128x1xf32> to vector<128x64xf32>
    %153 = arith.subf %140, %152 : vector<128x64xf32>
    %cst_51 = arith.constant 9.99999974E-6 : f32
    %154 = vector.broadcast %cst_51 : f32 to vector<128x1xf32>
    %155 = arith.addf %151, %154 : vector<128x1xf32>
    %156 = math.rsqrt %155 : vector<128x1xf32>
    %157 = vector.broadcast %156 : vector<128x1xf32> to vector<128x64xf32>
    %158 = arith.mulf %153, %157 : vector<128x64xf32>
    %159 = vector.broadcast %13 : vector<1x64xf32> to vector<128x64xf32>
    %160 = arith.mulf %158, %159 : vector<128x64xf32>
    %161 = vector.broadcast %14 : vector<1x64xf32> to vector<128x64xf32>
    %162 = arith.addf %160, %161 : vector<128x64xf32>
    %c0_52 = arith.constant 0 : index
    %c0_53 = arith.constant 0 : index
    %163 = vector.load %arg11[%c0_52, %c0_53] : memref<128x64xf32, #tpu.memory_space<vmem>>, vector<128x64xf32>
    tpu.vector_store %arg11[%c0_52, %c0_53], %162 {strides = array<i32>} : memref<128x64xf32, #tpu.memory_space<vmem>>, vector<128x64xf32>,
    %c3_i32 = arith.constant 3 : i32
    %164 = arith.cmpi eq, %arg0, %c3_i32 : i32
    %165 = arith.extui %164 : i1 to i32
    %c0_i32_54 = arith.constant 0 : i32
    %166 = arith.cmpi ne, %165, %c0_i32_54 : i32
    scf.if %166 {
      %c0_55 = arith.constant 0 : index
      %c0_56 = arith.constant 0 : index
      %167 = vector.load %arg3[%c0_55, %c0_56] : memref<1x64xf32, #tpu.memory_space<vmem>>, vector<1x64xf32>
      %168 = vector.broadcast %167 : vector<1x64xf32> to vector<128x64xf32>
      %169 = arith.mulf %162, %168 : vector<128x64xf32>
      %c0_57 = arith.constant 0 : index
      %c0_58 = arith.constant 0 : index
      %170 = vector.load %arg9[%c0_57, %c0_58] : memref<128x64xf32, #tpu.memory_space<vmem>>, vector<128x64xf32>
      tpu.vector_store %arg9[%c0_57, %c0_58], %169 {strides = array<i32>} : memref<128x64xf32, #tpu.memory_space<vmem>>, vector<128x64xf32>,
      %c0_59 = arith.constant 0 : index
      %c0_60 = arith.constant 0 : index
      %171 = vector.load %arg2[%c0_59, %c0_60] : memref<128x64xf32, #tpu.memory_space<vmem>>, vector<128x64xf32>
      %172 = vector.extract_strided_slice %169 {offsets = [0, 0], sizes = [128, 32], strides = [1, 1]} : vector<128x64xf32> to vector<128x32xf32>
      %173 = vector.extract_strided_slice %171 {offsets = [0, 0], sizes = [128, 32], strides = [1, 1]} : vector<128x64xf32> to vector<128x32xf32>
      %174 = arith.mulf %172, %172 : vector<128x32xf32>
      %cst_61 = arith.constant dense<0.000000e+00> : vector<128xf32>
      %175 = vector.multi_reduction <add>, %174, %cst_61 [1] : vector<128x32xf32> to vector<128xf32>
      %176 = vector.shape_cast %175 : vector<128xf32> to vector<128x1xf32>
      %177 = arith.mulf %171, %171 : vector<128x64xf32>
      %cst_62 = arith.constant dense<0.000000e+00> : vector<128xf32>
      %178 = vector.multi_reduction <add>, %177, %cst_62 [1] : vector<128x64xf32> to vector<128xf32>
      %179 = vector.shape_cast %178 : vector<128xf32> to vector<128x1xf32>
      %180 = tpu.transpose %176, [1, 0] : vector<128x1xf32> -> vector<1x128xf32>
      %181 = tpu.transpose %179, [1, 0] : vector<128x1xf32> -> vector<1x128xf32>
      %cst_63 = arith.constant dense<0.000000e+00> : vector<128x128xf32>
      %182 = tpu.matmul %172, %172, %cst_63 {dimension_numbers = #tpu.dot_dimension_numbers<[1], [1], [0], [0], [0, 0, 1, 0], [], []>} : vector<128x32xf32>, vector<128x32xf32>, vector<128x128xf32> -> vector<128x128xf32>
      %183 = vector.broadcast %176 : vector<128x1xf32> to vector<128x128xf32>
      %184 = vector.broadcast %180 : vector<1x128xf32> to vector<128x128xf32>
      %185 = arith.addf %183, %184 : vector<128x128xf32>
      %cst_64 = arith.constant 2.000000e+00 : f32
      %186 = vector.broadcast %cst_64 : f32 to vector<128x128xf32>
      %187 = arith.mulf %186, %182 : vector<128x128xf32>
      %188 = arith.subf %185, %187 : vector<128x128xf32>
      %cst_65 = arith.constant 0.000000e+00 : f32
      %189 = vector.broadcast %cst_65 : f32 to vector<128x128xf32>
      %190 = arith.maximumf %188, %189 : vector<128x128xf32>
      %cst_66 = arith.constant -5.000000e-01 : f32
      %191 = vector.broadcast %cst_66 : f32 to vector<128x128xf32>
      %192 = arith.mulf %191, %190 : vector<128x128xf32>
      %193 = math.exp %192 : vector<128x128xf32>
      %cst_67 = arith.constant dense<0.000000e+00> : vector<128xf32>
      %194 = vector.multi_reduction <add>, %193, %cst_67 [0] : vector<128x128xf32> to vector<128xf32>
      %195 = vector.shape_cast %194 : vector<128xf32> to vector<1x128xf32>
      %cst_68 = arith.constant dense<0.000000e+00> : vector<1xf32>
      %196 = vector.multi_reduction <add>, %195, %cst_68 [1] : vector<1x128xf32> to vector<1xf32>
      %197 = vector.shape_cast %196 : vector<1xf32> to vector<1x1xf32>
      %cst_69 = arith.constant 6.10351563E-5 : f32
      %198 = vector.broadcast %cst_69 : f32 to vector<1x1xf32>
      %199 = arith.mulf %197, %198 : vector<1x1xf32>
      %cst_70 = arith.constant dense<0.000000e+00> : vector<128x128xf32>
      %200 = tpu.matmul %171, %171, %cst_70 {dimension_numbers = #tpu.dot_dimension_numbers<[1], [1], [0], [0], [0, 0, 1, 0], [], []>} : vector<128x64xf32>, vector<128x64xf32>, vector<128x128xf32> -> vector<128x128xf32>
      %201 = vector.broadcast %179 : vector<128x1xf32> to vector<128x128xf32>
      %202 = vector.broadcast %181 : vector<1x128xf32> to vector<128x128xf32>
      %203 = arith.addf %201, %202 : vector<128x128xf32>
      %cst_71 = arith.constant 2.000000e+00 : f32
      %204 = vector.broadcast %cst_71 : f32 to vector<128x128xf32>
      %205 = arith.mulf %204, %200 : vector<128x128xf32>
      %206 = arith.subf %203, %205 : vector<128x128xf32>
      %cst_72 = arith.constant 0.000000e+00 : f32
      %207 = vector.broadcast %cst_72 : f32 to vector<128x128xf32>
      %208 = arith.maximumf %206, %207 : vector<128x128xf32>
      %cst_73 = arith.constant -5.000000e-01 : f32
      %209 = vector.broadcast %cst_73 : f32 to vector<128x128xf32>
      %210 = arith.mulf %209, %208 : vector<128x128xf32>
      %211 = math.exp %210 : vector<128x128xf32>
      %cst_74 = arith.constant dense<0.000000e+00> : vector<128xf32>
      %212 = vector.multi_reduction <add>, %211, %cst_74 [0] : vector<128x128xf32> to vector<128xf32>
      %213 = vector.shape_cast %212 : vector<128xf32> to vector<1x128xf32>
      %cst_75 = arith.constant dense<0.000000e+00> : vector<1xf32>
      %214 = vector.multi_reduction <add>, %213, %cst_75 [1] : vector<1x128xf32> to vector<1xf32>
      %215 = vector.shape_cast %214 : vector<1xf32> to vector<1x1xf32>
      %cst_76 = arith.constant 6.10351563E-5 : f32
      %216 = vector.broadcast %cst_76 : f32 to vector<1x1xf32>
      %217 = arith.mulf %215, %216 : vector<1x1xf32>
      %218 = arith.addf %199, %217 : vector<1x1xf32>
      %cst_77 = arith.constant dense<0.000000e+00> : vector<128x128xf32>
      %219 = tpu.matmul %172, %173, %cst_77 {dimension_numbers = #tpu.dot_dimension_numbers<[1], [1], [0], [0], [0, 0, 1, 0], [], []>} : vector<128x32xf32>, vector<128x32xf32>, vector<128x128xf32> -> vector<128x128xf32>
      %220 = vector.broadcast %176 : vector<128x1xf32> to vector<128x128xf32>
      %221 = vector.broadcast %181 : vector<1x128xf32> to vector<128x128xf32>
      %222 = arith.addf %220, %221 : vector<128x128xf32>
      %cst_78 = arith.constant 2.000000e+00 : f32
      %223 = vector.broadcast %cst_78 : f32 to vector<128x128xf32>
      %224 = arith.mulf %223, %219 : vector<128x128xf32>
      %225 = arith.subf %222, %224 : vector<128x128xf32>
      %cst_79 = arith.constant 0.000000e+00 : f32
      %226 = vector.broadcast %cst_79 : f32 to vector<128x128xf32>
      %227 = arith.maximumf %225, %226 : vector<128x128xf32>
      %cst_80 = arith.constant -5.000000e-01 : f32
      %228 = vector.broadcast %cst_80 : f32 to vector<128x128xf32>
      %229 = arith.mulf %228, %227 : vector<128x128xf32>
      %230 = math.exp %229 : vector<128x128xf32>
      %cst_81 = arith.constant dense<0.000000e+00> : vector<128xf32>
      %231 = vector.multi_reduction <add>, %230, %cst_81 [0] : vector<128x128xf32> to vector<128xf32>
      %232 = vector.shape_cast %231 : vector<128xf32> to vector<1x128xf32>
      %cst_82 = arith.constant dense<0.000000e+00> : vector<1xf32>
      %233 = vector.multi_reduction <add>, %232, %cst_82 [1] : vector<1x128xf32> to vector<1xf32>
      %234 = vector.shape_cast %233 : vector<1xf32> to vector<1x1xf32>
      %cst_83 = arith.constant 6.10351563E-5 : f32
      %235 = vector.broadcast %cst_83 : f32 to vector<1x1xf32>
      %236 = arith.mulf %234, %235 : vector<1x1xf32>
      %cst_84 = arith.constant 2.000000e+00 : f32
      %237 = vector.broadcast %cst_84 : f32 to vector<1x1xf32>
      %238 = arith.mulf %237, %236 : vector<1x1xf32>
      %239 = arith.subf %218, %238 : vector<1x1xf32>
      %c0_85 = arith.constant 0 : index
      %c0_86 = arith.constant 0 : index
      %240 = vector.load %arg10[%c0_85, %c0_86] : memref<1x1xf32, #tpu.memory_space<vmem>>, vector<1x1xf32>
      tpu.vector_store %arg10[%c0_85, %c0_86], %239 {strides = array<i32>} : memref<1x1xf32, #tpu.memory_space<vmem>>, vector<1x1xf32>,
    } else {
    }
    return
  }
  func.func @transform_0(%arg0: i32) -> (i32, i32) {
    %c0_i32 = arith.constant 0 : i32
    %c0_i32_0 = arith.constant 0 : i32
    %c0_i32_1 = arith.constant 0 : i32
    return %c0_i32, %c0_i32_0 : i32, i32
  }
  func.func @transform_1(%arg0: i32) -> (i32, i32) {
    %c0_i32 = arith.constant 0 : i32
    %c0_i32_0 = arith.constant 0 : i32
    %c0_i32_1 = arith.constant 0 : i32
    return %c0_i32, %c0_i32_0 : i32, i32
  }
  func.func @transform_2(%arg0: i32) -> (i32, i32) {
    %c0_i32 = arith.constant 0 : i32
    %c0_i32_0 = arith.constant 0 : i32
    %c0_i32_1 = arith.constant 0 : i32
    return %c0_i32, %c0_i32_0 : i32, i32
  }
  func.func @transform_3(%arg0: i32) -> (i32, i32, i32) {
    %c0_i32 = arith.constant 0 : i32
    %c0_i32_0 = arith.constant 0 : i32
    %c0_i32_1 = arith.constant 0 : i32
    return %arg0, %c0_i32, %c0_i32_0 : i32, i32, i32
  }
  func.func @transform_4(%arg0: i32) -> (i32, i32, i32) {
    %c0_i32 = arith.constant 0 : i32
    %c0_i32_0 = arith.constant 0 : i32
    %c0_i32_1 = arith.constant 0 : i32
    return %arg0, %c0_i32, %c0_i32_0 : i32, i32, i32
  }
  func.func @transform_5(%arg0: i32) -> (i32, i32, i32) {
    %c0_i32 = arith.constant 0 : i32
    %c0_i32_0 = arith.constant 0 : i32
    %c0_i32_1 = arith.constant 0 : i32
    return %arg0, %c0_i32, %c0_i32_0 : i32, i32, i32
  }
  func.func @transform_6(%arg0: i32) -> (i32, i32, i32) {
    %c0_i32 = arith.constant 0 : i32
    %c0_i32_0 = arith.constant 0 : i32
    %c0_i32_1 = arith.constant 0 : i32
    return %arg0, %c0_i32, %c0_i32_0 : i32, i32, i32
  }
  func.func @transform_7(%arg0: i32) -> (i32, i32, i32) {
    %c0_i32 = arith.constant 0 : i32
    %c0_i32_0 = arith.constant 0 : i32
    %c0_i32_1 = arith.constant 0 : i32
    return %arg0, %c0_i32, %c0_i32_0 : i32, i32, i32
  }
  func.func @transform_8(%arg0: i32) -> (i32, i32) {
    %c0_i32 = arith.constant 0 : i32
    %c0_i32_0 = arith.constant 0 : i32
    %c0_i32_1 = arith.constant 0 : i32
    return %c0_i32, %c0_i32_0 : i32, i32
  }
  func.func @transform_9(%arg0: i32) -> (i32, i32) {
    %c0_i32 = arith.constant 0 : i32
    %c0_i32_0 = arith.constant 0 : i32
    %c0_i32_1 = arith.constant 0 : i32
    return %c0_i32, %c0_i32_0 : i32, i32
  }
}

</mosaic_0001>

<bundles_post_ra>
// kernel: tpu_custom_call.1
= control target key start
LH: loop header
LB: loop body
LE: loop exit
PB: predicated region body
PF: predicated region fallthrough
CT: control target
= control target key end

     0   :  { %15 = vsyncpa [#allocation4], 0  ;;  %s7068_s30 = smov 0   ;;  %s10160_s0 = inlined_call_operand.vmem [shape: f32[128,64], index: 0, kind: input, shape index: {}]   ;;  %s10161_s1 = inlined_call_operand.vmem [shape: f32[128,64], index: 1, kind: input, shape index: {}]   ;;  %s10162_s2 = inlined_call_operand.vmem [shape: f32[1,64], index: 2, kind: input, shape index: {}]   ;;  %s10163_s3 = inlined_call_operand.vmem [shape: bf16[4,64,192], index: 3, kind: input, shape index: {}]   ;;  %s10164_s4 = inlined_call_operand.vmem [shape: bf16[4,64,64], index: 4, kind: input, shape index: {}]   ;;  %s10165_s5 = inlined_call_operand.vmem [shape: bf16[4,64,256], index: 5, kind: input, shape index: {}]   ;;  %s10166_s6 = inlined_call_operand.vmem [shape: bf16[4,256,64], index: 6, kind: input, shape index: {}]   ;;  %s10167_s7 = inlined_call_operand.vmem [shape: f32[4,8,256], index: 7, kind: input, shape index: {}]   ;;  %s10168_s8 = inlined_call_operand.vmem [shape: f32[128,64], index: 8, kind: output, shape index: {0}]   ;;  %s10169_s9 = inlined_call_operand.hbm [shape: f32[1,1], index: 9, kind: output, shape index: {1}]  }
   0x1 LB: > { %s7074_s10 = sadd.s32 4294967295, %s7007_s30   ;;  %p5312_p0 = scmp.ge.s32.totalorder %s7007_s30, 1  ;;  %s7007_s30 = sphi %s7068_s30, %s21_s30  }
   0x2   : > { %p321_p1 = scmp.lt.s32.totalorder %s7007_s30, 5 }
   0x4   : > { %p322_p2 = pnand %p5312_p0, %p321_p1 }
   0x6   : > { %325 = sbr.rel (%p322_p2) target bundleno = 4019 (0xfb3), region = 52 }
   0xb   : > { %p372_p3 = scmp.lt.s32.totalorder %s7074_s10, 3  ;;  %p5323_p4 = scmp.ne.s32.totalorder %s7074_s10, 0 }
   0xd   : > { %s373_s11 = scalar_select %p372_p3, %s7074_s10, 3 }
   0xf   : > { %s5518_s12 = sshll.u32 %s373_s11, 6  ;;  %s5519_s13 = sshll.u32 %s373_s11, 5 }
  0x10   : > { %s7083_s16 = scalar_lea.vmem %s10163_s3, %s5518_s12  ;;  %s7088_s19 = scalar_lea.vmem %s10164_s4, %s5519_s13 }
  0x11   : > { %s7093_s22 = scalar_lea.vmem %s10165_s5, %s5518_s12  ;;  %s5521_s23 = sshll.u32 %s373_s11, 7 }
  0x12   : > { %s7098_s26 = scalar_lea.vmem %s10166_s6, %s5521_s23  ;;  %s5522_s27 = sshll.u32 %s373_s11, 4 }
  0x13   : > { %s7103_s14 = scalar_lea.vmem %s10167_s7, %s5522_s27  ;;  %401 = sbr.rel (%p5323_p4) target bundleno = 33 (0x21), region = 56 }
  0x18   : > { %v402_v0 = vld [vmem:[%s10160_s0] sm:$0xff]  ;;  %vm418_vm0 = vcmask 523264   ;;  %v403_v1 = vld [vmem:[%s10160_s0 + $0x8] sm:$0xff]  ;;  %v404_v2 = vld [vmem:[%s10160_s0 + $0x10] sm:$0xff] }
  0x19   : > { %419 = vst.msk [vmem:[#allocation2] sm:$0xff] %vm418_vm0, %v402_v0  ;;  %420 = vst.msk [vmem:[#allocation2 + $0x8] sm:$0xff] %vm418_vm0, %v403_v1  ;;  %v405_v3 = vld [vmem:[%s10160_s0 + $0x18] sm:$0xff]  ;;  %v406_v4 = vld [vmem:[%s10160_s0 + $0x20] sm:$0xff] }
  0x1a   : > { %421 = vst.msk [vmem:[#allocation2 + $0x10] sm:$0xff] %vm418_vm0, %v404_v2  ;;  %v407_v5 = vld [vmem:[%s10160_s0 + $0x28] sm:$0xff]  ;;  %422 = vst.msk [vmem:[#allocation2 + $0x18] sm:$0xff] %vm418_vm0, %v405_v3  ;;  %v408_v6 = vld [vmem:[%s10160_s0 + $0x30] sm:$0xff] }
  0x1b   : > { %423 = vst.msk [vmem:[#allocation2 + $0x20] sm:$0xff] %vm418_vm0, %v406_v4  ;;  %424 = vst.msk [vmem:[#allocation2 + $0x28] sm:$0xff] %vm418_vm0, %v407_v5  ;;  %v409_v7 = vld [vmem:[%s10160_s0 + $0x38] sm:$0xff]  ;;  %v410_v8 = vld [vmem:[%s10160_s0 + $0x40] sm:$0xff] }
  0x1c   : > { %425 = vst.msk [vmem:[#allocation2 + $0x30] sm:$0xff] %vm418_vm0, %v408_v6  ;;  %426 = vst.msk [vmem:[#allocation2 + $0x38] sm:$0xff] %vm418_vm0, %v409_v7  ;;  %v411_v9 = vld [vmem:[%s10160_s0 + $0x48] sm:$0xff]  ;;  %v412_v10 = vld [vmem:[%s10160_s0 + $0x50] sm:$0xff] }
  0x1d   : > { %427 = vst.msk [vmem:[#allocation2 + $0x40] sm:$0xff] %vm418_vm0, %v410_v8  ;;  %v413_v11 = vld [vmem:[%s10160_s0 + $0x58] sm:$0xff]  ;;  %428 = vst.msk [vmem:[#allocation2 + $0x48] sm:$0xff] %vm418_vm0, %v411_v9  ;;  %v414_v12 = vld [vmem:[%s10160_s0 + $0x60] sm:$0xff] }
  0x1e   : > { %429 = vst.msk [vmem:[#allocation2 + $0x50] sm:$0xff] %vm418_vm0, %v412_v10  ;;  %430 = vst.msk [vmem:[#allocation2 + $0x58] sm:$0xff] %vm418_vm0, %v413_v11  ;;  %v415_v13 = vld [vmem:[%s10160_s0 + $0x68] sm:$0xff]  ;;  %v416_v14 = vld [vmem:[%s10160_s0 + $0x70] sm:$0xff] }
  0x1f   : > { %431 = vst.msk [vmem:[#allocation2 + $0x60] sm:$0xff] %vm418_vm0, %v414_v12  ;;  %432 = vst.msk [vmem:[#allocation2 + $0x68] sm:$0xff] %vm418_vm0, %v415_v13  ;;  %v417_v15 = vld [vmem:[%s10160_s0 + $0x78] sm:$0xff] }
  0x20   : > { %433 = vst.msk [vmem:[#allocation2 + $0x70] sm:$0xff] %vm418_vm0, %v416_v14  ;;  %434 = vst.msk [vmem:[#allocation2 + $0x78] sm:$0xff] %vm418_vm0, %v417_v15 }
  0x21 PF: > { %v6494_v16 = vld [vmem:[%s7083_s16 + $0x34] ss:$8 sps:$4 sm:$0xff]   ;;  %v6496_v17 = vld [vmem:[%s7083_s16 + $0x30] ss:$8 sps:$4 sm:$0xff]   ;;  %v10170_v18 = vmov 0   ;;  %v435_v25 = vld [vmem:[#allocation2] sm:$0xff]  ;;  %v469_v49 = vlaneseq }
  0x22   : > { %574 = vmatprep.mubr.bf16.mxu0 %v10170_v18  ;;  %550 = vmatprep.subr.bf16.mxu0 %v6494_v16  ;;  %v6497_v19 = vld [vmem:[%s7083_s16 + $0x24] ss:$8 sps:$4 sm:$0xff]   ;;  %v6499_v20 = vld [vmem:[%s7083_s16 + $0x20] ss:$8 sps:$4 sm:$0xff]   ;;  %v6500_v21 = vld [vmem:[%s7083_s16 + $0x14] ss:$8 sps:$4 sm:$0xff]  }
  0x23   : > { %551 = vmatpush1.bf16.msra.mxu0 %v6496_v17  ;;  %v6502_v22 = vld [vmem:[%s7083_s16 + $0x10] ss:$8 sps:$4 sm:$0xff]   ;;  %v6503_v23 = vld [vmem:[%s7083_s16 + $0x4] ss:$8 sps:$4 sm:$0xff]   ;;  %v6505_v24 = vld [vmem:[%s7083_s16] ss:$8 sps:$4 sm:$0xff]  }
  0x24   : > { %552 = vmatprep.subr.bf16.mxu0 %v6497_v19  ;;  %v436_v26 = vld [vmem:[#allocation2 + $0x8] sm:$0xff]  ;;  %vm517_vm1 = vcmask 523264   ;;  %v437_v28 = vld [vmem:[#allocation2 + $0x10] sm:$0xff]  ;;  %v438_v29 = vld [vmem:[#allocation2 + $0x18] sm:$0xff]  ;;  %v7194_v50 = vshrl.u32 %v469_v49, 7  ;;  %vm719_vm2 = vcmask 130048  }
  0x25   : > { %v451_v27 = vpack.c.bf16 %v436_v26, %v435_v25  ;;  %v452_v30 = vpack.c.bf16 %v438_v29, %v437_v28  ;;  %v439_v31 = vld [vmem:[#allocation2 + $0x20] sm:$0xff]  ;;  %v440_v32 = vld [vmem:[#allocation2 + $0x28] sm:$0xff]  ;;  %v441_v34 = vld [vmem:[#allocation2 + $0x30] sm:$0xff]  ;;  %s7010_s16 = smov 64   ;;  %s7011_s18 = smov 48   ;;  %vm2752_vm3 = vcmask 261120  }
  0x26   : > { %v453_v33 = vpack.c.bf16 %v440_v32, %v439_v31  ;;  %v442_v35 = vld [vmem:[#allocation2 + $0x38] sm:$0xff]  ;;  %v443_v37 = vld [vmem:[#allocation2 + $0x40] sm:$0xff]  ;;  %v444_v38 = vld [vmem:[#allocation2 + $0x48] sm:$0xff]  ;;  %10201 = vst [vmem:[#allocation6_spill] sm:$0xff] %v7194_v50  ;;  %v7197_v51 = vsub.s32 0, %v7194_v50  ;;  %s7012_s20 = smov 112  }
  0x27   : > { %553 = vmatpush1.bf16.msra.mxu0 %v6499_v20  ;;  %v454_v36 = vpack.c.bf16 %v442_v35, %v441_v34  ;;  %v455_v39 = vpack.c.bf16 %v444_v38, %v443_v37  ;;  %v445_v40 = vld [vmem:[#allocation2 + $0x50] sm:$0xff]  ;;  %v446_v41 = vld [vmem:[#allocation2 + $0x58] sm:$0xff]  ;;  %v447_v43 = vld [vmem:[#allocation2 + $0x60] sm:$0xff]  ;;  %s7013_s11 = smov 32   ;;  %s7014_s21 = smov 96   ;;  %vm2769_vm4 = vcmask 392192  }
  0x28   : > { %554 = vmatprep.subr.bf16.mxu0 %v6500_v21  ;;  %v456_v42 = vpack.c.bf16 %v446_v41, %v445_v40  ;;  %v448_v44 = vld [vmem:[#allocation2 + $0x68] sm:$0xff]  ;;  %v449_v46 = vld [vmem:[#allocation2 + $0x70] sm:$0xff]  ;;  %v450_v47 = vld [vmem:[#allocation2 + $0x78] sm:$0xff]  ;;  %10202 = vst [vmem:[#allocation7_spill] sm:$0xff] %v7197_v51  ;;  %s7015_s23 = smov 16   ;;  %s7016_s24 = smov 80  }
  0x29   : > { %v457_v45 = vpack.c.bf16 %v448_v44, %v447_v43  ;;  %v458_v48 = vpack.c.bf16 %v450_v47, %v449_v46  ;;  %v459_v52 = vld [vmem:[%s7103_s14] sm:$0xff]  ;;  %v460_v40 = vld [vmem:[%s7103_s14 + $0x8] sm:$0xff]  ;;  %p5416_p5 = scmp.ne.s32.totalorder %s7074_s10, 3 }
  0x2a   : > { %v7201_v53 = vrot.slane %v459_v52, %v7197_v51  ;;  %v7277_v46 = vrot.slane %v460_v40, %v7197_v51 }
  0x2b   : > { %555 = vmatpush1.bf16.msra.mxu0 %v6502_v22 }
  0x2c   : > { %556 = vmatprep.subr.bf16.mxu0 %v6503_v23 }
  0x2f   : > { %557 = vmatpush1.bf16.msra.mxu0 %v6505_v24 }
  0x32   : > { %5332 = vmatmul.mubr.msk.bf16.vlgmr.msra.gmra.mxu0 %vm517_vm1, %v451_v27 }
  0x33   : > { %584 = vmatprep.mubr.bf16.mxu0 %v10170_v18 }
  0x3a   : > { %5333 = vmatmul.mubr.msk.bf16.gmra.mxu0 %vm517_vm1, %v452_v30 }
  0x3b   : > { %594 = vmatprep.mubr.bf16.mxu0 %v10170_v18 }
  0x42   : > { %5334 = vmatmul.mubr.msk.bf16.gmra.mxu0 %vm517_vm1, %v453_v33 }
  0x43   : > { %604 = vmatprep.mubr.bf16.mxu0 %v10170_v18 }
  0x4a   : > { %5335 = vmatmul.mubr.msk.bf16.gmra.mxu0 %vm517_vm1, %v454_v36 }
  0x4b   : > { %614 = vmatprep.mubr.bf16.mxu0 %v10170_v18 }
  0x52   : > { %5336 = vmatmul.mubr.msk.bf16.gmra.mxu0 %vm517_vm1, %v455_v39 }
  0x53   : > { %624 = vmatprep.mubr.bf16.mxu0 %v10170_v18 }
  0x5a   : > { %5337 = vmatmul.mubr.msk.bf16.gmra.mxu0 %vm517_vm1, %v456_v42 }
  0x5b   : > { %634 = vmatprep.mubr.bf16.mxu0 %v10170_v18 }
  0x62   : > { %5338 = vmatmul.mubr.msk.bf16.gmra.mxu0 %vm517_vm1, %v457_v45 }
  0x63   : > { %644 = vmatprep.mubr.bf16.mxu0 %v10170_v18 }
  0x6a   : > { %5339 = vmatmul.mubr.msk.bf16.gmra.mxu0 %vm517_vm1, %v458_v48 }
  0xf2   : > { %v576_v54 = vpop.f32.mrf.mxu0 }
  0xf3   : > { %v577_v56 = vadd.f32 %v576_v54, %v7201_v53 }
  0xf4   : > { %v7203_v55 = vpop.f32.mrf.mxu0 }
  0xf5   : > { %v655_v60 = vmul.f32 0.25, %v577_v56 }
  0xf6   : > { %v580_v57 = vpop.f32.mrf.mxu0 }
  0xf7   : > { %v581_v58 = vadd.f32 %v580_v57, %v7201_v53 }
  0xf8   : > { %v7207_v59 = vpop.f32.mrf.mxu0 }
  0xf9   : > { %v656_v61 = vmul.f32 0.25, %v581_v58  ;;  %v7271_v43 = vpack.c.bf16 %v581_v58, %v577_v56 }
  0xfa   : > { %v586_v62 = vpop.f32.mrf.mxu0 }
  0xfb   : > { %v7209_v63 = vpack.c.bf16 %v656_v61, %v655_v60  ;;  %v587_v0 = vadd.f32 %v586_v62, %v7201_v53 }
  0xfc   : > { %v7212_v1 = vpop.f32.mrf.mxu0 }
  0xfd   : > { %5839 = vmatprep.mubr.msk.bf16.mxu1 %vm719_vm2, %v7209_v63  ;;  %v657_v5 = vmul.f32 0.25, %v587_v0 }
  0xfe   : > { %v590_v2 = vpop.f32.mrf.mxu0 }
  0xff   : > { %v591_v3 = vadd.f32 %v590_v2, %v7201_v53 }
 0x100   : > { %v7217_v4 = vpop.f32.mrf.mxu0 }
 0x101   : > { %v658_v6 = vmul.f32 0.25, %v591_v3  ;;  %v7219_v7 = vpack.c.bf16 %v591_v3, %v587_v0 }
 0x102   : > { %v596_v8 = vpop.f32.mrf.mxu0 }
 0x103   : > { %v7221_v9 = vpack.c.bf16 %v658_v6, %v657_v5  ;;  %v7257_v36 = vadd.f32 %v596_v8, %v7201_v53 }
 0x104   : > { %v7223_v10 = vpop.f32.mrf.mxu0 }
 0x106   : > { %v600_v11 = vpop.f32.mrf.mxu0 }
 0x107   : > { %v7250_v33 = vadd.f32 %v600_v11, %v7201_v53 }
 0x108   : > { %v7225_v12 = vpop.f32.mrf.mxu0 }
 0x109   : > { %v7263_v38 = vpack.c.bf16 %v7250_v33, %v7257_v36 }
 0x10a   : > { %v606_v13 = vpop.f32.mrf.mxu0 }
 0x10b   : > { %10204 = vst [vmem:[#allocation9_spill] sm:$0xff] %v7263_v38  ;;  %v607_v3 = vadd.f32 %v606_v13, %v7201_v53 }
 0x10c   : > { %v7227_v14 = vpop.f32.mrf.mxu0 }
 0x10e   : > { %v610_v15 = vpop.f32.mrf.mxu0 }
 0x10f   : > { %v611_v62 = vadd.f32 %v610_v15, %v7201_v53 }
 0x110   : > { %v7229_v16 = vpop.f32.mrf.mxu0 }
 0x111   : > { %v7315_v6 = vpack.c.bf16 %v611_v62, %v607_v3  ;;  %v613_v13 = vadd.f32 %v7229_v16, %v7277_v46  ;;  %v662_v16 = vmul.f32 0.25, %v611_v62 }
 0x112   : > { %v616_v17 = vpop.f32.mrf.mxu0 }
 0x113   : > { %v7245_v31 = vadd.f32 %v616_v17, %v7201_v53  ;;  %10205 = vst [vmem:[#allocation10_spill] sm:$0xff] %v7315_v6  ;;  %v609_v17 = vadd.f32 %v7227_v14, %v7277_v46  ;;  %v661_v14 = vmul.f32 0.25, %v607_v3 }
 0x114   : > { %v618_v19 = vpop.f32.mrf.mxu0 }
 0x116   : > { %v620_v20 = vpop.f32.mrf.mxu0 }
 0x117   : > { %v7238_v28 = vadd.f32 %v620_v20, %v7201_v53  ;;  %v7341_v20 = vpack.c.bf16 %v613_v13, %v609_v17 }
 0x118   : > { %v622_v21 = vpop.f32.mrf.mxu0 }
 0x119   : > { %v7254_v34 = vpack.c.bf16 %v7238_v28, %v7245_v31  ;;  %v623_v8 = vadd.f32 %v622_v21, %v7277_v46  ;;  %v599_v21 = vadd.f32 %v7223_v10, %v7277_v46  ;;  %v589_v10 = vadd.f32 %v7212_v1, %v7277_v46 }
 0x11a   : > { %v626_v22 = vpop.f32.mrf.mxu0  ;;  %v579_v1 = vadd.f32 %v7203_v55, %v7277_v46  ;;  %v660_v55 = vmul.f32 0.25, %v7250_v33  ;;  %v664_v40 = vmul.f32 0.25, %v7238_v28 }
 0x11b   : > { %v7232_v25 = vadd.f32 %v626_v22, %v7201_v53  ;;  %10203 = vst [vmem:[#allocation8_spill] sm:$0xff] %v7254_v34 }
 0x11c   : > { %v628_v23 = vpop.f32.mrf.mxu0 }
 0x11d   : > { %v629_v5 = vadd.f32 %v628_v23, %v7277_v46  ;;  %v7355_v23 = vpack.c.bf16 %v662_v16, %v661_v14 }
 0x11e   : > { %v630_v24 = vpop.f32.mrf.mxu0 }
 0x11f   : > { %v7235_v26 = vadd.f32 %v630_v24, %v7201_v53 }
 0x120   : > { %v632_v27 = vpop.f32.mrf.mxu0 }
 0x121   : > { %v7242_v29 = vpack.c.bf16 %v7235_v26, %v7232_v25  ;;  %v633_v0 = vadd.f32 %v632_v27, %v7277_v46  ;;  %v666_v24 = vmul.f32 0.25, %v7235_v26  ;;  %v665_v27 = vmul.f32 0.25, %v7232_v25 }
 0x122   : > { %v636_v30 = vpop.f32.mrf.mxu0 }
 0x123   : > { %713 = vrot.lane.b32.xlu1 %v7242_v29, %s7010_s16  ;;  %v7274_v44 = vadd.f32 %v636_v30, %v7201_v53  ;;  %v7318_v11 = vpack.c.bf16 %v633_v0, %v629_v5  ;;  %v7371_v26 = vpack.c.bf16 %v666_v24, %v665_v27 }
 0x124   : > { %v638_v32 = vpop.f32.mrf.mxu0 }
 0x125   : > { %v639_v60 = vadd.f32 %v638_v32, %v7277_v46 }
 0x126   : > { %v640_v35 = vpop.f32.mrf.mxu0 }
 0x127   : > { %711 = vrot.lane.b32.xlu1 %v7254_v34, %s7010_s16  ;;  %v7269_v41 = vadd.f32 %v640_v35, %v7201_v53 }
 0x128   : > { %v642_v37 = vpop.f32.mrf.mxu0 }
 0x129   : > { %v7287_v49 = vpack.c.bf16 %v7269_v41, %v7274_v44  ;;  %v643_v54 = vadd.f32 %v642_v37, %v7277_v46  ;;  %v659_v37 = vmul.f32 0.25, %v7257_v36  ;;  %v668_v36 = vmul.f32 0.25, %v7269_v41 }
 0x12a   : > { %v646_v39 = vpop.f32.mrf.mxu0 }
 0x12b   : > { %707 = vrot.lane.b32.xlu1 %v7263_v38, %s7010_s16  ;;  %v7280_v47 = vadd.f32 %v646_v39, %v7201_v53  ;;  %v7304_v2 = vpack.c.bf16 %v643_v54, %v639_v60  ;;  %v7399_v39 = vpack.c.bf16 %v660_v55, %v659_v37 }
 0x12c   : > { %v648_v42 = vpop.f32.mrf.mxu0 }
 0x12d   : > { %v649_v56 = vadd.f32 %v648_v42, %v7277_v46  ;;  %v669_v25 = vmul.f32 0.25, %v7280_v47  ;;  %v663_v42 = vmul.f32 0.25, %v7245_v31 }
 0x12e   : > { %v650_v45 = vpop.f32.mrf.mxu0 }
 0x12f   : > { %v651_v48 = vadd.f32 %v650_v45, %v7201_v53  ;;  %703 = vrot.lane.b32.xlu1 %v7271_v43, %s7010_s16  ;;  %v619_v53 = vadd.f32 %v618_v19, %v7277_v46  ;;  %v603_v19 = vadd.f32 %v7225_v12, %v7277_v46  ;;  %v593_v12 = vadd.f32 %v7217_v4, %v7277_v46 }
 0x130   : > { %v652_v52 = vpop.f32.mrf.mxu0  ;;  %v583_v4 = vadd.f32 %v7207_v59, %v7277_v46  ;;  %v7407_v33 = vpack.c.bf16 %v664_v40, %v663_v42  ;;  %v667_v45 = vmul.f32 0.25, %v7274_v44 }
 0x131   : > { %v7292_v57 = vpack.c.bf16 %v651_v48, %v7280_v47  ;;  %v653_v58 = vadd.f32 %v652_v52, %v7277_v46  ;;  %v7329_v15 = vpack.c.bf16 %v623_v8, %v619_v53  ;;  %v7353_v22 = vpack.c.bf16 %v603_v19, %v599_v21 }
 0x132   : > { %v7369_v30 = vpack.c.bf16 %v593_v12, %v589_v10  ;;  %v670_v32 = vmul.f32 0.25, %v651_v48  ;;  %v7382_v59 = vpack.c.bf16 %v583_v4, %v579_v1  ;;  %v7415_v28 = vpack.c.bf16 %v668_v36, %v667_v45 }
 0x133   : > { %v7296_v61 = vpack.c.bf16 %v653_v58, %v649_v56  ;;  %717 = vrot.lane.b32.xlu0 %v7292_v57, %s7010_s16  ;;  %1166 = vrot.lane.b32.xlu1 %v7287_v49, %s7011_s18 }
 0x134   : > { %v7384_v35 = vpack.c.bf16 %v670_v32, %v669_v25 }
 0x135   : > { %5855 = vmatprep.subr.bf16.mxu0 %v7296_v61 }
 0x136   : > { %5856 = vmatpush3.bf16.msra.mxu0 %v7296_v61 }
 0x137   : > { %5857 = vmatprep.subr.bf16.mxu0 %v7304_v2  ;;  %715 = vrot.lane.b32.xlu0 %v7287_v49, %s7010_s16 }
 0x138   : > { %1162 = vrot.lane.b32.xlu1 %v7254_v34, %s7011_s18 }
 0x13a   : > { %5858 = vmatpush3.bf16.msra.mxu0 %v7304_v2 }
 0x13b   : > { %5859 = vmatprep.subr.bf16.mxu0 %v7318_v11  ;;  %709 = vrot.lane.b32.xlu0 %v7315_v6, %s7010_s16 }
 0x13c   : > { %1158 = vrot.lane.b32.xlu1 %v7263_v38, %s7011_s18 }
 0x13e   : > { %5860 = vmatpush3.bf16.msra.mxu0 %v7318_v11 }
 0x13f   : > { %5861 = vmatprep.subr.bf16.mxu0 %v7329_v15  ;;  %705 = vrot.lane.b32.xlu0 %v7219_v7, %s7010_s16 }
 0x140   : > { %1154 = vrot.lane.b32.xlu1 %v7271_v43, %s7011_s18 }
 0x142   : > { %5862 = vmatpush3.bf16.msra.mxu0 %v7329_v15 }
 0x143   : > { %5863 = vmatprep.subr.bf16.mxu0 %v7341_v20  ;;  %1168 = vrot.lane.b32.xlu0 %v7292_v57, %s7011_s18 }
 0x144   : > { %1140 = vrot.lane.b32.xlu1 %v7221_v9, %s7012_s20 }
 0x146   : > { %5864 = vmatpush3.bf16.msra.mxu0 %v7341_v20 }
 0x147   : > { %5865 = vmatprep.subr.bf16.mxu0 %v7353_v22  ;;  %1164 = vrot.lane.b32.xlu0 %v7242_v29, %s7011_s18 }
 0x148   : > { %1144 = vrot.lane.b32.xlu1 %v7355_v23, %s7012_s20 }
 0x14a   : > { %5866 = vmatpush3.bf16.msra.mxu0 %v7353_v22 }
 0x14b   : > { %5867 = vmatprep.subr.bf16.mxu0 %v7369_v30  ;;  %1160 = vrot.lane.b32.xlu0 %v7315_v6, %s7011_s18 }
 0x14c   : > { %1148 = vrot.lane.b32.xlu1 %v7371_v26, %s7012_s20 }
 0x14e   : > { %5868 = vmatpush3.bf16.msra.mxu0 %v7369_v30 }
 0x14f   : > { %1156 = vrot.lane.b32.xlu0 %v7219_v7, %s7011_s18  ;;  %5869 = vmatprep.subr.bf16.mxu0 %v7382_v59 }
 0x150   : > { %1152 = vrot.lane.b32.xlu1 %v7384_v35, %s7012_s20 }
 0x152   : > { %5870 = vmatpush3.bf16.msra.mxu0 %v7382_v59 }
 0x153   : > { %1138 = vrot.lane.b32.xlu0 %v7209_v63, %s7012_s20 }
 0x154   : > { %1453 = vrot.lane.b32.xlu1 %v7318_v11, %s7012_s20 }
 0x157   : > { %1142 = vrot.lane.b32.xlu0 %v7399_v39, %s7012_s20 }
 0x158   : > { %1451 = vrot.lane.b32.xlu1 %v7329_v15, %s7012_s20 }
 0x15b   : > { %1146 = vrot.lane.b32.xlu0 %v7407_v33, %s7012_s20 }
 0x15c   : > { %1449 = vrot.lane.b32.xlu1 %v7341_v20, %s7012_s20 }
 0x15f   : > { %1150 = vrot.lane.b32.xlu0 %v7415_v28, %s7012_s20 }
 0x160   : > { %1447 = vrot.lane.b32.xlu1 %v7353_v22, %s7012_s20 }
 0x163   : > { %1455 = vrot.lane.b32.xlu0 %v7304_v2, %s7012_s20 }
 0x164   : > { %1443 = vrot.lane.b32.xlu1 %v7382_v59, %s7012_s20 }
 0x167   : > { %1445 = vrot.lane.b32.xlu0 %v7369_v30, %s7012_s20 }
 0x168   : > { %1638 = vrot.lane.b32.xlu1 %v7242_v29, %s7013_s11 }
 0x16b   : > { %1642 = vrot.lane.b32.xlu0 %v7292_v57, %s7013_s11 }
 0x16c   : > { %1457 = vrot.lane.b32.xlu1 %v7296_v61, %s7012_s20 }
 0x16f   : > { %1640 = vrot.lane.b32.xlu0 %v7287_v49, %s7013_s11 }
 0x173   : > { %1636 = vrot.lane.b32.xlu0 %v7254_v34, %s7013_s11 }
 0x195   : > { %v714_v31 = vpop.permute.xlu1 %713 }
 0x196   : > { %v760_v3 = vsel %vm719_vm2, %v714_v31, 0 }
 0x199   : > { %v712_v41 = vpop.permute.xlu1 %711 }
 0x19a   : > { %v757_v53 = vsel %vm719_vm2, %v712_v41, 0 }
 0x19d   : > { %v708_v44 = vpop.permute.xlu1 %707 }
 0x19e   : > { %v751_v12 = vsel %vm719_vm2, %v708_v44, 0 }
 0x1a1   : > { %v704_v46 = vpop.permute.xlu1 %703 }
 0x1a2   : > { %v745_v25 = vsel %vm719_vm2, %v704_v46, 0 }
 0x1a5   : > { %v718_v47 = vpop.permute.xlu0 %717  ;;  %v1167_v48 = vpop.permute.xlu1 %1166 }
 0x1a6   : > { %6319 = vmatprep.subr.msk.bf16.mxu1 %vm719_vm2, %v718_v47  ;;  %v766_v52 = vsel %vm719_vm2, %v718_v47, 0  ;;  %v1213_v42 = vsel %vm719_vm2, %v1167_v48, 0 }
 0x1a7   : > { %5824 = vmatpush3.bf16.xpose.msra.mxu1 %v766_v52 }
 0x1a9   : > { %v716_v54 = vpop.permute.xlu0 %715 }
 0x1aa   : > { %v1163_v56 = vpop.permute.xlu1 %1162  ;;  %6320 = vmatprep.subr.msk.bf16.mxu1 %vm719_vm2, %v716_v54  ;;  %v763_v60 = vsel %vm719_vm2, %v716_v54, 0 }
 0x1ad   : > { %v710_v13 = vpop.permute.xlu0 %709 }
 0x1ae   : > { %v7440_v58 = vpop.permute.xlu1 %1158  ;;  %v754_v16 = vsel %vm719_vm2, %v710_v13, 0 }
 0x1af   : > { %5826 = vmatpush3.bf16.xpose.msra.mxu1 %v763_v60  ;;  %v1201_v47 = vsel %vm719_vm2, %v7440_v58, 0 }
 0x1b0   : > { %6321 = vmatprep.subr.msk.bf16.mxu1 %vm719_vm2, %v714_v31 }
 0x1b1   : > { %v706_v24 = vpop.permute.xlu0 %705 }
 0x1b2   : > { %v7444_v62 = vpop.permute.xlu1 %1154  ;;  %v748_v4 = vsel %vm719_vm2, %v706_v24, 0 }
 0x1b3   : > { %v1195_v52 = vsel %vm719_vm2, %v7444_v62, 0 }
 0x1b5   : > { %v1169_v55 = vpop.permute.xlu0 %1168 }
 0x1b6   : > { %v7446_v0 = vpop.permute.xlu1 %1140  ;;  %v1216_v37 = vsel %vm719_vm2, %v1169_v55, 0 }
 0x1b7   : > { %5828 = vmatpush3.bf16.xpose.msra.mxu1 %v760_v3 }
 0x1b8   : > { %6322 = vmatprep.subr.msk.bf16.mxu1 %vm719_vm2, %v712_v41 }
 0x1b9   : > { %v1165_v40 = vpop.permute.xlu0 %1164 }
 0x1ba   : > { %v7450_v5 = vpop.permute.xlu1 %1144  ;;  %v1210_v45 = vsel %vm719_vm2, %v1165_v40, 0 }
 0x1bd   : > { %v1161_v36 = vpop.permute.xlu0 %1160 }
 0x1be   : > { %v7452_v8 = vpop.permute.xlu1 %1148 }
 0x1bf   : > { %5830 = vmatpush3.bf16.xpose.msra.mxu1 %v757_v53 }
 0x1c0   : > { %6323 = vmatprep.subr.msk.bf16.mxu1 %vm719_vm2, %v710_v13 }
 0x1c1   : > { %v1157_v31 = vpop.permute.xlu0 %1156 }
 0x1c2   : > { %v7456_v17 = vpop.permute.xlu1 %1152 }
 0x1c5   : > { %v1139_v41 = vpop.permute.xlu0 %1138 }
 0x1c6   : > { %v7458_v19 = vpop.permute.xlu1 %1453 }
 0x1c7   : > { %5832 = vmatpush3.bf16.xpose.msra.mxu1 %v754_v16 }
 0x1c8   : > { %6324 = vmatprep.subr.msk.bf16.mxu1 %vm719_vm2, %v708_v44  ;;  %v1207_v44 = vsel %vm719_vm2, %v1163_v56, 0 }
 0x1c9   : > { %v1143_v54 = vpop.permute.xlu0 %1142 }
 0x1ca   : > { %v7462_v21 = vpop.permute.xlu1 %1451 }
 0x1ce   : > { %v7464_v14 = vpop.permute.xlu1 %1449 }
 0x1cf   : > { %5834 = vmatpush3.bf16.xpose.msra.mxu1 %v751_v12 }
 0x1d0   : > { %6325 = vmatprep.subr.msk.bf16.mxu1 %vm719_vm2, %v706_v24 }
 0x1d2   : > { %v7468_v10 = vpop.permute.xlu1 %1447 }
 0x1d6   : > { %v7470_v27 = vpop.permute.xlu1 %1443 }
 0x1d7   : > { %5836 = vmatpush3.bf16.xpose.msra.mxu1 %v748_v4 }
 0x1d8   : > { %6326 = vmatprep.subr.msk.bf16.mxu1 %vm719_vm2, %v704_v46  ;;  %v1204_v46 = vsel %vm719_vm2, %v1161_v36, 0 }
 0x1da   : > { %v7474_v32 = vpop.permute.xlu1 %1638 }
 0x1db   : > { %10206 = vst [vmem:[#allocation11_spill] sm:$0xff] %v7474_v32 }
 0x1de   : > { %v7476_v1 = vpop.permute.xlu1 %1457 }
 0x1df   : > { %5919 = vmatprep.subr.bf16.mxu0 %v7476_v1  ;;  %5838 = vmatpush3.bf16.xpose.msra.mxu1 %v745_v25 }
 0x1e0   : > { %6327 = vmatprep.subr.msk.bf16.mxu1 %vm719_vm2, %v1169_v55 }
 0x1e6   : > { %5840 = vmatmul.mubr.msk.bf16.vlgmr.msra.gmra.mxu1 %vm719_vm2, %v7221_v9 }
 0x1e7   : > { %5843 = vmatprep.mubr.msk.bf16.mxu1 %vm719_vm2, %v7399_v39  ;;  %5888 = vmatpush3.bf16.xpose.msra.mxu1 %v1216_v37 }
 0x1e8   : > { %6328 = vmatprep.subr.msk.bf16.mxu1 %vm719_vm2, %v1167_v48  ;;  %v1198_v48 = vsel %vm719_vm2, %v1157_v31, 0 }
 0x1ee   : > { %5844 = vmatmul.mubr.msk.bf16.gmra.mxu1 %vm719_vm2, %v7355_v23 }
 0x1ef   : > { %5847 = vmatprep.mubr.msk.bf16.mxu1 %vm719_vm2, %v7407_v33  ;;  %5890 = vmatpush3.bf16.xpose.msra.mxu1 %v1213_v42 }
 0x1f0   : > { %6329 = vmatprep.subr.msk.bf16.mxu1 %vm719_vm2, %v1165_v40 }
 0x1f6   : > { %5848 = vmatmul.mubr.msk.bf16.gmra.mxu1 %vm719_vm2, %v7371_v26 }
 0x1f7   : > { %5851 = vmatprep.mubr.msk.bf16.mxu1 %vm719_vm2, %v7415_v28  ;;  %5892 = vmatpush3.bf16.xpose.msra.mxu1 %v1210_v45 }
 0x1f8   : > { %6330 = vmatprep.subr.msk.bf16.mxu1 %vm719_vm2, %v1163_v56  ;;  %v1147_v56 = vpop.permute.xlu0 %1146 }
 0x1fe   : > { %5852 = vmatmul.mubr.msk.bf16.gmra.mxu1 %vm719_vm2, %v7384_v35 }
 0x1ff   : > { %5894 = vmatpush3.bf16.xpose.msra.mxu1 %v1207_v44  ;;  %5903 = vmatprep.mubr.msk.bf16.mxu1 %vm719_vm2, %v1139_v41 }
 0x200   : > { %6331 = vmatprep.subr.msk.bf16.mxu1 %vm719_vm2, %v1161_v36 }
 0x207   : > { %5896 = vmatpush3.bf16.xpose.msra.mxu1 %v1204_v46 }
 0x208   : > { %6332 = vmatprep.subr.msk.bf16.mxu1 %vm719_vm2, %v7440_v58  ;;  %v1151_v58 = vpop.permute.xlu0 %1150 }
 0x20f   : > { %5898 = vmatpush3.bf16.xpose.msra.mxu1 %v1201_v47 }
 0x210   : > { %6333 = vmatprep.subr.msk.bf16.mxu1 %vm719_vm2, %v1157_v31 }
 0x217   : > { %5900 = vmatpush3.bf16.xpose.msra.mxu1 %v1198_v48 }
 0x218   : > { %6334 = vmatprep.subr.msk.bf16.mxu1 %vm719_vm2, %v7444_v62 }
 0x21f   : > { %5902 = vmatpush3.bf16.xpose.msra.mxu1 %v1195_v52 }
 0x226   : > { %5904 = vmatmul.mubr.msk.bf16.vlgmr.msra.gmra.mxu1 %vm719_vm2, %v7446_v0 }
 0x227   : > { %5907 = vmatprep.mubr.msk.bf16.mxu1 %vm719_vm2, %v1143_v54 }
 0x22e   : > { %5908 = vmatmul.mubr.msk.bf16.gmra.mxu1 %vm719_vm2, %v7450_v5 }
 0x22f   : > { %5911 = vmatprep.mubr.msk.bf16.mxu1 %vm719_vm2, %v1147_v56  ;;  %v7612_v56 = vpop.permute.xlu0 %1455 }
 0x236   : > { %5912 = vmatmul.mubr.msk.bf16.gmra.mxu1 %vm719_vm2, %v7452_v8 }
 0x237   : > { %5915 = vmatprep.mubr.msk.bf16.mxu1 %vm719_vm2, %v1151_v58  ;;  %v7616_v58 = vpop.permute.xlu0 %1445 }
 0x23b   : > { %v7618_v18 = vpop.permute.xlu0 %1642 }
 0x23e   : > { %5916 = vmatmul.mubr.msk.bf16.gmra.mxu1 %vm719_vm2, %v7456_v17 }
 0x23f   : > { %v7620_v51 = vpop.permute.xlu0 %1640 }
 0x240   : > { %10215 = vst [vmem:[#allocation20_spill] sm:$0xff] %v7620_v51 }
 0x243   : > { %v7624_v32 = vpop.permute.xlu0 %1636 }
 0x244   : > { %10217 = vst [vmem:[#allocation22_spill] sm:$0xff] %v7624_v32 }
 0x2a6   : > { %v7526_v60 = vpop.f32.mrf.mxu1 }
 0x2a7   : > { %869 = vmax.xlane.f32.xlu0 %v7526_v60 }
 0x2a8   : > { %v7529_v62 = vpop.f32.mrf.mxu1 }
 0x2aa   : > { %v7531_v0 = vpop.f32.mrf.mxu1 }
 0x2ab   : > { %865 = vmax.xlane.f32.xlu0 %v7529_v62 }
 0x2ac   : > { %v7534_v3 = vpop.f32.mrf.mxu1 }
 0x2ad   : > { %867 = vmax.xlane.f32.xlu1 %v7534_v3 }
 0x2ae   : > { %v7537_v5 = vpop.f32.mrf.mxu1 }
 0x2af   : > { %871 = vmax.xlane.f32.xlu0 %v7531_v0 }
 0x2b0   : > { %v7540_v8 = vpop.f32.mrf.mxu1 }
 0x2b1   : > { %877 = vmax.xlane.f32.xlu1 %v7537_v5 }
 0x2b2   : > { %v7543_v53 = vpop.f32.mrf.mxu1 }
 0x2b3   : > { %879 = vmax.xlane.f32.xlu0 %v7543_v53 }
 0x2b4   : > { %v7546_v13 = vpop.f32.mrf.mxu1 }
 0x2b5   : > { %873 = vmax.xlane.f32.xlu1 %v7540_v8 }
 0x2b6   : > { %v7549_v17 = vpop.f32.mrf.mxu1 }
 0x2b7   : > { %875 = vmax.xlane.f32.xlu0 %v7546_v13 }
 0x2b8   : > { %v7552_v16 = vpop.f32.mrf.mxu1 }
 0x2b9   : > { %885 = vmax.xlane.f32.xlu1 %v7549_v17 }
 0x2ba   : > { %v7555_v12 = vpop.f32.mrf.mxu1 }
 0x2bb   : > { %887 = vmax.xlane.f32.xlu0 %v7555_v12 }
 0x2bc   : > { %v7558_v24 = vpop.f32.mrf.mxu1 }
 0x2bd   : > { %881 = vmax.xlane.f32.xlu1 %v7552_v16 }
 0x2be   : > { %v7561_v4 = vpop.f32.mrf.mxu1 }
 0x2bf   : > { %883 = vmax.xlane.f32.xlu0 %v7558_v24 }
 0x2c0   : > { %v7564_v25 = vpop.f32.mrf.mxu1 }
 0x2c1   : > { %893 = vmax.xlane.f32.xlu1 %v7561_v4 }
 0x2c2   : > { %v7567_v55 = vpop.f32.mrf.mxu1 }
 0x2c3   : > { %895 = vmax.xlane.f32.xlu0 %v7567_v55 }
 0x2c4   : > { %v7571_v37 = vpop.f32.mrf.mxu1 }
 0x2c5   : > { %889 = vmax.xlane.f32.xlu1 %v7564_v25 }
 0x2c7   : > { %891 = vmax.xlane.f32.xlu0 %v7571_v37 }
 0x2e6   : > { %v7574_v40 = vpop.f32.mrf.mxu1 }
 0x2e7   : > { %1319 = vmax.xlane.f32.xlu0 %v7574_v40 }
 0x2e8   : > { %v7577_v42 = vpop.f32.mrf.mxu1 }
 0x2e9   : > { %1315 = vmax.xlane.f32.xlu1 %v7577_v42 }
 0x2ea   : > { %v7580_v36 = vpop.f32.mrf.mxu1 }
 0x2eb   : > { %1321 = vmax.xlane.f32.xlu0 %v7580_v36 }
 0x2ec   : > { %v7583_v45 = vpop.f32.mrf.mxu1 }
 0x2ee   : > { %v7585_v31 = vpop.f32.mrf.mxu1 }
 0x2ef   : > { %10207 = vst [vmem:[#allocation12_spill] sm:$0xff] %v7585_v31  ;;  %1317 = vmax.xlane.f32.xlu0 %v7583_v45 }
 0x2f0   : > { %v7588_v41 = vpop.f32.mrf.mxu1 }
 0x2f1   : > { %10208 = vst [vmem:[#allocation13_spill] sm:$0xff] %v7588_v41  ;;  %1323 = vmax.xlane.f32.xlu1 %v7588_v41 }
 0x2f2   : > { %v7591_v44 = vpop.f32.mrf.mxu1 }
 0x2f3   : > { %10209 = vst [vmem:[#allocation14_spill] sm:$0xff] %v7591_v44  ;;  %1327 = vmax.xlane.f32.xlu0 %v7585_v31 }
 0x2f4   : > { %v7594_v46 = vpop.f32.mrf.mxu1 }
 0x2f5   : > { %10210 = vst [vmem:[#allocation15_spill] sm:$0xff] %v7594_v46  ;;  %1329 = vmax.xlane.f32.xlu1 %v7591_v44 }
 0x2f6   : > { %v7598_v47 = vpop.f32.mrf.mxu1 }
 0x2f7   : > { %1325 = vmax.xlane.f32.xlu0 %v7594_v46  ;;  %10211 = vst [vmem:[#allocation16_spill] sm:$0xff] %v7598_v47 }
 0x2f8   : > { %v7601_v48 = vpop.f32.mrf.mxu1 }
 0x2f9   : > { %1335 = vmax.xlane.f32.xlu1 %v7598_v47  ;;  %10212 = vst [vmem:[#allocation17_spill] sm:$0xff] %v7601_v48 }
 0x2fa   : > { %v7604_v52 = vpop.f32.mrf.mxu1 }
 0x2fb   : > { %10213 = vst [vmem:[#allocation18_spill] sm:$0xff] %v7604_v52 }
 0x2fc   : > { %v7607_v54 = vpop.f32.mrf.mxu1 }
 0x2fd   : > { %1331 = vmax.xlane.f32.xlu1 %v7601_v48  ;;  %10214 = vst [vmem:[#allocation19_spill] sm:$0xff] %v7607_v54 }
 0x2fe   : > { %v7622_v50 = vpop.f32.mrf.mxu1 }
 0x2ff   : > { %10216 = vst [vmem:[#allocation21_spill] sm:$0xff] %v7622_v50 }
 0x301   : > { %1337 = vmax.xlane.f32.xlu1 %v7604_v52 }
 0x305   : > { %1333 = vmax.xlane.f32.xlu1 %v7607_v54  ;;  %v7627_v54 = vpop.f32.mrf.mxu1 }
 0x306   : > { %10218 = vst [vmem:[#allocation23_spill] sm:$0xff] %v7627_v54 }
 0x307   : > { %v7630_v47 = vpop.f32.mrf.mxu1 }
 0x309   : > { %v7636_v31 = vpop.f32.mrf.mxu1 }
 0x30d   : > { %1632 = vrot.lane.b32.xlu0 %v7263_v38, %s7013_s11 }
 0x316   : > { %1634 = vrot.lane.b32.xlu1 %v7315_v6, %s7013_s11 }
 0x32c   : > { %1343 = vmax.xlane.f32.xlu0 %v7622_v50 }
 0x330   : > { %v870_v38 = vpop.xlane.xlu0 %869  ;;  %1339 = vmax.xlane.f32.xlu0 %v7627_v54 }
 0x331   : > { %v899_v6 = vsub.f32 %v7526_v60, %v870_v38 }
 0x333   : > { %v917_v44 = vmul.f32 1.442695, %v899_v6 }
 0x334   : > { %v866_v52 = vpop.xlane.xlu0 %865  ;;  %1345 = vmax.xlane.f32.xlu0 %v7630_v47 }
 0x335   : > { %v897_v51 = vsub.f32 %v7529_v62, %v866_v52 }
 0x336   : > { %v868_v48 = vpop.xlane.xlu1 %867 }
 0x337   : > { %v913_v46 = vmul.f32 1.442695, %v897_v51  ;;  %v898_v32 = vsub.f32 %v7534_v3, %v868_v48 }
 0x338   : > { %v872_v50 = vpop.xlane.xlu0 %871 }
 0x339   : > { %v915_v41 = vmul.f32 1.442695, %v898_v32  ;;  %v900_v54 = vsub.f32 %v7531_v0, %v872_v50  ;;  %6538 = vpow2.f32 %v913_v46 }
 0x33a   : > { %v878_v34 = vpop.xlane.xlu1 %877  ;;  %1341 = vmax.xlane.f32.xlu1 %v7636_v31 }
 0x33b   : > { %6540 = vpow2.f32 %v915_v41  ;;  %v919_v38 = vmul.f32 1.442695, %v900_v54  ;;  %v903_v6 = vsub.f32 %v7537_v5, %v878_v34 }
 0x33c   : > { %6542 = vpow2.f32 %v917_v44  ;;  %v880_v60 = vpop.xlane.xlu0 %879 }
 0x33d   : > { %6544 = vpow2.f32 %v919_v38  ;;  %v904_v51 = vsub.f32 %v7543_v53, %v880_v60  ;;  %v925_v46 = vmul.f32 1.442695, %v903_v6 }
 0x33e   : > { %v874_v62 = vpop.xlane.xlu1 %873 }
 0x33f   : > { %v927_v3 = vmul.f32 1.442695, %v904_v51  ;;  %v901_v48 = vsub.f32 %v7540_v8, %v874_v62 }
 0x340   : > { %v876_v32 = vpop.xlane.xlu0 %875 }
 0x341   : > { %v921_v52 = vmul.f32 1.442695, %v901_v48  ;;  %v902_v50 = vsub.f32 %v7546_v13, %v876_v32  ;;  %6546 = vpow2.f32 %v927_v3 }
 0x342   : > { %v886_v0 = vpop.xlane.xlu1 %885 }
 0x343   : > { %v923_v41 = vmul.f32 1.442695, %v902_v50  ;;  %6548 = vpow2.f32 %v921_v52  ;;  %v907_v34 = vsub.f32 %v7549_v17, %v886_v0 }
 0x344   : > { %v888_v44 = vpop.xlane.xlu0 %887 }
 0x345   : > { %6550 = vpow2.f32 %v923_v41  ;;  %v908_v54 = vsub.f32 %v7555_v12, %v888_v44  ;;  %v933_v17 = vmul.f32 1.442695, %v907_v34 }
 0x346   : > { %v882_v53 = vpop.xlane.xlu1 %881  ;;  %v7645_v38 = vpop.eup %6538  ;;  %6552 = vpow2.f32 %v925_v46 }
 0x347   : > { %v935_v5 = vmul.f32 1.442695, %v908_v54  ;;  %v905_v8 = vsub.f32 %v7552_v16, %v882_v53 }
 0x348   : > { %v7649_v60 = vpop.eup %6540  ;;  %v884_v13 = vpop.xlane.xlu0 %883 }
 0x349   : > { %v7651_v51 = vpop.eup %6542  ;;  %v929_v62 = vmul.f32 1.442695, %v905_v8  ;;  %v906_v6 = vsub.f32 %v7558_v24, %v884_v13  ;;  %v977_v12 = vpack.c.bf16 %v7649_v60, %v7645_v38  ;;  %6554 = vpow2.f32 %v935_v5 }
 0x34a   : > { %v7656_v3 = vpop.eup %6544  ;;  %v894_v48 = vpop.xlane.xlu1 %893  ;;  %1630 = vrot.lane.b32.xlu0 %v7219_v7, %s7013_s11 }
 0x34b   : > { %v931_v16 = vmul.f32 1.442695, %v906_v6  ;;  %5871 = vmatprep.mubr.bf16.mxu0 %v977_v12  ;;  %1628 = vrot.lane.b32.xlu1 %v7271_v43, %s7013_s11  ;;  %v978_v32 = vpack.c.bf16 %v7656_v3, %v7651_v51  ;;  %6556 = vpow2.f32 %v929_v62  ;;  %v911_v0 = vsub.f32 %v7561_v4, %v894_v48 }
 0x34c   : > { %v896_v24 = vpop.xlane.xlu0 %895 }
 0x34d   : > { %6558 = vpow2.f32 %v931_v16  ;;  %v912_v52 = vsub.f32 %v7567_v55, %v896_v24  ;;  %5872 = vmatmul.mubr.bf16.vlgmr.msra.gmra.mxu0 %v978_v32  ;;  %v941_v4 = vmul.f32 1.442695, %v911_v0 }
 0x34e   : > { %5920 = vmatpush3.bf16.msra.mxu0 %v7476_v1  ;;  %v890_v50 = vpop.xlane.xlu1 %889  ;;  %1612 = vrot.lane.b32.xlu0 %v7209_v63, %s7014_s21  ;;  %6560 = vpow2.f32 %v933_v17  ;;  %v7673_v55 = vpop.eup %6546 }
 0x34f   : > { %v943_v46 = vmul.f32 1.442695, %v912_v52  ;;  %5921 = vmatprep.subr.bf16.mxu0 %v7612_v56  ;;  %v909_v41 = vsub.f32 %v7564_v25, %v890_v50  ;;  %1614 = vrot.lane.b32.xlu1 %v7221_v9, %s7014_s21 }
 0x350   : > { %v892_v44 = vpop.xlane.xlu0 %891  ;;  %v7675_v1 = vpop.eup %6548 }
 0x351   : > { %v937_v54 = vmul.f32 1.442695, %v909_v41  ;;  %v910_v53 = vsub.f32 %v7571_v37, %v892_v44  ;;  %6562 = vpow2.f32 %v943_v46 }
 0x352   : > { %v7678_v34 = vpop.eup %6550  ;;  %5922 = vmatpush3.bf16.msra.mxu0 %v7612_v56  ;;  %1616 = vrot.lane.b32.xlu0 %v7399_v39, %s7014_s21 }
 0x353   : > { %v939_v25 = vmul.f32 1.442695, %v910_v53  ;;  %5923 = vmatprep.subr.bf16.mxu0 %v7458_v19  ;;  %1618 = vrot.lane.b32.xlu1 %v7355_v23, %s7014_s21  ;;  %v979_v5 = vpack.c.bf16 %v7678_v34, %v7675_v1  ;;  %v7688_v8 = vpop.eup %6552  ;;  %6564 = vpow2.f32 %v937_v54  ;;  %v10227_v53 = vld [vmem:[#allocation8_spill] sm:$0xff] }
 0x354   : > { %v980_v37 = vpack.c.bf16 %v7673_v55, %v7688_v8 }
 0x355   : > { %6566 = vpow2.f32 %v939_v25  ;;  %5875 = vmatprep.mubr.bf16.mxu0 %v979_v5 }
 0x356   : > { %5924 = vmatpush3.bf16.msra.mxu0 %v7458_v19  ;;  %1620 = vrot.lane.b32.xlu0 %v7407_v33, %s7014_s21  ;;  %6568 = vpow2.f32 %v941_v4  ;;  %v7696_v56 = vpop.eup %6554 }
 0x357   : > { %5876 = vmatmul.mubr.bf16.gmra.mxu0 %v980_v37  ;;  %5925 = vmatprep.subr.bf16.mxu0 %v7462_v21  ;;  %10219 = vst [vmem:[#allocation24_spill] sm:$0xff] %v7696_v56  ;;  %v10230_v37 = vld [vmem:[#allocation14_spill] sm:$0xff] }
 0x358   : > { %1622 = vrot.lane.b32.xlu1 %v7371_v26, %s7014_s21  ;;  %v7700_v13 = vpop.eup %6556 }
 0x359   : > { %10220 = vst [vmem:[#allocation25_spill] sm:$0xff] %v7700_v13 }
 0x35a   : > { %v7702_v62 = vpop.eup %6558  ;;  %5926 = vmatpush3.bf16.msra.mxu0 %v7462_v21  ;;  %1624 = vrot.lane.b32.xlu0 %v7415_v28, %s7014_s21 }
 0x35b   : > { %10221 = vst [vmem:[#allocation26_spill] sm:$0xff] %v7702_v62  ;;  %5927 = vmatprep.subr.bf16.mxu0 %v7464_v14  ;;  %v981_v19 = vpack.c.bf16 %v7702_v62, %v7700_v13  ;;  %v7710_v6 = vpop.eup %6560 }
 0x35c   : > { %10222 = vst [vmem:[#allocation27_spill] sm:$0xff] %v7710_v6  ;;  %1626 = vrot.lane.b32.xlu1 %v7384_v35, %s7014_s21  ;;  %v982_v12 = vpack.c.bf16 %v7696_v56, %v7710_v6  ;;  %v10270_v6 = vld [vmem:[#allocation9_spill] sm:$0xff] }
 0x35d   : > { %5879 = vmatprep.mubr.bf16.mxu0 %v981_v19 }
 0x35e   : > { %5928 = vmatpush3.bf16.msra.mxu0 %v7464_v14  ;;  %1923 = vrot.lane.b32.xlu0 %v7296_v61, %s7014_s21  ;;  %v7720_v21 = vpop.eup %6562 }
 0x35f   : > { %5880 = vmatmul.mubr.bf16.gmra.mxu0 %v982_v12  ;;  %5929 = vmatprep.subr.bf16.mxu0 %v7468_v10  ;;  %10223 = vst [vmem:[#allocation28_spill] sm:$0xff] %v7720_v21 }
 0x360   : > { %1921 = vrot.lane.b32.xlu1 %v7304_v2, %s7014_s21  ;;  %v7724_v48 = vpop.eup %6564 }
 0x361   : > { %10224 = vst [vmem:[#allocation29_spill] sm:$0xff] %v7724_v48 }
 0x362   : > { %v7726_v17 = vpop.eup %6566  ;;  %5930 = vmatpush3.bf16.msra.mxu0 %v7468_v10  ;;  %1919 = vrot.lane.b32.xlu0 %v7318_v11, %s7014_s21 }
 0x363   : > { %10225 = vst [vmem:[#allocation30_spill] sm:$0xff] %v7726_v17  ;;  %5931 = vmatprep.subr.bf16.mxu0 %v7616_v58  ;;  %v983_v14 = vpack.c.bf16 %v7726_v17, %v7724_v48  ;;  %v7734_v16 = vpop.eup %6568 }
 0x364   : > { %10226 = vst [vmem:[#allocation31_spill] sm:$0xff] %v7734_v16  ;;  %1913 = vrot.lane.b32.xlu1 %v7353_v22, %s7014_s21  ;;  %v984_v32 = vpack.c.bf16 %v7720_v21, %v7734_v16 }
 0x365   : > { %5883 = vmatprep.mubr.bf16.mxu0 %v983_v14  ;;  %v10231_v14 = vld [vmem:[#allocation15_spill] sm:$0xff] }
 0x366   : > { %5932 = vmatpush3.bf16.msra.mxu0 %v7616_v58  ;;  %1917 = vrot.lane.b32.xlu0 %v7329_v15, %s7014_s21 }
 0x367   : > { %5884 = vmatmul.mubr.bf16.gmra.mxu0 %v984_v32  ;;  %5933 = vmatprep.subr.bf16.mxu0 %v7470_v27 }
 0x368   : > { %1909 = vrot.lane.b32.xlu1 %v7382_v59, %s7014_s21 }
 0x36a   : > { %5934 = vmatpush3.bf16.msra.mxu0 %v7470_v27  ;;  %1915 = vrot.lane.b32.xlu0 %v7341_v20, %s7014_s21 }
 0x36b   : > { %6335 = vmatprep.subr.msk.bf16.mxu0 %vm719_vm2, %v7618_v18 }
 0x36c   : > { %2104 = vrot.lane.b32.xlu1 %v7242_v29, %s7015_s23 }
 0x36e   : > { %1911 = vrot.lane.b32.xlu0 %v7369_v30, %s7014_s21 }
 0x370   : > { %v1320_v10 = vpop.xlane.xlu0 %1319 }
 0x371   : > { %v1349_v50 = vsub.f32 %v7574_v40, %v1320_v10  ;;  %v10229_v40 = vld [vmem:[#allocation12_spill] sm:$0xff] }
 0x372   : > { %v1316_v58 = vpop.xlane.xlu1 %1315  ;;  %2108 = vrot.lane.b32.xlu0 %v7292_v57, %s7015_s23 }
 0x373   : > { %v1347_v27 = vsub.f32 %v7577_v42, %v1316_v58  ;;  %v1367_v44 = vmul.f32 1.442695, %v1349_v50  ;;  %v10228_v42 = vld [vmem:[#allocation13_spill] sm:$0xff] }
 0x374   : > { %v1322_v24 = vpop.xlane.xlu0 %1321 }
 0x375   : > { %v1350_v52 = vsub.f32 %v7580_v36, %v1322_v24  ;;  %v1363_v0 = vmul.f32 1.442695, %v1347_v27 }
 0x376   : > { %2106 = vrot.lane.b32.xlu0 %v7287_v49, %s7015_s23 }
 0x377   : > { %v1369_v29 = vmul.f32 1.442695, %v1350_v52  ;;  %6570 = vpow2.f32 %v1363_v0  ;;  %v10232_v0 = vld [vmem:[#allocation17_spill] sm:$0xff] }
 0x378   : > { %v1318_v46 = vpop.xlane.xlu0 %1317 }
 0x379   : > { %v1348_v41 = vsub.f32 %v7583_v45, %v1318_v46  ;;  %6572 = vpow2.f32 %v1369_v29 }
 0x37a   : > { %v1324_v54 = vpop.xlane.xlu1 %1323  ;;  %2102 = vrot.lane.b32.xlu0 %v10227_v53, %s7015_s23 }
 0x37b   : > { %v1365_v57 = vmul.f32 1.442695, %v1348_v41  ;;  %v1351_v4 = vsub.f32 %v10228_v42, %v1324_v54  ;;  %v10233_v54 = vld [vmem:[#allocation18_spill] sm:$0xff]  ;;  %v10234_v42 = vld [vmem:[#allocation16_spill] sm:$0xff] }
 0x37c   : > { %v1328_v36 = vpop.xlane.xlu0 %1327 }
 0x37d   : > { %6574 = vpow2.f32 %v1365_v57  ;;  %v1353_v49 = vsub.f32 %v10229_v40, %v1328_v36  ;;  %v1371_v5 = vmul.f32 1.442695, %v1351_v4 }
 0x37e   : > { %6576 = vpow2.f32 %v1367_v44  ;;  %v1330_v25 = vpop.xlane.xlu1 %1329 }
 0x37f   : > { %v1354_v19 = vsub.f32 %v10230_v37, %v1330_v25  ;;  %v1375_v10 = vmul.f32 1.442695, %v1353_v49  ;;  %6578 = vpow2.f32 %v1371_v5  ;;  %v1690_v25 = vsel %vm719_vm2, %v7618_v18, 0  ;;  %v10235_v37 = vld [vmem:[#allocation19_spill] sm:$0xff] }
 0x380   : > { %v1326_v45 = vpop.xlane.xlu0 %1325 }
 0x381   : > { %v1377_v12 = vmul.f32 1.442695, %v1354_v19  ;;  %v1352_v32 = vsub.f32 %v10231_v14, %v1326_v45  ;;  %v10236_v14 = vld [vmem:[#allocation20_spill] sm:$0xff] }
 0x382   : > { %v1336_v58 = vpop.xlane.xlu1 %1335 }
 0x383   : > { %v1373_v27 = vmul.f32 1.442695, %v1352_v32  ;;  %6580 = vpow2.f32 %v1377_v12  ;;  %v1357_v4 = vsub.f32 %v10234_v42, %v1336_v58  ;;  %v10238_v42 = vld [vmem:[#allocation22_spill] sm:$0xff] }
 0x384   : > { %v7769_v52 = vpop.eup %6570 }
 0x385   : > { %6582 = vpow2.f32 %v1373_v27  ;;  %v1383_v12 = vmul.f32 1.442695, %v1357_v4 }
 0x386   : > { %6584 = vpow2.f32 %v1375_v10  ;;  %v1332_v24 = vpop.xlane.xlu1 %1331  ;;  %v7771_v50 = vpop.eup %6572 }
 0x387   : > { %v1355_v29 = vsub.f32 %v10232_v0, %v1332_v24  ;;  %v1687_v0 = vsel %vm719_vm2, %v10236_v14, 0 }
 0x389   : > { %v1379_v40 = vmul.f32 1.442695, %v1355_v29  ;;  %v10237_v29 = vld [vmem:[#allocation11_spill] sm:$0xff] }
 0x38a   : > { %v7774_v46 = vpop.eup %6574  ;;  %v1338_v41 = vpop.xlane.xlu1 %1337 }
 0x38b   : > { %v7776_v44 = vpop.eup %6576  ;;  %v1358_v53 = vsub.f32 %v10233_v54, %v1338_v41  ;;  %v1427_v57 = vpack.c.bf16 %v7774_v46, %v7769_v52  ;;  %6586 = vpow2.f32 %v1379_v40  ;;  %v1684_v54 = vsel %vm719_vm2, %v10237_v29, 0 }
 0x38c   : > { %v1428_v36 = vpack.c.bf16 %v7771_v50, %v7776_v44  ;;  %v7787_v45 = vpop.eup %6578 }
 0x38d   : > { %5935 = vmatprep.mubr.bf16.mxu0 %v1427_v57  ;;  %v1385_v49 = vmul.f32 1.442695, %v1358_v53 }
 0x38e   : > { %5936 = vmatmul.mubr.bf16.vlgmr.msra.gmra.mxu0 %v1428_v36  ;;  %v1334_v5 = vpop.xlane.xlu1 %1333 }
 0x38f   : > { %5952 = vmatpush3.bf16.xpose.msra.mxu0 %v1690_v25  ;;  %v1356_v19 = vsub.f32 %v10235_v37, %v1334_v5  ;;  %6588 = vpow2.f32 %v1385_v49  ;;  %v1681_v49 = vsel %vm719_vm2, %v10238_v42, 0  ;;  %v1633_v37 = vpop.permute.xlu0 %1632 }
 0x390   : > { %6336 = vmatprep.subr.msk.bf16.mxu0 %vm719_vm2, %v10236_v14  ;;  %v7791_v32 = vpop.eup %6580 }
 0x391   : > { %v1381_v10 = vmul.f32 1.442695, %v1356_v19 }
 0x392   : > { %v7793_v58 = vpop.eup %6582  ;;  %v1635_v25 = vpop.permute.xlu1 %1634 }
 0x393   : > { %v7795_v27 = vpop.eup %6584  ;;  %6590 = vpow2.f32 %v1381_v10  ;;  %v1429_v18 = vpack.c.bf16 %v7793_v58, %v7787_v45  ;;  %v1678_v5 = vsel %vm719_vm2, %v1635_v25, 0 }
 0x394   : > { %6592 = vpow2.f32 %v1383_v12  ;;  %v1430_v24 = vpack.c.bf16 %v7791_v32, %v7795_v27  ;;  %v1675_v12 = vsel %vm719_vm2, %v1633_v37, 0 }
 0x395   : > { %5939 = vmatprep.mubr.bf16.mxu0 %v1429_v18  ;;  %v10239_v18 = vld [vmem:[#allocation23_spill] sm:$0xff] }
 0x396   : > { %5940 = vmatmul.mubr.bf16.gmra.mxu0 %v1430_v24 }
 0x397   : > { %5954 = vmatpush3.bf16.xpose.msra.mxu0 %v1687_v0 }
 0x398   : > { %6337 = vmatprep.subr.msk.bf16.mxu0 %vm719_vm2, %v10237_v29  ;;  %v7805_v41 = vpop.eup %6586  ;;  %v10240_v29 = vld [vmem:[#allocation21_spill] sm:$0xff] }
 0x39c   : > { %v7809_v53 = vpop.eup %6588 }
 0x39f   : > { %5956 = vmatpush3.bf16.xpose.msra.mxu0 %v1684_v54 }
 0x3a0   : > { %v7811_v57 = vpop.eup %6590  ;;  %6338 = vmatprep.subr.msk.bf16.mxu0 %vm719_vm2, %v10238_v42 }
 0x3a1   : > { %v7815_v4 = vpop.eup %6592  ;;  %v1431_v36 = vpack.c.bf16 %v7811_v57, %v7805_v41 }
 0x3a2   : > { %v1432_v40 = vpack.c.bf16 %v7809_v53, %v7815_v4 }
 0x3a3   : > { %5943 = vmatprep.mubr.bf16.mxu0 %v1431_v36 }
 0x3a4   : > { %5944 = vmatmul.mubr.bf16.gmra.mxu0 %v1432_v40 }
 0x3a7   : > { %5958 = vmatpush3.bf16.xpose.msra.mxu0 %v1681_v49 }
 0x3a8   : > { %6339 = vmatprep.subr.msk.bf16.mxu0 %vm719_vm2, %v1635_v25 }
 0x3af   : > { %5960 = vmatpush3.bf16.xpose.msra.mxu0 %v1678_v5 }
 0x3b0   : > { %6340 = vmatprep.subr.msk.bf16.mxu0 %vm719_vm2, %v1633_v37 }
 0x3b5   : > { %v1344_v19 = vpop.xlane.xlu0 %1343 }
 0x3b6   : > { %v1361_v54 = vsub.f32 %v10240_v29, %v1344_v19 }
 0x3b7   : > { %5962 = vmatpush3.bf16.xpose.msra.mxu0 %v1675_v12 }
 0x3b8   : > { %v1391_v37 = vmul.f32 1.442695, %v1361_v54 }
 0x3b9   : > { %v1340_v14 = vpop.xlane.xlu0 %1339 }
 0x3ba   : > { %v1359_v24 = vsub.f32 %v10239_v18, %v1340_v14 }
 0x3bc   : > { %v1387_v36 = vmul.f32 1.442695, %v1359_v24 }
 0x3bd   : > { %v1346_v10 = vpop.xlane.xlu0 %1345 }
 0x3be   : > { %v1362_v0 = vsub.f32 %v7630_v47, %v1346_v10  ;;  %6594 = vpow2.f32 %v1387_v36 }
 0x3c0   : > { %v1393_v49 = vmul.f32 1.442695, %v1362_v0 }
 0x3c1   : > { %v1631_v42 = vpop.permute.xlu0 %1630 }
 0x3c2   : > { %6341 = vmatprep.subr.msk.bf16.mxu0 %vm719_vm2, %v1631_v42  ;;  %v1672_v40 = vsel %vm719_vm2, %v1631_v42, 0  ;;  %6596 = vpow2.f32 %v1393_v49 }
 0x3c3   : > { %5964 = vmatpush3.bf16.xpose.msra.mxu0 %v1672_v40  ;;  %v1342_v25 = vpop.xlane.xlu1 %1341 }
 0x3c4   : > { %v1360_v5 = vsub.f32 %v7636_v31, %v1342_v25 }
 0x3c5   : > { %v1613_v12 = vpop.permute.xlu0 %1612 }
 0x3c6   : > { %v1389_v21 = vmul.f32 1.442695, %v1360_v5 }
 0x3c7   : > { %v1629_v14 = vpop.permute.xlu1 %1628 }
 0x3c8   : > { %6598 = vpow2.f32 %v1389_v21  ;;  %6342 = vmatprep.subr.msk.bf16.mxu0 %vm719_vm2, %v1629_v14  ;;  %v1669_v19 = vsel %vm719_vm2, %v1629_v14, 0 }
 0x3c9   : > { %6600 = vpow2.f32 %v1391_v37  ;;  %v1617_v47 = vpop.permute.xlu0 %1616 }
 0x3cb   : > { %5966 = vmatpush3.bf16.xpose.msra.mxu0 %v1669_v19  ;;  %v1615_v10 = vpop.permute.xlu1 %1614  ;;  %v7835_v29 = vpop.eup %6594 }
 0x3cd   : > { %v1621_v18 = vpop.permute.xlu0 %1620 }
 0x3cf   : > { %v1619_v24 = vpop.permute.xlu1 %1618  ;;  %v7837_v54 = vpop.eup %6596 }
 0x3d1   : > { %v1625_v0 = vpop.permute.xlu0 %1624 }
 0x3d3   : > { %v1623_v31 = vpop.permute.xlu1 %1622 }
 0x3d5   : > { %v7839_v42 = vpop.eup %6598  ;;  %v1924_v36 = vpop.permute.xlu0 %1923 }
 0x3d6   : > { %v7841_v21 = vpop.eup %6600  ;;  %5983 = vmatprep.subr.bf16.mxu1 %v1924_v36  ;;  %v1433_v40 = vpack.c.bf16 %v7839_v42, %v7835_v29 }
 0x3d7   : > { %5984 = vmatpush3.bf16.msra.mxu1 %v1924_v36  ;;  %v1627_v49 = vpop.permute.xlu1 %1626  ;;  %v1434_v25 = vpack.c.bf16 %v7837_v54, %v7841_v21 }
 0x3d8   : > { %5947 = vmatprep.mubr.bf16.mxu0 %v1433_v40 }
 0x3d9   : > { %v1920_v5 = vpop.permute.xlu0 %1919  ;;  %5948 = vmatmul.mubr.bf16.gmra.mxu0 %v1434_v25 }
 0x3da   : > { %5967 = vmatprep.mubr.msk.bf16.mxu0 %vm719_vm2, %v1613_v12 }
 0x3db   : > { %v1922_v37 = vpop.permute.xlu1 %1921 }
 0x3dc   : > { %5985 = vmatprep.subr.bf16.mxu1 %v1922_v37 }
 0x3dd   : > { %5986 = vmatpush3.bf16.msra.mxu1 %v1922_v37  ;;  %v1918_v14 = vpop.permute.xlu0 %1917 }
 0x3de   : > { %5987 = vmatprep.subr.bf16.mxu1 %v1920_v5 }
 0x3df   : > { %v1914_v36 = vpop.permute.xlu1 %1913 }
 0x3e1   : > { %5968 = vmatmul.mubr.msk.bf16.vlgmr.msra.gmra.mxu0 %vm719_vm2, %v1615_v10  ;;  %5988 = vmatpush3.bf16.msra.mxu1 %v1920_v5  ;;  %v1916_v19 = vpop.permute.xlu0 %1915 }
 0x3e2   : > { %5971 = vmatprep.mubr.msk.bf16.mxu0 %vm719_vm2, %v1617_v47  ;;  %5989 = vmatprep.subr.bf16.mxu1 %v1918_v14 }
 0x3e3   : > { %v1910_v40 = vpop.permute.xlu1 %1909 }
 0x3e5   : > { %5990 = vmatpush3.bf16.msra.mxu1 %v1918_v14  ;;  %v1912_v12 = vpop.permute.xlu0 %1911 }
 0x3e6   : > { %5991 = vmatprep.subr.bf16.mxu1 %v1916_v19 }
 0x3e9   : > { %5972 = vmatmul.mubr.msk.bf16.gmra.mxu0 %vm719_vm2, %v1619_v24  ;;  %5992 = vmatpush3.bf16.msra.mxu1 %v1916_v19  ;;  %v7854_v47 = vpop.permute.xlu0 %2108 }
 0x3ea   : > { %5975 = vmatprep.mubr.msk.bf16.mxu0 %vm719_vm2, %v1621_v18  ;;  %5993 = vmatprep.subr.bf16.mxu1 %v1914_v36 }
 0x3ed   : > { %5994 = vmatpush3.bf16.msra.mxu1 %v1914_v36 }
 0x3ee   : > { %5995 = vmatprep.subr.bf16.mxu1 %v1912_v12 }
 0x3f1   : > { %5976 = vmatmul.mubr.msk.bf16.gmra.mxu0 %vm719_vm2, %v1623_v31  ;;  %5996 = vmatpush3.bf16.msra.mxu1 %v1912_v12 }
 0x3f2   : > { %5979 = vmatprep.mubr.msk.bf16.mxu0 %vm719_vm2, %v1625_v0  ;;  %5997 = vmatprep.subr.bf16.mxu1 %v1910_v40 }
 0x3f5   : > { %5998 = vmatpush3.bf16.msra.mxu1 %v1910_v40 }
 0x3f6   : > { %6343 = vmatprep.subr.msk.bf16.mxu1 %vm719_vm2, %v7854_v47 }
 0x3f9   : > { %5980 = vmatmul.mubr.msk.bf16.gmra.mxu0 %vm719_vm2, %v1627_v49 }
 0x40d   : > { %v7859_v10 = vpop.f32.mrf.mxu0 }
 0x40e   : > { %10241 = vst [vmem:[#allocation8_spill] sm:$0xff] %v7859_v10 }
 0x40f   : > { %v7861_v18 = vpop.f32.mrf.mxu0 }
 0x410   : > { %10242 = vst [vmem:[#allocation13_spill] sm:$0xff] %v7861_v18 }
 0x411   : > { %v7863_v24 = vpop.f32.mrf.mxu0 }
 0x412   : > { %10243 = vst [vmem:[#allocation12_spill] sm:$0xff] %v7863_v24 }
 0x413   : > { %v7865_v25 = vpop.f32.mrf.mxu0 }
 0x414   : > { %10244 = vst [vmem:[#allocation14_spill] sm:$0xff] %v7865_v25 }
 0x417   : > { %v7867_v31 = vpop.f32.mrf.mxu0 }
 0x418   : > { %10245 = vst [vmem:[#allocation15_spill] sm:$0xff] %v7867_v31 }
 0x419   : > { %v7869_v0 = vpop.f32.mrf.mxu0 }
 0x41a   : > { %10246 = vst [vmem:[#allocation17_spill] sm:$0xff] %v7869_v0 }
 0x41b   : > { %v7871_v5 = vpop.f32.mrf.mxu0 }
 0x41c   : > { %10247 = vst [vmem:[#allocation18_spill] sm:$0xff] %v7871_v5 }
 0x41d   : > { %v7873_v37 = vpop.f32.mrf.mxu0 }
 0x41e   : > { %10248 = vst [vmem:[#allocation16_spill] sm:$0xff] %v7873_v37 }
 0x41f   : > { %v7875_v14 = vpop.f32.mrf.mxu0 }
 0x420   : > { %10249 = vst [vmem:[#allocation19_spill] sm:$0xff] %v7875_v14 }
 0x421   : > { %v7877_v19 = vpop.f32.mrf.mxu0 }
 0x422   : > { %10250 = vst [vmem:[#allocation20_spill] sm:$0xff] %v7877_v19 }
 0x423   : > { %v7879_v49 = vpop.f32.mrf.mxu0 }
 0x424   : > { %10251 = vst [vmem:[#allocation11_spill] sm:$0xff] %v7879_v49 }
 0x425   : > { %v7881_v36 = vpop.f32.mrf.mxu0 }
 0x426   : > { %10252 = vst [vmem:[#allocation22_spill] sm:$0xff] %v7881_v36 }
 0x427   : > { %v7883_v12 = vpop.f32.mrf.mxu0 }
 0x428   : > { %10253 = vst [vmem:[#allocation23_spill] sm:$0xff] %v7883_v12 }
 0x429   : > { %v7885_v40 = vpop.f32.mrf.mxu0 }
 0x42a   : > { %10254 = vst [vmem:[#allocation21_spill] sm:$0xff] %v7885_v40 }
 0x42b   : > { %v7887_v18 = vpop.f32.mrf.mxu0 }
 0x42c   : > { %10255 = vst [vmem:[#allocation32_spill] sm:$0xff] %v7887_v18 }
 0x42d   : > { %v7889_v31 = vpop.f32.mrf.mxu0 }
 0x42e   : > { %10256 = vst [vmem:[#allocation33_spill] sm:$0xff] %v7889_v31 }
 0x44e   : > { %v7891_v0 = vpop.f32.mrf.mxu0 }
 0x450   : > { %v7893_v5 = vpop.f32.mrf.mxu0 }
 0x452   : > { %v7895_v37 = vpop.f32.mrf.mxu0 }
 0x453   : > { %10257 = vst [vmem:[#allocation34_spill] sm:$0xff] %v7895_v37 }
 0x454   : > { %v7897_v14 = vpop.f32.mrf.mxu0 }
 0x456   : > { %v7899_v19 = vpop.f32.mrf.mxu0 }
 0x457   : > { %10258 = vst [vmem:[#allocation35_spill] sm:$0xff] %v7899_v19 }
 0x458   : > { %v7901_v49 = vpop.f32.mrf.mxu0 }
 0x459   : > { %10259 = vst [vmem:[#allocation36_spill] sm:$0xff] %v7901_v49 }
 0x45a   : > { %v7903_v36 = vpop.f32.mrf.mxu0 }
 0x45b   : > { %10260 = vst [vmem:[#allocation37_spill] sm:$0xff] %v7903_v36 }
 0x45c   : > { %v7905_v12 = vpop.f32.mrf.mxu0 }
 0x45d   : > { %10261 = vst [vmem:[#allocation38_spill] sm:$0xff] %v7905_v12  ;;  %v10271_v12 = vld [vmem:[#allocation10_spill] sm:$0xff] }
 0x464   : > { %v7907_v40 = vpop.f32.mrf.mxu0 }
 0x465   : > { %10262 = vst [vmem:[#allocation39_spill] sm:$0xff] %v7907_v40 }
 0x466   : > { %v7909_v18 = vpop.f32.mrf.mxu0 }
 0x467   : > { %10263 = vst [vmem:[#allocation40_spill] sm:$0xff] %v7909_v18 }
 0x468   : > { %v7911_v31 = vpop.f32.mrf.mxu0 }
 0x469   : > { %10264 = vst [vmem:[#allocation41_spill] sm:$0xff] %v7911_v31 }
 0x46a   : > { %v7913_v10 = vpop.f32.mrf.mxu0 }
 0x46b   : > { %10265 = vst [vmem:[#allocation42_spill] sm:$0xff] %v7913_v10 }
 0x499   : > { %v7915_v25 = vpop.f32.mrf.mxu0 }
 0x49a   : > { %10266 = vst [vmem:[#allocation43_spill] sm:$0xff] %v7915_v25 }
 0x49b   : > { %v7917_v24 = vpop.f32.mrf.mxu0 }
 0x49c   : > { %10267 = vst [vmem:[#allocation44_spill] sm:$0xff] %v7917_v24 }
 0x49d   : > { %v7919_v17 = vpop.f32.mrf.mxu0 }
 0x49e   : > { %10268 = vst [vmem:[#allocation45_spill] sm:$0xff] %v7919_v17 }
 0x49f   : > { %v7921_v16 = vpop.f32.mrf.mxu0 }
 0x4a0   : > { %10269 = vst [vmem:[#allocation46_spill] sm:$0xff] %v7921_v16 }
 0x4a1   : > { %v7923_v48 = vpop.f32.mrf.mxu0 }
 0x4a2   : > { %1793 = vmax.xlane.f32.xlu1 %v7923_v48 }
 0x4a3   : > { %v1726_v36 = vpop.f32.mrf.mxu0 }
 0x4a4   : > { %1789 = vmax.xlane.f32.xlu0 %v1726_v36 }
 0x4a5   : > { %v5970_v40 = vpop.f32.mrf.mxu0 }
 0x4a6   : > { %1795 = vmax.xlane.f32.xlu1 %v5970_v40 }
 0x4a7   : > { %v1729_v18 = vpop.f32.mrf.mxu0 }
 0x4a9   : > { %v7926_v31 = vpop.f32.mrf.mxu0 }
 0x4aa   : > { %1791 = vmax.xlane.f32.xlu1 %v1729_v18  ;;  %1801 = vmax.xlane.f32.xlu0 %v7926_v31 }
 0x4ab   : > { %v7929_v25 = vpop.f32.mrf.mxu0 }
 0x4ad   : > { %v7931_v24 = vpop.f32.mrf.mxu0 }
 0x4ae   : > { %1797 = vmax.xlane.f32.xlu1 %v7929_v25 }
 0x4af   : > { %v7934_v16 = vpop.f32.mrf.mxu0 }
 0x4b0   : > { %1799 = vmax.xlane.f32.xlu0 %v7934_v16 }
 0x4b1   : > { %v7938_v17 = vpop.f32.mrf.mxu0 }
 0x4b2   : > { %1803 = vmax.xlane.f32.xlu1 %v7931_v24 }
 0x4b3   : > { %v7941_v10 = vpop.f32.mrf.mxu0 }
 0x4b5   : > { %v7944_v19 = vpop.f32.mrf.mxu0 }
 0x4b6   : > { %1809 = vmax.xlane.f32.xlu1 %v7938_v17 }
 0x4b7   : > { %v7947_v56 = vpop.f32.mrf.mxu0 }
 0x4b9   : > { %v7954_v49 = vpop.f32.mrf.mxu0 }
 0x4ba   : > { %1805 = vmax.xlane.f32.xlu1 %v7941_v10 }
 0x4bb   : > { %v7957_v13 = vpop.f32.mrf.mxu0 }
 0x4bd   : > { %v7960_v62 = vpop.f32.mrf.mxu0 }
 0x4be   : > { %1811 = vmax.xlane.f32.xlu1 %v7944_v19 }
 0x4bf   : > { %v7963_v37 = vpop.f32.mrf.mxu0 }
 0x4c2   : > { %1807 = vmax.xlane.f32.xlu1 %v7947_v56 }
 0x4c6   : > { %2098 = vrot.lane.b32.xlu0 %v10270_v6, %s7015_s23 }
 0x4d3   : > { %2100 = vrot.lane.b32.xlu1 %v10271_v12, %s7015_s23 }
 0x4e5   : > { %1817 = vmax.xlane.f32.xlu0 %v7954_v49 }
 0x4e9   : > { %1813 = vmax.xlane.f32.xlu0 %v7957_v13 }
 0x4ed   : > { %1819 = vmax.xlane.f32.xlu0 %v7960_v62 }
 0x4f7   : > { %1815 = vmax.xlane.f32.xlu1 %v7963_v37 }
 0x503   : > { %2096 = vrot.lane.b32.xlu0 %v7219_v7, %s7015_s23  ;;  %v7985_v7 = vpop.permute.xlu1 %2104 }
 0x507   : > { %2078 = vrot.lane.b32.xlu0 %v7209_v63, %s7016_s24  ;;  %v7982_v63 = vpop.permute.xlu0 %2106 }
 0x508   : > { %2094 = vrot.lane.b32.xlu1 %v7271_v43, %s7015_s23 }
 0x50b   : > { %2082 = vrot.lane.b32.xlu0 %v7399_v39, %s7016_s24 }
 0x50c   : > { %2080 = vrot.lane.b32.xlu1 %v7221_v9, %s7016_s24  ;;  %v7988_v9 = vpop.permute.xlu0 %2102 }
 0x50f   : > { %2086 = vrot.lane.b32.xlu0 %v7407_v33, %s7016_s24 }
 0x510   : > { %2084 = vrot.lane.b32.xlu1 %v7355_v23, %s7016_s24 }
 0x513   : > { %2090 = vrot.lane.b32.xlu0 %v7415_v28, %s7016_s24 }
 0x514   : > { %2088 = vrot.lane.b32.xlu1 %v7371_v26, %s7016_s24 }
 0x517   : > { %2387 = vrot.lane.b32.xlu0 %v7304_v2, %s7016_s24 }
 0x518   : > { %2092 = vrot.lane.b32.xlu1 %v7384_v35, %s7016_s24 }
 0x51b   : > { %2379 = vrot.lane.b32.xlu0 %v7353_v22, %s7016_s24 }
 0x51c   : > { %2389 = vrot.lane.b32.xlu1 %v7296_v61, %s7016_s24 }
 0x520   : > { %2385 = vrot.lane.b32.xlu1 %v7318_v11, %s7016_s24 }
 0x524   : > { %2383 = vrot.lane.b32.xlu1 %v7329_v15, %s7016_s24 }
 0x528   : > { %2381 = vrot.lane.b32.xlu1 %v7341_v20, %s7016_s24 }
 0x52b   : > { %v1794_v43 = vpop.xlane.xlu1 %1793 }
 0x52c   : > { %2377 = vrot.lane.b32.xlu1 %v7369_v30, %s7016_s24  ;;  %v1823_v61 = vsub.f32 %v7923_v48, %v1794_v43 }
 0x52d   : > { %v1790_v2 = vpop.xlane.xlu0 %1789 }
 0x52e   : > { %v1821_v23 = vsub.f32 %v1726_v36, %v1790_v2  ;;  %v1841_v28 = vmul.f32 1.442695, %v1823_v61 }
 0x52f   : > { %v1796_v22 = vpop.xlane.xlu1 %1795 }
 0x530   : > { %v1824_v26 = vsub.f32 %v5970_v40, %v1796_v22  ;;  %2375 = vrot.lane.b32.xlu1 %v7382_v59, %s7016_s24  ;;  %v1837_v11 = vmul.f32 1.442695, %v1821_v23 }
 0x532   : > { %v1843_v15 = vmul.f32 1.442695, %v1824_v26  ;;  %6602 = vpow2.f32 %v1837_v11 }
 0x533   : > { %v1792_v35 = vpop.xlane.xlu1 %1791  ;;  %v1802_v39 = vpop.xlane.xlu0 %1801 }
 0x534   : > { %v1822_v33 = vsub.f32 %v1729_v18, %v1792_v35  ;;  %v1827_v6 = vsub.f32 %v7926_v31, %v1802_v39  ;;  %6604 = vpow2.f32 %v1843_v15 }
 0x536   : > { %v1839_v20 = vmul.f32 1.442695, %v1822_v33  ;;  %v1849_v40 = vmul.f32 1.442695, %v1827_v6  ;;  %v2156_v33 = vsel %vm719_vm2, %v7854_v47, 0 }
 0x537   : > { %v1798_v12 = vpop.xlane.xlu1 %1797 }
 0x538   : > { %v1825_v30 = vsub.f32 %v7929_v25, %v1798_v12  ;;  %6606 = vpow2.f32 %v1839_v20 }
 0x539   : > { %v1800_v36 = vpop.xlane.xlu0 %1799  ;;  %6608 = vpow2.f32 %v1841_v28 }
 0x53a   : > { %v1845_v59 = vmul.f32 1.442695, %v1825_v30  ;;  %v1826_v48 = vsub.f32 %v7934_v16, %v1800_v36  ;;  %1397 = vadd.xlane.f32.xlu0 %v7774_v46  ;;  %v2150_v36 = vsel %vm719_vm2, %v7985_v7, 0 }
 0x53b   : > { %v1804_v43 = vpop.xlane.xlu1 %1803 }
 0x53c   : > { %v1847_v18 = vmul.f32 1.442695, %v1826_v48  ;;  %v1828_v2 = vsub.f32 %v7931_v24, %v1804_v43  ;;  %6610 = vpow2.f32 %v1845_v59 }
 0x53e   : > { %6612 = vpow2.f32 %v1847_v18  ;;  %v1851_v31 = vmul.f32 1.442695, %v1828_v2  ;;  %1401 = vadd.xlane.f32.xlu0 %v7771_v50 }
 0x53f   : > { %6614 = vpow2.f32 %v1849_v40  ;;  %v1810_v25 = vpop.xlane.xlu1 %1809  ;;  %v6603_v22 = vpop.eup %6602 }
 0x540   : > { %6616 = vpow2.f32 %v1851_v31  ;;  %v1831_v50 = vsub.f32 %v7938_v17, %v1810_v25 }
 0x541   : > { %v6605_v16 = vpop.eup %6604 }
 0x542   : > { %1405 = vadd.xlane.f32.xlu0 %v7793_v58  ;;  %v1857_v12 = vmul.f32 1.442695, %v1831_v50 }
 0x543   : > { %v1806_v23 = vpop.xlane.xlu1 %1805 }
 0x544   : > { %v1829_v46 = vsub.f32 %v7941_v10, %v1806_v23 }
 0x545   : > { %v6607_v26 = vpop.eup %6606 }
 0x546   : > { %1409 = vadd.xlane.f32.xlu0 %v7791_v32  ;;  %v6609_v61 = vpop.eup %6608  ;;  %v1901_v11 = vpack.c.bf16 %v6607_v26, %v6603_v22  ;;  %v1853_v58 = vmul.f32 1.442695, %v1829_v46 }
 0x547   : > { %v1812_v24 = vpop.xlane.xlu1 %1811  ;;  %v1902_v15 = vpack.c.bf16 %v6605_v16, %v6609_v61 }
 0x548   : > { %v1832_v35 = vsub.f32 %v7944_v19, %v1812_v24  ;;  %5999 = vmatprep.mubr.bf16.mxu1 %v1901_v11  ;;  %6618 = vpow2.f32 %v1853_v58 }
 0x549   : > { %v8004_v39 = vpop.eup %6610  ;;  %6000 = vmatmul.mubr.bf16.vlgmr.msra.gmra.mxu1 %v1902_v15 }
 0x54a   : > { %1875 = vadd.xlane.f32.xlu0 %v6605_v16  ;;  %v1859_v32 = vmul.f32 1.442695, %v1832_v35  ;;  %6016 = vmatpush3.bf16.xpose.msra.mxu1 %v2156_v33 }
 0x54b   : > { %v8008_v10 = vpop.eup %6612  ;;  %v1808_v28 = vpop.xlane.xlu1 %1807  ;;  %6344 = vmatprep.subr.msk.bf16.mxu1 %vm719_vm2, %v7982_v63 }
 0x54c   : > { %v8010_v20 = vpop.eup %6614  ;;  %v1830_v17 = vsub.f32 %v7947_v56, %v1808_v28  ;;  %v1903_v19 = vpack.c.bf16 %v8008_v10, %v8004_v39  ;;  %6620 = vpow2.f32 %v1859_v32  ;;  %v2153_v56 = vsel %vm719_vm2, %v7982_v63, 0 }
 0x54d   : > { %v8017_v6 = vpop.eup %6616 }
 0x54e   : > { %v1855_v47 = vmul.f32 1.442695, %v1830_v17  ;;  %1871 = vadd.xlane.f32.xlu0 %v6607_v26  ;;  %6003 = vmatprep.mubr.bf16.mxu1 %v1903_v19  ;;  %v1904_v30 = vpack.c.bf16 %v8017_v6, %v8010_v20 }
 0x54f   : > { %v2101_v43 = vpop.permute.xlu1 %2100 }
 0x550   : > { %6622 = vpow2.f32 %v1855_v47  ;;  %v2144_v18 = vsel %vm719_vm2, %v2101_v43, 0 }
 0x551   : > { %6624 = vpow2.f32 %v1857_v12  ;;  %6004 = vmatmul.mubr.bf16.gmra.mxu1 %v1904_v30 }
 0x552   : > { %6018 = vmatpush3.bf16.xpose.msra.mxu1 %v2153_v56 }
 0x553   : > { %6345 = vmatprep.subr.msk.bf16.mxu1 %vm719_vm2, %v7985_v7  ;;  %v2147_v7 = vsel %vm719_vm2, %v7988_v9, 0 }
 0x554   : > { %1395 = vadd.xlane.f32.xlu1 %v7769_v52 }
 0x555   : > { %v8029_v59 = vpop.eup %6618 }
 0x558   : > { %1399 = vadd.xlane.f32.xlu1 %v7776_v44 }
 0x559   : > { %v8031_v48 = vpop.eup %6620 }
 0x55a   : > { %6020 = vmatpush3.bf16.xpose.msra.mxu1 %v2150_v36 }
 0x55b   : > { %6346 = vmatprep.subr.msk.bf16.mxu1 %vm719_vm2, %v7988_v9 }
 0x55c   : > { %1403 = vadd.xlane.f32.xlu1 %v7787_v45  ;;  %v2099_v45 = vpop.permute.xlu0 %2098 }
 0x55d   : > { %v8036_v63 = vpop.eup %6622 }
 0x55e   : > { %v8038_v40 = vpop.eup %6624  ;;  %v1905_v52 = vpack.c.bf16 %v8036_v63, %v8029_v59 }
 0x55f   : > { %v1906_v44 = vpack.c.bf16 %v8031_v48, %v8038_v40 }
 0x560   : > { %1407 = vadd.xlane.f32.xlu1 %v7795_v27  ;;  %6007 = vmatprep.mubr.bf16.mxu1 %v1905_v52  ;;  %v2141_v27 = vsel %vm719_vm2, %v2099_v45, 0 }
 0x561   : > { %6008 = vmatmul.mubr.bf16.gmra.mxu1 %v1906_v44 }
 0x562   : > { %6022 = vmatpush3.bf16.xpose.msra.mxu1 %v2147_v7 }
 0x563   : > { %6347 = vmatprep.subr.msk.bf16.mxu1 %vm719_vm2, %v2101_v43 }
 0x564   : > { %1873 = vadd.xlane.f32.xlu1 %v6609_v61 }
 0x568   : > { %1869 = vadd.xlane.f32.xlu1 %v6603_v22 }
 0x56a   : > { %6024 = vmatpush3.bf16.xpose.msra.mxu1 %v2144_v18 }
 0x56b   : > { %6348 = vmatprep.subr.msk.bf16.mxu1 %vm719_vm2, %v2099_v45 }
 0x56e   : > { %v1818_v2 = vpop.xlane.xlu0 %1817 }
 0x56f   : > { %v1835_v26 = vsub.f32 %v7954_v49, %v1818_v2 }
 0x571   : > { %v1865_v35 = vmul.f32 1.442695, %v1835_v26 }
 0x572   : > { %v1814_v31 = vpop.xlane.xlu0 %1813  ;;  %6026 = vmatpush3.bf16.xpose.msra.mxu1 %v2141_v27 }
 0x573   : > { %v1833_v9 = vsub.f32 %v7957_v13, %v1814_v31  ;;  %v10272_v31 = vmov 0  }
 0x575   : > { %v1861_v46 = vmul.f32 1.442695, %v1833_v9 }
 0x576   : > { %v1820_v25 = vpop.xlane.xlu0 %1819 }
 0x577   : > { %v1836_v22 = vsub.f32 %v7960_v62, %v1820_v25  ;;  %6626 = vpow2.f32 %v1861_v46 }
 0x579   : > { %v1867_v61 = vmul.f32 1.442695, %v1836_v22 }
 0x57a   : > { %v2097_v23 = vpop.permute.xlu0 %2096 }
 0x57b   : > { %6349 = vmatprep.subr.msk.bf16.mxu1 %vm719_vm2, %v2097_v23  ;;  %v2138_v16 = vsel %vm719_vm2, %v2097_v23, 0  ;;  %6628 = vpow2.f32 %v1867_v61 }
 0x57c   : > { %6028 = vmatpush3.bf16.xpose.msra.mxu1 %v2138_v16 }
 0x57e   : > { %v2079_v15 = vpop.permute.xlu0 %2078 }
 0x580   : > { %v1816_v24 = vpop.xlane.xlu1 %1815 }
 0x581   : > { %v1834_v11 = vsub.f32 %v7963_v37, %v1816_v24 }
 0x582   : > { %v2083_v62 = vpop.permute.xlu0 %2082 }
 0x583   : > { %v1863_v50 = vmul.f32 1.442695, %v1834_v11 }
 0x584   : > { %v2095_v13 = vpop.permute.xlu1 %2094  ;;  %v8059_v28 = vpop.eup %6626 }
 0x585   : > { %6630 = vpow2.f32 %v1863_v50  ;;  %6350 = vmatprep.subr.msk.bf16.mxu1 %vm719_vm2, %v2095_v13  ;;  %v2135_v58 = vsel %vm719_vm2, %v2095_v13, 0 }
 0x586   : > { %6632 = vpow2.f32 %v1865_v35  ;;  %6030 = vmatpush3.bf16.xpose.msra.mxu1 %v2135_v58  ;;  %v2087_v32 = vpop.permute.xlu0 %2086 }
 0x588   : > { %v2081_v49 = vpop.permute.xlu1 %2080  ;;  %v8061_v17 = vpop.eup %6628 }
 0x58a   : > { %v2091_v30 = vpop.permute.xlu0 %2090 }
 0x58c   : > { %v2085_v33 = vpop.permute.xlu1 %2084 }
 0x58e   : > { %v2388_v44 = vpop.permute.xlu0 %2387 }
 0x590   : > { %v2089_v37 = vpop.permute.xlu1 %2088 }
 0x592   : > { %v8063_v19 = vpop.eup %6630  ;;  %v2380_v18 = vpop.permute.xlu0 %2379 }
 0x593   : > { %v8065_v12 = vpop.eup %6632  ;;  %v1907_v47 = vpack.c.bf16 %v8063_v19, %v8059_v28 }
 0x594   : > { %v2093_v56 = vpop.permute.xlu1 %2092  ;;  %v1908_v36 = vpack.c.bf16 %v8061_v17, %v8065_v12 }
 0x595   : > { %6011 = vmatprep.mubr.bf16.mxu1 %v1907_v47 }
 0x596   : > { %6012 = vmatmul.mubr.bf16.gmra.mxu1 %v1908_v36 }
 0x597   : > { %6031 = vmatprep.mubr.msk.bf16.mxu1 %vm719_vm2, %v2079_v15 }
 0x598   : > { %v2390_v52 = vpop.permute.xlu1 %2389 }
 0x599   : > { %6047 = vmatprep.subr.bf16.mxu0 %v2390_v52 }
 0x59a   : > { %6048 = vmatpush3.bf16.msra.mxu0 %v2390_v52 }
 0x59b   : > { %6049 = vmatprep.subr.bf16.mxu0 %v2388_v44 }
 0x59c   : > { %v2386_v7 = vpop.permute.xlu1 %2385 }
 0x59e   : > { %6032 = vmatmul.mubr.msk.bf16.vlgmr.msra.gmra.mxu1 %vm719_vm2, %v2081_v49  ;;  %6050 = vmatpush3.bf16.msra.mxu0 %v2388_v44 }
 0x59f   : > { %6035 = vmatprep.mubr.msk.bf16.mxu1 %vm719_vm2, %v2083_v62  ;;  %6051 = vmatprep.subr.bf16.mxu0 %v2386_v7 }
 0x5a0   : > { %v2384_v43 = vpop.permute.xlu1 %2383 }
 0x5a2   : > { %6052 = vmatpush3.bf16.msra.mxu0 %v2386_v7 }
 0x5a3   : > { %6053 = vmatprep.subr.bf16.mxu0 %v2384_v43 }
 0x5a4   : > { %v2382_v45 = vpop.permute.xlu1 %2381 }
 0x5a6   : > { %6036 = vmatmul.mubr.msk.bf16.gmra.mxu1 %vm719_vm2, %v2085_v33  ;;  %6054 = vmatpush3.bf16.msra.mxu0 %v2384_v43 }
 0x5a7   : > { %6039 = vmatprep.mubr.msk.bf16.mxu1 %vm719_vm2, %v2087_v32  ;;  %6055 = vmatprep.subr.bf16.mxu0 %v2382_v45 }
 0x5a8   : > { %v2378_v2 = vpop.permute.xlu1 %2377 }
 0x5aa   : > { %6056 = vmatpush3.bf16.msra.mxu0 %v2382_v45 }
 0x5ab   : > { %6057 = vmatprep.subr.bf16.mxu0 %v2380_v18 }
 0x5ac   : > { %v2376_v27 = vpop.permute.xlu1 %2375 }
 0x5ae   : > { %6040 = vmatmul.mubr.msk.bf16.gmra.mxu1 %vm719_vm2, %v2089_v37  ;;  %6058 = vmatpush3.bf16.msra.mxu0 %v2380_v18 }
 0x5af   : > { %6043 = vmatprep.mubr.msk.bf16.mxu1 %vm719_vm2, %v2091_v30  ;;  %6059 = vmatprep.subr.bf16.mxu0 %v2378_v2 }
 0x5b2   : > { %6060 = vmatpush3.bf16.msra.mxu0 %v2378_v2 }
 0x5b3   : > { %6061 = vmatprep.subr.bf16.mxu0 %v2376_v27 }
 0x5b6   : > { %6044 = vmatmul.mubr.msk.bf16.gmra.mxu1 %vm719_vm2, %v2093_v56  ;;  %6062 = vmatpush3.bf16.msra.mxu0 %v2376_v27 }
 0x5b7   : > { %3336 = vmatprep.mubr.bf16.mxu1 %v10272_v31 }
 0x5c3   : > { %v8080_v25 = vpop.xlane.xlu0 %1397 }
 0x5c7   : > { %v8084_v9 = vpop.xlane.xlu0 %1401 }
 0x5cb   : > { %v8088_v22 = vpop.xlane.xlu0 %1405 }
 0x5cf   : > { %v8092_v46 = vpop.xlane.xlu0 %1409 }
 0x5d3   : > { %v1876_v24 = vpop.xlane.xlu0 %1875 }
 0x5d4   : > { %6634 = vrcp.f32 %v1876_v24 }
 0x5d7   : > { %v1872_v35 = vpop.xlane.xlu0 %1871 }
 0x5dd   : > { %v8082_v23 = vpop.xlane.xlu1 %1395 }
 0x5e1   : > { %v8086_v16 = vpop.xlane.xlu1 %1399  ;;  %v6635_v58 = vpop.eup %6634 }
 0x5e5   : > { %v8090_v26 = vpop.xlane.xlu1 %1403 }
 0x5e9   : > { %v8094_v61 = vpop.xlane.xlu1 %1407 }
 0x5ed   : > { %v1874_v11 = vpop.xlane.xlu1 %1873 }
 0x5ee   : > { %6636 = vrcp.f32 %v1874_v11 }
 0x5ef   : > { %6638 = vrcp.f32 %v1872_v35 }
 0x5f1   : > { %v1870_v15 = vpop.xlane.xlu1 %1869 }
 0x5f2   : > { %6640 = vrcp.f32 %v1870_v15 }
 0x5f3   : > { %6642 = vrcp.f32 %v8082_v23 }
 0x5f4   : > { %6644 = vrcp.f32 %v8080_v25 }
 0x5f5   : > { %6646 = vrcp.f32 %v8086_v16 }
 0x5f6   : > { %6648 = vrcp.f32 %v8084_v9 }
 0x5f7   : > { %6650 = vrcp.f32 %v8090_v26 }
 0x5f8   : > { %6652 = vrcp.f32 %v8088_v22 }
 0x5fb   : > { %v6637_v62 = vpop.eup %6636 }
 0x5fc   : > { %v6639_v33 = vpop.eup %6638 }
 0x5ff   : > { %v6641_v47 = vpop.eup %6640 }
 0x609   : > { %v6001_v50 = vpop.f32.mrf.mxu1 }
 0x60a   : > { %v8096_v32 = vmul.f32 %v6637_v62, %v6001_v50 }
 0x60b   : > { %v1967_v13 = vpop.f32.mrf.mxu1 }
 0x60c   : > { %v8100_v56 = vmul.f32 %v6641_v47, %v1967_v13 }
 0x60d   : > { %v6002_v49 = vpop.f32.mrf.mxu1 }
 0x60e   : > { %v8098_v37 = vmul.f32 %v6635_v58, %v6002_v49 }
 0x60f   : > { %v1970_v30 = vpop.f32.mrf.mxu1 }
 0x610   : > { %v8104_v52 = vmul.f32 %v6639_v33, %v1970_v30 }
 0x611   : > { %v8108_v7 = vpop.f32.mrf.mxu1 }
 0x613   : > { %v8110_v43 = vpop.f32.mrf.mxu1 }
 0x615   : > { %v8112_v45 = vpop.f32.mrf.mxu1 }
 0x617   : > { %v8114_v18 = vpop.f32.mrf.mxu1 }
 0x621   : > { %v8116_v2 = vpop.f32.mrf.mxu1 }
 0x623   : > { %v8118_v27 = vpop.f32.mrf.mxu1 }
 0x625   : > { %v8120_v24 = vpop.f32.mrf.mxu1 }
 0x627   : > { %v8122_v11 = vpop.f32.mrf.mxu1 }
 0x656   : > { %v8124_v35 = vpop.f32.mrf.mxu1 }
 0x658   : > { %v8126_v15 = vpop.f32.mrf.mxu1 }
 0x65a   : > { %v8128_v50 = vpop.f32.mrf.mxu1 }
 0x65c   : > { %v8130_v13 = vpop.f32.mrf.mxu1 }
 0x65e   : > { %v8132_v58 = vpop.f32.mrf.mxu1 }
 0x65f   : > { %2259 = vmax.xlane.f32.xlu0 %v8132_v58 }
 0x660   : > { %v8135_v62 = vpop.f32.mrf.mxu1 }
 0x662   : > { %v8137_v49 = vpop.f32.mrf.mxu1 }
 0x663   : > { %2255 = vmax.xlane.f32.xlu0 %v8135_v62 }
 0x664   : > { %v8140_v33 = vpop.f32.mrf.mxu1 }
 0x665   : > { %2257 = vmax.xlane.f32.xlu1 %v8140_v33 }
 0x666   : > { %v8144_v47 = vpop.f32.mrf.mxu1 }
 0x667   : > { %2261 = vmax.xlane.f32.xlu0 %v8137_v49 }
 0x668   : > { %v8148_v30 = vpop.f32.mrf.mxu1 }
 0x669   : > { %1877 = vadd.xlane.f32.xlu1 %v8004_v39 }
 0x66a   : > { %v8152_v36 = vpop.f32.mrf.mxu1 }
 0x66b   : > { %1879 = vadd.xlane.f32.xlu0 %v8008_v10 }
 0x66c   : > { %v8156_v44 = vpop.f32.mrf.mxu1 }
 0x66d   : > { %1881 = vadd.xlane.f32.xlu1 %v8010_v20 }
 0x66e   : > { %v8160_v39 = vpop.f32.mrf.mxu1 }
 0x66f   : > { %1883 = vadd.xlane.f32.xlu0 %v8017_v6 }
 0x670   : > { %v8164_v10 = vpop.f32.mrf.mxu1 }
 0x671   : > { %1411 = vadd.xlane.f32.xlu1 %v7805_v41 }
 0x672   : > { %v8168_v41 = vpop.f32.mrf.mxu1 }
 0x673   : > { %2267 = vmax.xlane.f32.xlu0 %v8144_v47 }
 0x674   : > { %v8172_v20 = vpop.f32.mrf.mxu1 }
 0x675   : > { %2265 = vmax.xlane.f32.xlu1 %v8156_v44 }
 0x677   : > { %2263 = vmax.xlane.f32.xlu0 %v8148_v30 }
 0x679   : > { %1415 = vadd.xlane.f32.xlu1 %v7815_v4  ;;  %v8176_v4 = vpop.f32.mrf.mxu1 }
 0x67b   : > { %2269 = vmax.xlane.f32.xlu0 %v8152_v36  ;;  %v8180_v6 = vpop.f32.mrf.mxu1 }
 0x67d   : > { %1885 = vadd.xlane.f32.xlu1 %v8029_v59 }
 0x67f   : > { %1413 = vadd.xlane.f32.xlu0 %v7811_v57  ;;  %v8187_v57 = vpop.f32.mrf.mxu1 }
 0x681   : > { %1889 = vadd.xlane.f32.xlu1 %v8038_v40  ;;  %v8191_v59 = vpop.f32.mrf.mxu1 }
 0x683   : > { %2275 = vmax.xlane.f32.xlu0 %v8160_v39 }
 0x685   : > { %2273 = vmax.xlane.f32.xlu1 %v8172_v20 }
 0x687   : > { %2271 = vmax.xlane.f32.xlu0 %v8164_v10 }
 0x689   : > { %2283 = vmax.xlane.f32.xlu1 %v8176_v4 }
 0x68b   : > { %2277 = vmax.xlane.f32.xlu0 %v8168_v41 }
 0x68d   : > { %2279 = vmax.xlane.f32.xlu1 %v8180_v6 }
 0x68f   : > { %1417 = vadd.xlane.f32.xlu0 %v7809_v53 }
 0x691   : > { %1419 = vadd.xlane.f32.xlu1 %v7835_v29 }
 0x693   : > { %1887 = vadd.xlane.f32.xlu0 %v8036_v63 }
 0x695   : > { %1423 = vadd.xlane.f32.xlu1 %v7841_v21 }
 0x697   : > { %2285 = vmax.xlane.f32.xlu0 %v8187_v57 }
 0x699   : > { %1893 = vadd.xlane.f32.xlu1 %v8059_v28 }
 0x69b   : > { %2281 = vmax.xlane.f32.xlu0 %v8191_v59 }
 0x69d   : > { %1897 = vadd.xlane.f32.xlu1 %v8065_v12 }
 0x69f   : > { %1891 = vadd.xlane.f32.xlu0 %v8031_v48  ;;  %v10276_v48 = vld [vmem:[#allocation26_spill] sm:$0xff] }
 0x6a1   : > { %945 = vadd.xlane.f32.xlu1 %v7645_v38  ;;  %v6643_v38 = vpop.eup %6642 }
 0x6a2   : > { %v6645_v53 = vpop.eup %6644 }
 0x6a3   : > { %1421 = vadd.xlane.f32.xlu0 %v7839_v42  ;;  %v1597_v29 = vmul.f32 %v6645_v53, %v7897_v14  ;;  %v10275_v42 = vld [vmem:[#allocation34_spill] sm:$0xff] }
 0x6a5   : > { %949 = vadd.xlane.f32.xlu1 %v7651_v51  ;;  %v1596_v51 = vmul.f32 %v6643_v38, %v7893_v5 }
 0x6a7   : > { %1425 = vadd.xlane.f32.xlu0 %v7837_v54 }
 0x6a9   : > { %953 = vadd.xlane.f32.xlu1 %v7675_v1  ;;  %v6374_v1 = vpack.i.bf16 %v1597_v29, %v1596_v51 }
 0x6ab   : > { %1895 = vadd.xlane.f32.xlu0 %v8063_v19 }
 0x6ad   : > { %957 = vadd.xlane.f32.xlu1 %v7688_v8 }
 0x6af   : > { %1899 = vadd.xlane.f32.xlu0 %v8061_v17 }
 0x6b3   : > { %947 = vadd.xlane.f32.xlu0 %v7649_v60  ;;  %v10273_v60 = vpack.i.bf16 %v8104_v52, %v8100_v56  ;;  %v10278_v56 = vld [vmem:[#allocation36_spill] sm:$0xff] }
 0x6b7   : > { %951 = vadd.xlane.f32.xlu0 %v7656_v3  ;;  %v10274_v3 = vpack.i.bf16 %v8098_v37, %v8096_v32  ;;  %v10277_v37 = vld [vmem:[#allocation25_spill] sm:$0xff] }
 0x6bb   : > { %955 = vadd.xlane.f32.xlu0 %v7678_v34  ;;  %v6647_v34 = vpop.eup %6646 }
 0x6bc   : > { %v6649_v8 = vpop.eup %6648  ;;  %v1598_v54 = vmul.f32 %v6647_v34, %v7891_v0 }
 0x6bd   : > { %v1599_v21 = vmul.f32 %v6649_v8, %v10275_v42  ;;  %v6651_v9 = vpop.eup %6650 }
 0x6be   : > { %6375 = vrot.lane.b32.xlu1 %v6374_v1, %s7015_s23  ;;  %v6653_v26 = vpop.eup %6652  ;;  %v1600_v52 = vmul.f32 %v6651_v9, %v10278_v56  ;;  %v10281_v1 = vld [vmem:[#allocation24_spill] sm:$0xff]  ;;  %v10282_v56 = vld [vmem:[#allocation35_spill] sm:$0xff] }
 0x6bf   : > { %959 = vadd.xlane.f32.xlu0 %v7673_v55  ;;  %v6379_v5 = vpack.i.bf16 %v1599_v21, %v1598_v54 }
 0x6c2   : > { %6385 = vrot.lane.b32.xlu1 %v10273_v60, %s7013_s11 }
 0x6c6   : > { %6390 = vrot.lane.b32.xlu1 %v10274_v3, %s7013_s11 }
 0x6d5   : > { %6380 = vrot.lane.b32.xlu0 %v6379_v5, %s7015_s23 }
 0x6e8   : > { %v2260_v55 = vpop.xlane.xlu0 %2259 }
 0x6e9   : > { %v2289_v14 = vsub.f32 %v8132_v58, %v2260_v55 }
 0x6ea   : > { %963 = vadd.xlane.f32.xlu1 %v10276_v48 }
 0x6eb   : > { %v2307_v40 = vmul.f32 1.442695, %v2289_v14 }
 0x6ec   : > { %v2256_v63 = vpop.xlane.xlu0 %2255 }
 0x6ed   : > { %v2287_v28 = vsub.f32 %v8135_v62, %v2256_v63  ;;  %6654 = vpow2.f32 %v2307_v40  ;;  %v10279_v62 = vld [vmem:[#allocation38_spill] sm:$0xff] }
 0x6ee   : > { %v2258_v17 = vpop.xlane.xlu1 %2257 }
 0x6ef   : > { %v2303_v0 = vmul.f32 1.442695, %v2287_v28  ;;  %v2288_v19 = vsub.f32 %v8140_v33, %v2258_v17  ;;  %v1601_v33 = vmul.f32 %v6653_v26, %v10279_v62 }
 0x6f0   : > { %v2262_v12 = vpop.xlane.xlu0 %2261 }
 0x6f1   : > { %v2305_v25 = vmul.f32 1.442695, %v2288_v19  ;;  %v2290_v23 = vsub.f32 %v8137_v49, %v2262_v12  ;;  %6656 = vpow2.f32 %v2303_v0  ;;  %v10280_v49 = vld [vmem:[#allocation27_spill] sm:$0xff]  ;;  %v6394_v53 = vpack.i.bf16 %v1601_v33, %v1600_v52 }
 0x6f2   : > { %v1878_v16 = vpop.xlane.xlu1 %1877 }
 0x6f3   : > { %6658 = vpow2.f32 %v2305_v25  ;;  %v2309_v22 = vmul.f32 1.442695, %v2290_v23 }
 0x6f4   : > { %6660 = vrcp.f32 %v1878_v16  ;;  %v1880_v32 = vpop.xlane.xlu0 %1879  ;;  %961 = vadd.xlane.f32.xlu0 %v10277_v37 }
 0x6f5   : > { %6662 = vpow2.f32 %v2309_v22 }
 0x6f6   : > { %6664 = vrcp.f32 %v1880_v32  ;;  %v1882_v58 = vpop.xlane.xlu1 %1881 }
 0x6f7   : > { %6666 = vrcp.f32 %v1882_v58 }
 0x6f8   : > { %v1884_v38 = vpop.xlane.xlu0 %1883  ;;  %965 = vadd.xlane.f32.xlu0 %v10280_v49 }
 0x6f9   : > { %6668 = vrcp.f32 %v1884_v38 }
 0x6fa   : > { %v8237_v51 = vpop.xlane.xlu1 %1411  ;;  %6670 = vrcp.f32 %v8094_v61  ;;  %v8242_v60 = vpop.eup %6654 }
 0x6fb   : > { %6395 = vrot.lane.b32.xlu1 %v6394_v53, %s7015_s23  ;;  %6672 = vrcp.f32 %v8092_v46 }
 0x6fc   : > { %v2268_v29 = vpop.xlane.xlu0 %2267  ;;  %967 = vadd.xlane.f32.xlu0 %v10281_v1 }
 0x6fd   : > { %v2293_v42 = vsub.f32 %v8144_v47, %v2268_v29 }
 0x6fe   : > { %v2266_v3 = vpop.xlane.xlu1 %2265  ;;  %v8245_v34 = vpop.eup %6656 }
 0x6ff   : > { %v2292_v8 = vsub.f32 %v8156_v44, %v2266_v3  ;;  %v2315_v47 = vmul.f32 1.442695, %v2293_v42 }
 0x700   : > { %v8248_v54 = vpop.eup %6658  ;;  %v2264_v21 = vpop.xlane.xlu0 %2263 }
 0x701   : > { %v6661_v5 = vpop.eup %6660  ;;  %v2313_v55 = vmul.f32 1.442695, %v2292_v8  ;;  %v2291_v61 = vsub.f32 %v8148_v30, %v2264_v21  ;;  %v2367_v14 = vpack.c.bf16 %v8248_v54, %v8245_v34 }
 0x702   : > { %v8254_v48 = vpop.eup %6662  ;;  %v8256_v46 = vpop.xlane.xlu1 %1415  ;;  %v2066_v0 = vmul.f32 %v6661_v5, %v8110_v43 }
 0x703   : > { %v6665_v63 = vpop.eup %6664  ;;  %v2311_v40 = vmul.f32 1.442695, %v2291_v61  ;;  %6063 = vmatprep.mubr.bf16.mxu0 %v2367_v14  ;;  %v2368_v44 = vpack.c.bf16 %v8254_v48, %v8242_v60  ;;  %6674 = vpow2.f32 %v2313_v55 }
 0x704   : > { %v6667_v28 = vpop.eup %6666  ;;  %v2270_v17 = vpop.xlane.xlu0 %2269  ;;  %v2067_v30 = vmul.f32 %v6665_v63, %v8114_v18 }
 0x705   : > { %6676 = vpow2.f32 %v2311_v40  ;;  %v2294_v19 = vsub.f32 %v8152_v36, %v2270_v17  ;;  %6064 = vmatmul.mubr.bf16.vlgmr.msra.gmra.mxu0 %v2368_v44  ;;  %v2068_v16 = vmul.f32 %v6667_v28, %v8108_v7  ;;  %v10283_v7 = vld [vmem:[#allocation37_spill] sm:$0xff] }
 0x706   : > { %v6669_v12 = vpop.eup %6668  ;;  %v8263_v25 = vpop.xlane.xlu1 %1885  ;;  %v6404_v23 = vpack.i.bf16 %v2067_v30, %v2066_v0  ;;  %6678 = vpow2.f32 %v2315_v47 }
 0x707   : > { %v2317_v9 = vmul.f32 1.442695, %v2294_v19  ;;  %v2069_v22 = vmul.f32 %v6669_v12, %v8112_v45  ;;  %v6671_v43 = vpop.eup %6670 }
 0x708   : > { %6405 = vrot.lane.b32.xlu1 %v6404_v23, %s7013_s11  ;;  %v8268_v26 = vpop.xlane.xlu0 %1413  ;;  %v6673_v36 = vpop.eup %6672  ;;  %v1602_v52 = vmul.f32 %v6671_v43, %v10282_v56 }
 0x709   : > { %6680 = vpow2.f32 %v2317_v9  ;;  %v6409_v18 = vpack.i.bf16 %v2069_v22, %v2068_v16  ;;  %v1603_v62 = vmul.f32 %v6673_v36, %v10283_v7 }
 0x70a   : > { %v8270_v32 = vpop.xlane.xlu1 %1889 }
 0x70b   : > { %v6399_v49 = vpack.i.bf16 %v1603_v62, %v1602_v52 }
 0x70c   : > { %6410 = vrot.lane.b32.xlu1 %v6409_v18, %s7013_s11  ;;  %v2276_v37 = vpop.xlane.xlu0 %2275 }
 0x70d   : > { %v2297_v33 = vsub.f32 %v8160_v39, %v2276_v37 }
 0x70e   : > { %v2274_v58 = vpop.xlane.xlu1 %2273 }
 0x70f   : > { %v2296_v45 = vsub.f32 %v8172_v20, %v2274_v58  ;;  %v2323_v21 = vmul.f32 1.442695, %v2297_v33 }
 0x710   : > { %v2272_v38 = vpop.xlane.xlu0 %2271  ;;  %v6675_v53 = vpop.eup %6674 }
 0x711   : > { %v2321_v29 = vmul.f32 1.442695, %v2296_v45  ;;  %v2295_v1 = vsub.f32 %v8164_v10, %v2272_v38 }
 0x712   : > { %v6677_v3 = vpop.eup %6676  ;;  %6400 = vrot.lane.b32.xlu0 %v6399_v49, %s7015_s23  ;;  %v2284_v61 = vpop.xlane.xlu1 %2283 }
 0x713   : > { %v2319_v8 = vmul.f32 1.442695, %v2295_v1  ;;  %v2369_v42 = vpack.c.bf16 %v6675_v53, %v6677_v3  ;;  %6682 = vpow2.f32 %v2321_v29  ;;  %v6679_v55 = vpop.eup %6678  ;;  %v2301_v30 = vsub.f32 %v8176_v4, %v2284_v61  ;;  %v10284_v4 = vld [vmem:[#allocation29_spill] sm:$0xff] }
 0x714   : > { %v2278_v5 = vpop.xlane.xlu0 %2277 }
 0x715   : > { %6684 = vpow2.f32 %v2319_v8  ;;  %v2298_v20 = vsub.f32 %v8168_v41, %v2278_v5  ;;  %6067 = vmatprep.mubr.bf16.mxu0 %v2369_v42  ;;  %v2331_v18 = vmul.f32 1.442695, %v2301_v30 }
 0x716   : > { %v6681_v39 = vpop.eup %6680  ;;  %6686 = vpow2.f32 %v2323_v21  ;;  %v2280_v10 = vpop.xlane.xlu1 %2279 }
 0x717   : > { %v2325_v14 = vmul.f32 1.442695, %v2298_v20  ;;  %v2370_v63 = vpack.c.bf16 %v6681_v39, %v6679_v55  ;;  %v2299_v28 = vsub.f32 %v8180_v6, %v2280_v10 }
 0x718   : > { %v8280_v40 = vpop.xlane.xlu0 %1417 }
 0x719   : > { %6688 = vpow2.f32 %v2325_v14  ;;  %6068 = vmatmul.mubr.bf16.gmra.mxu0 %v2370_v63  ;;  %v2327_v19 = vmul.f32 1.442695, %v2299_v28  ;;  %v6506_v28 = vld [vmem:[%s7088_s19 + $0x18] sm:$0xff]  }
 0x71a   : > { %6079 = vmatprep.subr.bf16.mxu0 %v6506_v28 }
 0x71b   : > { %6690 = vpow2.f32 %v2327_v19  ;;  %6080 = vmatpush3.bf16.msra.mxu0 %v6506_v28 }
 0x71c   : > { %v8282_v44 = vpop.xlane.xlu0 %1887 }
 0x720   : > { %v2286_v47 = vpop.xlane.xlu0 %2285  ;;  %v6683_v17 = vpop.eup %6682 }
 0x721   : > { %v2302_v0 = vsub.f32 %v8187_v57, %v2286_v47  ;;  %v6507_v47 = vld [vmem:[%s7088_s19 + $0x10] sm:$0xff]  }
 0x722   : > { %v6685_v41 = vpop.eup %6684  ;;  %6081 = vmatprep.subr.bf16.mxu0 %v6507_v47 }
 0x723   : > { %v2371_v12 = vpack.c.bf16 %v6683_v17, %v6685_v41  ;;  %v2333_v23 = vmul.f32 1.442695, %v2302_v0  ;;  %v6687_v16 = vpop.eup %6686  ;;  %6082 = vmatpush3.bf16.msra.mxu0 %v6507_v47 }
 0x724   : > { %v2282_v9 = vpop.xlane.xlu0 %2281 }
 0x725   : > { %v2300_v22 = vsub.f32 %v8191_v59, %v2282_v9  ;;  %6071 = vmatprep.mubr.bf16.mxu0 %v2371_v12  ;;  %6692 = vpow2.f32 %v2333_v23 }
 0x726   : > { %v6689_v43 = vpop.eup %6688 }
 0x727   : > { %v2329_v36 = vmul.f32 1.442695, %v2300_v22  ;;  %v2372_v6 = vpack.c.bf16 %v6689_v43, %v6687_v16 }
 0x728   : > { %v6691_v57 = vpop.eup %6690 }
 0x729   : > { %6694 = vpow2.f32 %v2329_v36  ;;  %6072 = vmatmul.mubr.bf16.gmra.mxu0 %v2372_v6 }
 0x72a   : > { %6696 = vpow2.f32 %v2331_v18  ;;  %v6508_v18 = vld [vmem:[%s7088_s19 + $0x8] sm:$0xff]  }
 0x72b   : > { %6083 = vmatprep.subr.bf16.mxu0 %v6508_v18 }
 0x72c   : > { %6084 = vmatpush3.bf16.msra.mxu0 %v6508_v18 }
 0x730   : > { %2339 = vadd.xlane.f32.xlu1 %v8242_v60  ;;  %v10285_v60 = vld [vmem:[#allocation31_spill] sm:$0xff] }
 0x731   : > { %969 = vadd.xlane.f32.xlu0 %v10284_v4 }
 0x732   : > { %v6693_v37 = vpop.eup %6692 }
 0x734   : > { %2335 = vadd.xlane.f32.xlu1 %v8245_v34  ;;  %v8294_v34 = vpop.xlane.xlu1 %1419 }
 0x735   : > { %2341 = vadd.xlane.f32.xlu0 %v8254_v48 }
 0x736   : > { %v6695_v59 = vpop.eup %6694 }
 0x737   : > { %v6697_v56 = vpop.eup %6696  ;;  %v2373_v52 = vpack.c.bf16 %v6695_v59, %v6691_v57 }
 0x738   : > { %2347 = vadd.xlane.f32.xlu1 %v6679_v55  ;;  %v2374_v58 = vpack.c.bf16 %v6693_v37, %v6697_v56  ;;  %v8296_v48 = vpop.xlane.xlu1 %1423 }
 0x739   : > { %2337 = vadd.xlane.f32.xlu0 %v8248_v54  ;;  %6075 = vmatprep.mubr.bf16.mxu0 %v2373_v52  ;;  %v8298_v54 = vpop.xlane.xlu0 %1891 }
 0x73a   : > { %6076 = vmatmul.mubr.bf16.gmra.mxu0 %v2374_v58 }
 0x73c   : > { %2343 = vadd.xlane.f32.xlu1 %v6677_v3  ;;  %v8300_v7 = vpop.xlane.xlu1 %1893 }
 0x73d   : > { %2349 = vadd.xlane.f32.xlu0 %v6681_v39  ;;  %v8302_v62 = vpop.xlane.xlu0 %1421 }
 0x740   : > { %2355 = vadd.xlane.f32.xlu1 %v6687_v16  ;;  %v8304_v45 = vpop.xlane.xlu1 %1897 }
 0x741   : > { %2345 = vadd.xlane.f32.xlu0 %v6675_v53  ;;  %v8306_v33 = vpop.xlane.xlu0 %1425 }
 0x744   : > { %2351 = vadd.xlane.f32.xlu1 %v6685_v41  ;;  %v8308_v38 = vpop.xlane.xlu1 %945 }
 0x745   : > { %2357 = vadd.xlane.f32.xlu0 %v6689_v43  ;;  %v8310_v49 = vpop.xlane.xlu0 %1895 }
 0x748   : > { %2363 = vadd.xlane.f32.xlu1 %v6697_v56  ;;  %v8312_v53 = vpop.xlane.xlu1 %949 }
 0x749   : > { %2353 = vadd.xlane.f32.xlu0 %v6683_v17  ;;  %v8314_v29 = vpop.xlane.xlu0 %1899 }
 0x74c   : > { %2359 = vadd.xlane.f32.xlu1 %v6691_v57  ;;  %v8316_v1 = vpop.xlane.xlu1 %953 }
 0x74d   : > { %2365 = vadd.xlane.f32.xlu0 %v6693_v37  ;;  %v8318_v3 = vpop.xlane.xlu0 %947  ;;  %v6509_v37 = vld [vmem:[%s7088_s19] sm:$0xff]  }
 0x74e   : > { %6085 = vmatprep.subr.bf16.mxu0 %v6509_v37 }
 0x74f   : > { %6086 = vmatpush3.bf16.msra.mxu0 %v6509_v37 }
 0x750   : > { %v8320_v8 = vpop.xlane.xlu1 %957 }
 0x751   : > { %2361 = vadd.xlane.f32.xlu0 %v6695_v59  ;;  %v8322_v42 = vpop.xlane.xlu0 %951 }
 0x754   : > { %v8324_v21 = vpop.permute.xlu1 %6375 }
 0x755   : > { %973 = vadd.xlane.f32.xlu0 %v10285_v60  ;;  %v8326_v5 = vpop.xlane.xlu0 %955 }
 0x758   : > { %v8328_v55 = vpop.permute.xlu1 %6385 }
 0x759   : > { %v8330_v20 = vpop.xlane.xlu0 %959 }
 0x75c   : > { %v8332_v39 = vpop.permute.xlu1 %6390 }
 0x75d   : > { %v8334_v61 = vpop.permute.xlu0 %6380 }
 0x773   : > { %v8336_v14 = vpop.xlane.xlu1 %963 }
 0x777   : > { %v8340_v10 = vpop.permute.xlu1 %6395 }
 0x77b   : > { %v8346_v0 = vpop.permute.xlu1 %6405 }
 0x77d   : > { %v8338_v63 = vpop.xlane.xlu0 %961 }
 0x77f   : > { %v8350_v30 = vpop.permute.xlu1 %6410 }
 0x780   : > { %10286 = vst [vmem:[#allocation9_spill] sm:$0xff] %v8350_v30 }
 0x781   : > { %v8344_v17 = vpop.xlane.xlu0 %965 }
 0x785   : > { %v8348_v41 = vpop.xlane.xlu0 %967 }
 0x789   : > { %v8352_v19 = vpop.permute.xlu0 %6400 }
 0x7b9   : > { %v2340_v12 = vpop.xlane.xlu1 %2339 }
 0x7ba   : > { %v8354_v23 = vpop.xlane.xlu0 %969  ;;  %6698 = vrcp.f32 %v2340_v12 }
 0x7bb   : > { %10287 = vst [vmem:[#allocation10_spill] sm:$0xff] %v8354_v23 }
 0x7bd   : > { %v2336_v9 = vpop.xlane.xlu1 %2335 }
 0x7be   : > { %v2342_v16 = vpop.xlane.xlu0 %2341 }
 0x7bf   : > { %6700 = vrcp.f32 %v2342_v16 }
 0x7c0   : > { %6702 = vrcp.f32 %v2336_v9 }
 0x7c1   : > { %v2348_v36 = vpop.xlane.xlu1 %2347 }
 0x7c2   : > { %v2338_v22 = vpop.xlane.xlu0 %2337 }
 0x7c3   : > { %6704 = vrcp.f32 %v2338_v22 }
 0x7c5   : > { %v6065_v43 = vpop.f32.mrf.mxu0  ;;  %v2344_v28 = vpop.xlane.xlu1 %2343 }
 0x7c6   : > { %v2350_v4 = vpop.xlane.xlu0 %2349  ;;  %6706 = vrcp.f32 %v2344_v28 }
 0x7c7   : > { %v2433_v6 = vpop.f32.mrf.mxu0  ;;  %v6699_v57 = vpop.eup %6698 }
 0x7c8   : > { %v2530_v52 = vmul.f32 %v6699_v57, %v6065_v43 }
 0x7c9   : > { %v6066_v56 = vpop.f32.mrf.mxu0 }
 0x7ca   : > { %v2346_v12 = vpop.xlane.xlu0 %2345 }
 0x7cb   : > { %v2436_v16 = vpop.f32.mrf.mxu0  ;;  %6708 = vrcp.f32 %v2346_v12 }
 0x7cc   : > { %v6701_v59 = vpop.eup %6700  ;;  %6710 = vrcp.f32 %v2350_v4 }
 0x7cd   : > { %v2531_v58 = vmul.f32 %v6701_v59, %v6066_v56  ;;  %v6703_v60 = vpop.eup %6702  ;;  %6712 = vrcp.f32 %v8268_v26  ;;  %v2356_v26 = vpop.xlane.xlu1 %2355 }
 0x7ce   : > { %v2528_v22 = vmul.f32 %v6703_v60, %v2433_v6  ;;  %6714 = vrcp.f32 %v2348_v36  ;;  %v10288_v6 = vld [vmem:[#allocation30_spill] sm:$0xff] }
 0x7cf   : > { %v6414_v47 = vpack.i.bf16 %v2531_v58, %v2530_v52  ;;  %6716 = vrcp.f32 %v8237_v51 }
 0x7d0   : > { %v6705_v9 = vpop.eup %6704  ;;  %6718 = vrcp.f32 %v8282_v44  ;;  %v10289_v44 = vld [vmem:[#allocation28_spill] sm:$0xff] }
 0x7d1   : > { %v2529_v31 = vmul.f32 %v6705_v9, %v2436_v16  ;;  %6415 = vrot.lane.b32.xlu1 %v6414_v47, %s7011_s18  ;;  %6720 = vrcp.f32 %v8263_v25 }
 0x7d2   : > { %6722 = vrcp.f32 %v8298_v54  ;;  %v10290_v54 = vld [vmem:[#allocation42_spill] sm:$0xff] }
 0x7d3   : > { %v6419_v18 = vpack.i.bf16 %v2529_v31, %v2528_v22  ;;  %v6707_v57 = vpop.eup %6706  ;;  %6724 = vrcp.f32 %v8270_v32 }
 0x7d4   : > { %6726 = vrcp.f32 %v8280_v40  ;;  %v10291_v40 = vld [vmem:[#allocation40_spill] sm:$0xff] }
 0x7d5   : > { %6420 = vrot.lane.b32.xlu0 %v6419_v18, %s7011_s18 }
 0x7d8   : > { %v6709_v37 = vpop.eup %6708 }
 0x7d9   : > { %v6069_v23 = vpop.f32.mrf.mxu0  ;;  %v6711_v31 = vpop.eup %6710 }
 0x7da   : > { %v6713_v60 = vpop.eup %6712 }
 0x7db   : > { %v2449_v30 = vpop.f32.mrf.mxu0  ;;  %v6715_v4 = vpop.eup %6714  ;;  %v1605_v32 = vmul.f32 %v6713_v60, %v10290_v54 }
 0x7dc   : > { %v2532_v56 = vmul.f32 %v6707_v57, %v2449_v30  ;;  %v2358_v30 = vpop.xlane.xlu0 %2357  ;;  %v2534_v36 = vmul.f32 %v6715_v4, %v6069_v23  ;;  %v6717_v47 = vpop.eup %6716 }
 0x7dd   : > { %v6070_v43 = vpop.f32.mrf.mxu0  ;;  %6728 = vrcp.f32 %v2358_v30  ;;  %v6719_v12 = vpop.eup %6718  ;;  %v1604_v23 = vmul.f32 %v6717_v47, %v10291_v40  ;;  %v10295_v40 = vld [vmem:[#allocation43_spill] sm:$0xff] }
 0x7de   : > { %v2535_v28 = vmul.f32 %v6711_v31, %v6070_v43  ;;  %6730 = vrcp.f32 %v8306_v33  ;;  %v6721_v16 = vpop.eup %6720  ;;  %v2352_v33 = vpop.xlane.xlu1 %2351  ;;  %v2071_v43 = vmul.f32 %v6719_v12, %v8122_v11  ;;  %v10294_v12 = vld [vmem:[#allocation39_spill] sm:$0xff] }
 0x7df   : > { %v2452_v59 = vpop.f32.mrf.mxu0  ;;  %6732 = vrcp.f32 %v2356_v26  ;;  %v6434_v18 = vpack.i.bf16 %v1605_v32, %v1604_v23  ;;  %v6723_v57 = vpop.eup %6722  ;;  %v10292_v26 = vld [vmem:[#allocation41_spill] sm:$0xff] }
 0x7e0   : > { %v2533_v52 = vmul.f32 %v6709_v37, %v2452_v59  ;;  %v6424_v25 = vpack.i.bf16 %v2535_v28, %v2534_v36  ;;  %6734 = vrcp.f32 %v8256_v46  ;;  %v2354_v9 = vpop.xlane.xlu0 %2353  ;;  %v2070_v46 = vmul.f32 %v6721_v16, %v8118_v27 }
 0x7e1   : > { %6736 = vrcp.f32 %v8296_v48  ;;  %v6725_v48 = vpop.eup %6724 }
 0x7e2   : > { %v6429_v58 = vpack.i.bf16 %v2533_v52, %v2532_v56  ;;  %6738 = vrcp.f32 %v8304_v45  ;;  %v6444_v45 = vpack.i.bf16 %v2071_v43, %v2070_v46  ;;  %v2073_v56 = vmul.f32 %v6723_v57, %v8120_v24  ;;  %v6727_v52 = vpop.eup %6726 }
 0x7e3   : > { %6740 = vrcp.f32 %v8314_v29  ;;  %v2364_v29 = vpop.xlane.xlu1 %2363  ;;  %v2072_v11 = vmul.f32 %v6725_v48, %v8116_v2  ;;  %v1607_v2 = vmul.f32 %v6727_v52, %v10292_v26 }
 0x7e4   : > { %6430 = vrot.lane.b32.xlu0 %v6429_v58, %s7011_s18  ;;  %6742 = vrcp.f32 %v2354_v9  ;;  %v2366_v37 = vpop.xlane.xlu0 %2365 }
 0x7e5   : > { %6744 = vrcp.f32 %v8302_v62  ;;  %v6449_v31 = vpack.i.bf16 %v2073_v56, %v2072_v11 }
 0x7e6   : > { %6746 = vrcp.f32 %v2352_v33 }
 0x7e7   : > { %6748 = vrcp.f32 %v8294_v34  ;;  %v2360_v47 = vpop.xlane.xlu1 %2359 }
 0x7e8   : > { %6750 = vrcp.f32 %v2366_v37  ;;  %v2362_v60 = vpop.xlane.xlu0 %2361 }
 0x7e9   : > { %v6073_v51 = vpop.f32.mrf.mxu0  ;;  %6752 = vrcp.f32 %v8310_v49 }
 0x7ea   : > { %v6729_v62 = vpop.eup %6728  ;;  %6754 = vrcp.f32 %v2364_v29  ;;  %v10296_v29 = vld [vmem:[#allocation46_spill] sm:$0xff] }
 0x7eb   : > { %v2465_v22 = vpop.f32.mrf.mxu0  ;;  %v6731_v58 = vpop.eup %6730  ;;  %6756 = vrcp.f32 %v8300_v7 }
 0x7ec   : > { %v6733_v30 = vpop.eup %6732  ;;  %6758 = vrcp.f32 %v2362_v60 }
 0x7ed   : > { %v6074_v59 = vpop.f32.mrf.mxu0  ;;  %v6735_v34 = vpop.eup %6734  ;;  %v2538_v28 = vmul.f32 %v6733_v30, %v6073_v51  ;;  %6760 = vrcp.f32 %v2360_v47 }
 0x7ee   : > { %v6737_v4 = vpop.eup %6736  ;;  %v1606_v9 = vmul.f32 %v6735_v34, %v10294_v12  ;;  %6762 = vrcp.f32 %v8322_v42  ;;  %v10299_v12 = vld [vmem:[#allocation14_spill] sm:$0xff]  ;;  %v6377_v42 = vunpack.i.l.bf16 %v8324_v21 }
 0x7ef   : > { %v2468_v27 = vpop.f32.mrf.mxu0  ;;  %v6739_v36 = vpop.eup %6738  ;;  %v1610_v51 = vmul.f32 %v6737_v4, %v10295_v40  ;;  %6764 = vrcp.f32 %v8318_v3  ;;  %v6383_v3 = vunpack.i.h.bf16 %v8334_v61 }
 0x7f0   : > { %v6741_v54 = vpop.eup %6740  ;;  %v6439_v33 = vpack.i.bf16 %v1607_v2, %v1606_v9  ;;  %6766 = vrcp.f32 %v8312_v53  ;;  %v10300_v53 = vld [vmem:[#allocation8_spill] sm:$0xff] }
 0x7f1   : > { %v6743_v7 = vpop.eup %6742  ;;  %v2077_v57 = vmul.f32 %v6741_v54, %v8128_v50  ;;  %v10297_v50 = vld [vmem:[#allocation44_spill] sm:$0xff]  ;;  %6768 = vrcp.f32 %v8308_v38  ;;  %v8419_v38 = vpop.xlane.xlu0 %973 }
 0x7f2   : > { %v6745_v23 = vpop.eup %6744  ;;  %v2537_v16 = vmul.f32 %v6743_v7, %v2468_v27  ;;  %6770 = vrcp.f32 %v8316_v1 }
 0x7f3   : > { %v1609_v52 = vmul.f32 %v6745_v23, %v10296_v29  ;;  %6772 = vrcp.f32 %v8326_v5 }
 0x7f4   : > { %6774 = vrcp.f32 %v8320_v8 }
 0x7f5   : > { %971 = vadd.xlane.f32.xlu1 %v10288_v6  ;;  %v2539_v6 = vmul.f32 %v6729_v62, %v6074_v59  ;;  %v2076_v59 = vmul.f32 %v6739_v36, %v8124_v35  ;;  %6776 = vrcp.f32 %v8330_v20 }
 0x7f7   : > { %v6459_v49 = vpack.i.bf16 %v2539_v6, %v2538_v28  ;;  %v6479_v27 = vpack.i.bf16 %v2077_v57, %v2076_v59 }
 0x7fa   : > { %v6077_v24 = vpop.f32.mrf.mxu0 }
 0x7fc   : > { %v2481_v32 = vpop.f32.mrf.mxu0 }
 0x7fe   : > { %v6078_v48 = vpop.f32.mrf.mxu0 }
 0x800   : > { %v2484_v60 = vpop.f32.mrf.mxu0 }
 0x803   : > { %975 = vadd.xlane.f32.xlu0 %v10289_v44  ;;  %v10293_v44 = vld [vmem:[#allocation45_spill] sm:$0xff] }
 0x806   : > { %6425 = vrot.lane.b32.xlu1 %v6424_v25, %s7011_s18  ;;  %v1611_v25 = vmul.f32 %v6731_v58, %v10293_v44 }
 0x808   : > { %v6469_v43 = vpack.i.bf16 %v1611_v25, %v1610_v51  ;;  %v10298_v25 = vld [vmem:[#allocation12_spill] sm:$0xff]  ;;  %v10301_v51 = vld [vmem:[#allocation13_spill] sm:$0xff] }
 0x80a   : > { %6435 = vrot.lane.b32.xlu1 %v6434_v18, %s7015_s23  ;;  %v6747_v18 = vpop.eup %6746  ;;  %6778 = vrcp.f32 %v8336_v14  ;;  %v10306_v14 = vld [vmem:[#allocation9_spill] sm:$0xff] }
 0x80b   : > { %v2536_v46 = vmul.f32 %v6747_v18, %v2465_v22  ;;  %v6749_v37 = vpop.eup %6748  ;;  %6780 = vrcp.f32 %v8338_v63 }
 0x80c   : > { %v1608_v22 = vmul.f32 %v6749_v37, %v10297_v50 }
 0x80d   : > { %v6454_v56 = vpack.i.bf16 %v2537_v16, %v2536_v46  ;;  %v6378_v16 = vunpack.i.h.bf16 %v8324_v21  ;;  %v6393_v46 = vunpack.i.h.bf16 %v8332_v39  ;;  %v6388_v21 = vunpack.i.h.bf16 %v8328_v55 }
 0x80e   : > { %6445 = vrot.lane.b32.xlu1 %v6444_v45, %s7013_s11  ;;  %v6751_v45 = vpop.eup %6750  ;;  %v6464_v30 = vpack.i.bf16 %v1609_v52, %v1608_v22  ;;  %6782 = vrcp.f32 %v8344_v17 }
 0x80f   : > { %v6753_v11 = vpop.eup %6752  ;;  %v2543_v62 = vmul.f32 %v6751_v45, %v6078_v48  ;;  %v6392_v48 = vunpack.i.l.bf16 %v8332_v39  ;;  %6784 = vrcp.f32 %v8348_v41 }
 0x810   : > { %v6755_v58 = vpop.eup %6754  ;;  %v2075_v34 = vmul.f32 %v6753_v11, %v8130_v13 }
 0x811   : > { %v6757_v6 = vpop.eup %6756 }
 0x812   : > { %6450 = vrot.lane.b32.xlu1 %v6449_v31, %s7013_s11  ;;  %v2542_v31 = vmul.f32 %v6755_v58, %v6077_v24  ;;  %v2074_v28 = vmul.f32 %v6757_v6, %v8126_v15  ;;  %v6759_v4 = vpop.eup %6758 }
 0x813   : > { %v2541_v26 = vmul.f32 %v6759_v4, %v2484_v60  ;;  %v6761_v36 = vpop.eup %6760  ;;  %v10302_v60 = vld [vmem:[#allocation17_spill] sm:$0xff]  ;;  %v10303_v4 = vld [vmem:[#allocation16_spill] sm:$0xff] }
 0x814   : > { %v6489_v35 = vpack.i.bf16 %v2543_v62, %v2542_v31  ;;  %v6474_v2 = vpack.i.bf16 %v2075_v34, %v2074_v28  ;;  %v2540_v47 = vmul.f32 %v6761_v36, %v2481_v32  ;;  %v6763_v15 = vpop.eup %6762  ;;  %v6382_v32 = vunpack.i.l.bf16 %v8334_v61 }
 0x815   : > { %v6765_v13 = vpop.eup %6764  ;;  %v1117_v54 = vmul.f32 %v6763_v15, %v10298_v25  ;;  %v6398_v31 = vunpack.i.h.bf16 %v8340_v10  ;;  %v6408_v34 = vunpack.i.h.bf16 %v8346_v0 }
 0x816   : > { %6460 = vrot.lane.b32.xlu1 %v6459_v49, %s7011_s18  ;;  %v6484_v24 = vpack.i.bf16 %v2541_v26, %v2540_v47  ;;  %v6767_v49 = vpop.eup %6766  ;;  %v1115_v9 = vmul.f32 %v6765_v13, %v10299_v12  ;;  %v6402_v12 = vunpack.i.l.bf16 %v8352_v19 }
 0x817   : > { %v6769_v44 = vpop.eup %6768  ;;  %v1116_v7 = vmul.f32 %v6767_v49, %v10300_v53  ;;  %v2739_v18 = vsel %vm719_vm2, %v1117_v54, %v6383_v3  ;;  %v10305_v53 = vld [vmem:[#allocation15_spill] sm:$0xff] }
 0x818   : > { %v1114_v23 = vmul.f32 %v6769_v44, %v10301_v51  ;;  %v2737_v61 = vsel %vm719_vm2, %v1115_v9, %v6378_v16  ;;  %v2756_v45 = vsel %vm2752_vm3, %v2739_v18, %v6393_v46  ;;  %v6771_v22 = vpop.eup %6770  ;;  %v6412_v51 = vunpack.i.l.bf16 %v10306_v14  ;;  %v10307_v46 = vld [vmem:[#allocation10_spill] sm:$0xff] }
 0x819   : > { %6440 = vrot.lane.b32.xlu0 %v6439_v33, %s7015_s23  ;;  %v6387_v33 = vunpack.i.l.bf16 %v8328_v55  ;;  %v2738_v1 = vsel %vm719_vm2, %v1116_v7, %v6382_v32  ;;  %v2754_v11 = vsel %vm2752_vm3, %v2737_v61, %v6388_v21  ;;  %v6773_v6 = vpop.eup %6772  ;;  %v1118_v28 = vmul.f32 %v6771_v22, %v10302_v60 }
 0x81a   : > { %6470 = vrot.lane.b32.xlu1 %v6469_v43, %s7015_s23  ;;  %v2736_v37 = vsel %vm719_vm2, %v1114_v23, %v6377_v42  ;;  %v2755_v5 = vsel %vm2752_vm3, %v2738_v1, %v6392_v48  ;;  %v1119_v26 = vmul.f32 %v6773_v6, %v10303_v4  ;;  %v6775_v25 = vpop.eup %6774  ;;  %v6403_v32 = vunpack.i.h.bf16 %v8352_v19  ;;  %v10304_v42 = vld [vmem:[#allocation18_spill] sm:$0xff] }
 0x81b   : > { %v2753_v52 = vsel %vm2752_vm3, %v2736_v37, %v6387_v33  ;;  %v6777_v54 = vpop.eup %6776  ;;  %v1120_v7 = vmul.f32 %v6775_v25, %v10305_v53  ;;  %6786 = vrcp.f32 %v10307_v46 }
 0x81c   : > { %v2741_v36 = vsel %vm719_vm2, %v1119_v26, %v6398_v31  ;;  %v1121_v3 = vmul.f32 %v6777_v54, %v10304_v42  ;;  %6788 = vrcp.f32 %v8419_v38 }
 0x81d   : > { %6455 = vrot.lane.b32.xlu0 %v6454_v56, %s7011_s18  ;;  %v2758_v49 = vsel %vm2752_vm3, %v2741_v36, %v6408_v34  ;;  %v2742_v20 = vsel %vm719_vm2, %v1120_v7, %v6402_v12 }
 0x81e   : > { %6480 = vrot.lane.b32.xlu1 %v6479_v27, %s7013_s11  ;;  %v2743_v8 = vsel %vm719_vm2, %v1121_v3, %v6403_v32  ;;  %v2759_v16 = vsel %vm2752_vm3, %v2742_v20, %v6412_v51 }
 0x821   : > { %6465 = vrot.lane.b32.xlu0 %v6464_v30, %s7015_s23  ;;  %v6397_v30 = vunpack.i.l.bf16 %v8340_v10 }
 0x822   : > { %6490 = vrot.lane.b32.xlu1 %v6489_v35, %s7011_s18  ;;  %v6407_v35 = vunpack.i.l.bf16 %v8346_v0 }
 0x823   : > { %v2740_v47 = vsel %vm719_vm2, %v1118_v28, %v6397_v30 }
 0x824   : > { %v2757_v13 = vsel %vm2752_vm3, %v2740_v47, %v6407_v35 }
 0x825   : > { %6475 = vrot.lane.b32.xlu0 %v6474_v2, %s7013_s11 }
 0x829   : > { %6485 = vrot.lane.b32.xlu0 %v6484_v24, %s7011_s18 }
 0x843   : > { %v6416_v40 = vpop.permute.xlu1 %6415 }
 0x844   : > { %v6418_v43 = vunpack.i.h.bf16 %v6416_v40  ;;  %v6417_v57 = vunpack.i.l.bf16 %v6416_v40  ;;  %v6413_v40 = vunpack.i.h.bf16 %v10306_v14  ;;  %v10312_v14 = vld [vmem:[#allocation32_spill] sm:$0xff] }
 0x846   : > { %v2772_v62 = vsel %vm2769_vm4, %v2755_v5, %v6417_v57  ;;  %v2773_v39 = vsel %vm2769_vm4, %v2756_v45, %v6418_v43  ;;  %v2760_v17 = vsel %vm2752_vm3, %v2743_v8, %v6413_v40  ;;  %v6779_v43 = vpop.eup %6778  ;;  %v10308_v5 = vld [vmem:[#allocation20_spill] sm:$0xff] }
 0x847   : > { %v6421_v59 = vpop.permute.xlu0 %6420  ;;  %v2787_v50 = vpack.c.bf16 %v2773_v39, %v2772_v62  ;;  %v6781_v61 = vpop.eup %6780  ;;  %v10311_v62 = vld [vmem:[#allocation11_spill] sm:$0xff] }
 0x848   : > { %v6423_v56 = vunpack.i.h.bf16 %v6421_v59  ;;  %v6422_v29 = vunpack.i.l.bf16 %v6421_v59  ;;  %v6783_v48 = vpop.eup %6782  ;;  %v1122_v45 = vmul.f32 %v6781_v61, %v10308_v5  ;;  %v10315_v61 = vld [vmem:[#allocation33_spill] sm:$0xff] }
 0x849   : > { %v6785_v21 = vpop.eup %6784 }
 0x84a   : > { %v2770_v27 = vsel %vm2769_vm4, %v2753_v52, %v6422_v29  ;;  %v2771_v58 = vsel %vm2769_vm4, %v2754_v11, %v6423_v56  ;;  %v10309_v56 = vld [vmem:[#allocation22_spill] sm:$0xff]  ;;  %v10310_v52 = vld [vmem:[#allocation19_spill] sm:$0xff]  ;;  %v1125_v39 = vmul.f32 %v6785_v21, %v10311_v62  ;;  %v6787_v12 = vpop.eup %6786 }
 0x84b   : > { %v2786_v55 = vpack.c.bf16 %v2771_v58, %v2770_v27  ;;  %v1123_v29 = vmul.f32 %v6779_v43, %v10309_v56  ;;  %v1124_v11 = vmul.f32 %v6783_v48, %v10310_v52  ;;  %v6789_v3 = vpop.eup %6788 }
 0x84d   : > { %6087 = vmatprep.mubr.msk.bf16.mxu0 %vm517_vm1, %v2786_v55 }
 0x84e   : > { %6088 = vmatmul.mubr.msk.bf16.vlgmr.msra.gmra.mxu0 %vm517_vm1, %v2787_v50 }
 0x856   : > { %v6431_v2 = vpop.permute.xlu0 %6430 }
 0x857   : > { %v6433_v24 = vunpack.i.h.bf16 %v6431_v2  ;;  %v6432_v15 = vunpack.i.l.bf16 %v6431_v2 }
 0x859   : > { %v2774_v10 = vsel %vm2769_vm4, %v2757_v13, %v6432_v15  ;;  %v2775_v44 = vsel %vm2769_vm4, %v2758_v49, %v6433_v24 }
 0x85a   : > { %v2788_v0 = vpack.c.bf16 %v2775_v44, %v2774_v10 }
 0x85c   : > { %6091 = vmatprep.mubr.msk.bf16.mxu0 %vm517_vm1, %v2788_v0 }
 0x87e   : > { %v972_v9 = vpop.xlane.xlu1 %971 }
 0x882   : > { %v6426_v19 = vpop.permute.xlu1 %6425 }
 0x883   : > { %v6428_v23 = vunpack.i.h.bf16 %v6426_v19  ;;  %v6427_v63 = vunpack.i.l.bf16 %v6426_v19 }
 0x885   : > { %v2776_v33 = vsel %vm2769_vm4, %v2759_v16, %v6427_v63  ;;  %v2777_v18 = vsel %vm2769_vm4, %v2760_v17, %v6428_v23  ;;  %v10313_v17 = vld [vmem:[#allocation23_spill] sm:$0xff] }
 0x886   : > { %v2789_v41 = vpack.c.bf16 %v2777_v18, %v2776_v33  ;;  %v6436_v1 = vpop.permute.xlu1 %6435  ;;  %v1128_v33 = vmul.f32 %v6789_v3, %v10313_v17  ;;  %v10314_v18 = vld [vmem:[#allocation21_spill] sm:$0xff] }
 0x887   : > { %v6438_v58 = vunpack.i.h.bf16 %v6436_v1  ;;  %v6437_v55 = vunpack.i.l.bf16 %v6436_v1 }
 0x888   : > { %6092 = vmatmul.mubr.msk.bf16.gmra.mxu0 %vm517_vm1, %v2789_v41  ;;  %v1126_v41 = vmul.f32 %v6787_v12, %v10314_v18  ;;  %v6862_v12 = vld [vmem:[#allocation2 + $0x18] sm:$0xff] }
 0x889   : > { %v2745_v47 = vsel %vm719_vm2, %v1123_v29, %v6438_v58  ;;  %v2744_v24 = vsel %vm719_vm2, %v1122_v45, %v6437_v55 }
 0x88a   : > { %v6446_v57 = vpop.permute.xlu1 %6445 }
 0x88b   : > { %v6448_v6 = vunpack.i.h.bf16 %v6446_v57  ;;  %v6447_v38 = vunpack.i.l.bf16 %v6446_v57 }
 0x88c   : > { %v976_v37 = vpop.xlane.xlu0 %975 }
 0x88d   : > { %6790 = vrcp.f32 %v976_v37  ;;  %v2761_v49 = vsel %vm2752_vm3, %v2744_v24, %v6447_v38  ;;  %v2762_v10 = vsel %vm2752_vm3, %v2745_v47, %v6448_v6  ;;  %v6859_v24 = vld [vmem:[#allocation2] sm:$0xff] }
 0x88e   : > { %6792 = vrcp.f32 %v972_v9  ;;  %v6451_v59 = vpop.permute.xlu1 %6450 }
 0x88f   : > { %v6453_v31 = vunpack.i.h.bf16 %v6451_v59  ;;  %v6452_v30 = vunpack.i.l.bf16 %v6451_v59 }
 0x890   : > { %v6441_v27 = vpop.permute.xlu0 %6440 }
 0x891   : > { %v6443_v50 = vunpack.i.h.bf16 %v6441_v27  ;;  %v6442_v22 = vunpack.i.l.bf16 %v6441_v27 }
 0x892   : > { %v6461_v34 = vpop.permute.xlu1 %6460 }
 0x893   : > { %v2747_v35 = vsel %vm719_vm2, %v1125_v39, %v6443_v50  ;;  %v2746_v60 = vsel %vm719_vm2, %v1124_v11, %v6442_v22  ;;  %v6463_v28 = vunpack.i.h.bf16 %v6461_v34  ;;  %v6462_v4 = vunpack.i.l.bf16 %v6461_v34  ;;  %v10316_v34 = vld [vmem:[#allocation6_spill] sm:$0xff] }
 0x894   : > { %v2763_v26 = vsel %vm2752_vm3, %v2746_v60, %v6452_v30  ;;  %v2764_v2 = vsel %vm2752_vm3, %v2747_v35, %v6453_v31  ;;  %v6456_v36 = vpop.permute.xlu0 %6455  ;;  %v2804_v35 = vsub.s32 1, %v10316_v34  ;;  %v8514_v60 = vld [vmem:[%s7103_s14] sm:$0xff] }
 0x895   : > { %v6458_v15 = vunpack.i.h.bf16 %v6456_v36  ;;  %v6457_v13 = vunpack.i.l.bf16 %v6456_v36  ;;  %v2780_v44 = vsel %vm2769_vm4, %v2763_v26, %v6462_v4  ;;  %v2781_v0 = vsel %vm2769_vm4, %v2764_v2, %v6463_v28 }
 0x896   : > { %v6471_v25 = vpop.permute.xlu1 %6470  ;;  %v2791_v53 = vpack.c.bf16 %v2781_v0, %v2780_v44  ;;  %v8517_v28 = vrot.slane %v8514_v60, %v2804_v35 }
 0x897   : > { %v2778_v54 = vsel %vm2769_vm4, %v2761_v49, %v6457_v13  ;;  %v2779_v32 = vsel %vm2769_vm4, %v2762_v10, %v6458_v15  ;;  %v6473_v51 = vunpack.i.h.bf16 %v6471_v25  ;;  %v6472_v19 = vunpack.i.l.bf16 %v6471_v25  ;;  %v6860_v49 = vld [vmem:[#allocation2 + $0x10] sm:$0xff] }
 0x898   : > { %v2790_v9 = vpack.c.bf16 %v2779_v32, %v2778_v54  ;;  %v6466_v42 = vpop.permute.xlu0 %6465  ;;  %v6861_v54 = vld [vmem:[#allocation2 + $0x8] sm:$0xff] }
 0x899   : > { %v6468_v23 = vunpack.i.h.bf16 %v6466_v42  ;;  %v6467_v63 = vunpack.i.l.bf16 %v6466_v42  ;;  %v2750_v45 = vsel %vm719_vm2, %v1128_v33, %v6472_v19 }
 0x89a   : > { %v6791_v7 = vpop.eup %6790  ;;  %v6481_v8 = vpop.permute.xlu1 %6480  ;;  %6095 = vmatprep.mubr.msk.bf16.mxu0 %vm517_vm1, %v2790_v9 }
 0x89b   : > { %v6793_v20 = vpop.eup %6792  ;;  %v1129_v40 = vmul.f32 %v6791_v7, %v10312_v14  ;;  %6096 = vmatmul.mubr.msk.bf16.gmra.mxu0 %vm517_vm1, %v2791_v53  ;;  %v6483_v1 = vunpack.i.h.bf16 %v6481_v8  ;;  %v6482_v43 = vunpack.i.l.bf16 %v6481_v8  ;;  %v2748_v56 = vsel %vm719_vm2, %v1126_v41, %v6467_v63  ;;  %v6864_v63 = vld [vmem:[#allocation2 + $0x30] sm:$0xff]  ;;  %v6865_v41 = vld [vmem:[#allocation2 + $0x28] sm:$0xff] }
 0x89c   : > { %v6476_v16 = vpop.permute.xlu0 %6475  ;;  %v1127_v46 = vmul.f32 %v6793_v20, %v10315_v61 }
 0x89d   : > { %v2751_v57 = vsel %vm719_vm2, %v1129_v40, %v6473_v51  ;;  %v6478_v48 = vunpack.i.h.bf16 %v6476_v16  ;;  %v6477_v37 = vunpack.i.l.bf16 %v6476_v16  ;;  %v2767_v11 = vsel %vm2752_vm3, %v2750_v45, %v6482_v43  ;;  %v6863_v51 = vld [vmem:[#allocation2 + $0x20] sm:$0xff]  ;;  %v6866_v43 = vld [vmem:[#allocation2 + $0x38] sm:$0xff] }
 0x89e   : > { %v6491_v21 = vpop.permute.xlu1 %6490  ;;  %v2749_v29 = vsel %vm719_vm2, %v1127_v46, %v6468_v23  ;;  %v2768_v62 = vsel %vm2752_vm3, %v2751_v57, %v6483_v1 }
 0x89f   : > { %v6493_v59 = vunpack.i.h.bf16 %v6491_v21  ;;  %v6492_v5 = vunpack.i.l.bf16 %v6491_v21  ;;  %v2765_v58 = vsel %vm2752_vm3, %v2748_v56, %v6477_v37  ;;  %v2766_v55 = vsel %vm2752_vm3, %v2749_v29, %v6478_v48  ;;  %v6867_v56 = vld [vmem:[#allocation2 + $0x40] sm:$0xff] }
 0x8a0   : > { %v6486_v52 = vpop.permute.xlu0 %6485 }
 0x8a1   : > { %v6488_v39 = vunpack.i.h.bf16 %v6486_v52  ;;  %v6487_v27 = vunpack.i.l.bf16 %v6486_v52  ;;  %v2784_v50 = vsel %vm2769_vm4, %v2767_v11, %v6492_v5  ;;  %v2785_v22 = vsel %vm2769_vm4, %v2768_v62, %v6493_v59  ;;  %v6868_v11 = vld [vmem:[#allocation2 + $0x50] sm:$0xff] }
 0x8a2   : > { %v2793_v30 = vpack.c.bf16 %v2785_v22, %v2784_v50  ;;  %v6870_v22 = vld [vmem:[#allocation2 + $0x58] sm:$0xff] }
 0x8a3   : > { %v2782_v6 = vsel %vm2769_vm4, %v2765_v58, %v6487_v27  ;;  %v2783_v38 = vsel %vm2769_vm4, %v2766_v55, %v6488_v39  ;;  %v6869_v55 = vld [vmem:[#allocation2 + $0x48] sm:$0xff] }
 0x8a4   : > { %v2792_v31 = vpack.c.bf16 %v2783_v38, %v2782_v6 }
 0x8a6   : > { %6099 = vmatprep.mubr.msk.bf16.mxu0 %vm517_vm1, %v2792_v31 }
 0x8a7   : > { %6100 = vmatmul.mubr.msk.bf16.gmra.mxu0 %vm517_vm1, %v2793_v30 }
 0x90e   : > { %v6089_v4 = vpop.f32.mrf.mxu0 }
 0x90f   : > { %v2897_v2 = vadd.f32 %v6089_v4, %v8517_v28 }
 0x910   : > { %v2888_v26 = vpop.f32.mrf.mxu0 }
 0x911   : > { %v2889_v36 = vadd.f32 %v2888_v26, %v8517_v28  ;;  %v8523_v10 = vadd.f32 %v6860_v49, %v2897_v2  ;;  %v6872_v49 = vld [vmem:[#allocation2 + $0x70] sm:$0xff] }
 0x912   : > { %v6090_v47 = vpop.f32.mrf.mxu0 }
 0x913   : > { %v8521_v15 = vadd.f32 %v6859_v24, %v2889_v36  ;;  %v2900_v44 = vadd.f32 %v6090_v47, %v8517_v28  ;;  %v2973_v3 = vsel %vm517_vm1, %v8523_v10, 0.0  ;;  %v6871_v47 = vld [vmem:[#allocation2 + $0x60] sm:$0xff] }
 0x914   : > { %v2891_v13 = vpop.f32.mrf.mxu0 }
 0x915   : > { %v2892_v0 = vadd.f32 %v2891_v13, %v8517_v28  ;;  %v2967_v25 = vsel %vm517_vm1, %v8521_v15, 0.0  ;;  %v8531_v9 = vadd.f32 %v6862_v12, %v2900_v44  ;;  %v6873_v12 = vld [vmem:[#allocation2 + $0x68] sm:$0xff] }
 0x916   : > { %2968 = vadd.xlane.f32.xlu0 %v2967_v25 }
 0x917   : > { %v8529_v32 = vadd.f32 %v6861_v54, %v2892_v0  ;;  %v2976_v53 = vsel %vm517_vm1, %v8531_v9, 0.0 }
 0x919   : > { %v2970_v42 = vsel %vm517_vm1, %v8529_v32, 0.0 }
 0x91a   : > { %2971 = vadd.xlane.f32.xlu1 %v2970_v42  ;;  %2974 = vadd.xlane.f32.xlu0 %v2973_v3  ;;  %v6874_v3 = vld [vmem:[#allocation2 + $0x78] sm:$0xff] }
 0x91e   : > { %2977 = vadd.xlane.f32.xlu0 %v2976_v53 }
 0x948   : > { %v6093_v7 = vpop.f32.mrf.mxu0 }
 0x949   : > { %v2913_v20 = vadd.f32 %v6093_v7, %v8517_v28 }
 0x94a   : > { %v2904_v8 = vpop.f32.mrf.mxu0 }
 0x94b   : > { %v2905_v14 = vadd.f32 %v2904_v8, %v8517_v28  ;;  %v8543_v16 = vadd.f32 %v6864_v63, %v2913_v20 }
 0x94c   : > { %v6094_v40 = vpop.f32.mrf.mxu0 }
 0x94d   : > { %v8541_v19 = vadd.f32 %v6863_v51, %v2905_v14  ;;  %v2916_v17 = vadd.f32 %v6094_v40, %v8517_v28  ;;  %v2985_v61 = vsel %vm517_vm1, %v8543_v16, 0.0 }
 0x94e   : > { %v2907_v23 = vpop.f32.mrf.mxu0 }
 0x94f   : > { %v2908_v33 = vadd.f32 %v2907_v23, %v8517_v28  ;;  %v2979_v18 = vsel %vm517_vm1, %v8541_v19, 0.0  ;;  %v8551_v57 = vadd.f32 %v6866_v43, %v2916_v17 }
 0x950   : > { %2980 = vadd.xlane.f32.xlu1 %v2979_v18 }
 0x951   : > { %v8549_v1 = vadd.f32 %v6865_v41, %v2908_v33  ;;  %v2988_v48 = vsel %vm517_vm1, %v8551_v57, 0.0 }
 0x953   : > { %v2982_v46 = vsel %vm517_vm1, %v8549_v1, 0.0 }
 0x954   : > { %2986 = vadd.xlane.f32.xlu1 %v2985_v61  ;;  %2983 = vadd.xlane.f32.xlu0 %v2982_v46 }
 0x958   : > { %2989 = vadd.xlane.f32.xlu0 %v2988_v48 }
 0x95b   : > { %v6097_v37 = vpop.f32.mrf.mxu0 }
 0x95c   : > { %v2929_v59 = vadd.f32 %v6097_v37, %v8517_v28 }
 0x95d   : > { %v2920_v21 = vpop.f32.mrf.mxu0 }
 0x95e   : > { %v2921_v5 = vadd.f32 %v2920_v21, %v8517_v28  ;;  %v8563_v62 = vadd.f32 %v6868_v11, %v2929_v59  ;;  %v6516_v11 = vld [vmem:[%s7093_s22 + $0x10] ss:$8 sps:$4 sm:$0xff]  }
 0x95f   : > { %v6098_v45 = vpop.f32.mrf.mxu0 }
 0x960   : > { %v8561_v29 = vadd.f32 %v6867_v56, %v2921_v5  ;;  %v2932_v39 = vadd.f32 %v6098_v45, %v8517_v28  ;;  %v2997_v38 = vsel %vm517_vm1, %v8563_v62, 0.0  ;;  %v6512_v5 = vld [vmem:[%s7093_s22 + $0x34] ss:$8 sps:$4 sm:$0xff]   ;;  %v6510_v45 = vld [vmem:[%s7093_s22 + $0x30] ss:$8 sps:$4 sm:$0xff]  }
 0x961   : > { %v2923_v52 = vpop.f32.mrf.mxu0  ;;  %3312 = vmatprep.subr.bf16.mxu1 %v6512_v5  ;;  %v6513_v56 = vld [vmem:[%s7093_s22 + $0x20] ss:$8 sps:$4 sm:$0xff]  }
 0x962   : > { %v2924_v27 = vadd.f32 %v2923_v52, %v8517_v28  ;;  %v2991_v58 = vsel %vm517_vm1, %v8561_v29, 0.0  ;;  %v8571_v6 = vadd.f32 %v6870_v22, %v2932_v39  ;;  %3313 = vmatpush1.bf16.msra.mxu1 %v6510_v45  ;;  %v6518_v52 = vld [vmem:[%s7093_s22 + $0x14] ss:$8 sps:$4 sm:$0xff]   ;;  %v6519_v39 = vld [vmem:[%s7093_s22] ss:$8 sps:$4 sm:$0xff]  }
 0x963   : > { %2992 = vadd.xlane.f32.xlu1 %v2991_v58 }
 0x964   : > { %v8569_v50 = vadd.f32 %v6869_v55, %v2924_v27  ;;  %v3000_v2 = vsel %vm517_vm1, %v8571_v6, 0.0  ;;  %v6521_v27 = vld [vmem:[%s7093_s22 + $0x4] ss:$8 sps:$4 sm:$0xff]  }
 0x966   : > { %v2994_v31 = vsel %vm517_vm1, %v8569_v50, 0.0 }
 0x967   : > { %v6101_v30 = vpop.f32.mrf.mxu0  ;;  %2998 = vadd.xlane.f32.xlu1 %v2997_v38  ;;  %2995 = vadd.xlane.f32.xlu0 %v2994_v31 }
 0x968   : > { %v2945_v4 = vadd.f32 %v6101_v30, %v8517_v28 }
 0x969   : > { %v2936_v35 = vpop.f32.mrf.mxu0 }
 0x96a   : > { %v2937_v26 = vadd.f32 %v2936_v35, %v8517_v28  ;;  %v8583_v44 = vadd.f32 %v6872_v49, %v2945_v4 }
 0x96b   : > { %v6102_v36 = vpop.f32.mrf.mxu0  ;;  %3001 = vadd.xlane.f32.xlu0 %v3000_v2 }
 0x96c   : > { %v8581_v24 = vadd.f32 %v6871_v47, %v2937_v26  ;;  %v2948_v0 = vadd.f32 %v6102_v36, %v8517_v28  ;;  %v3009_v7 = vsel %vm517_vm1, %v8583_v44, 0.0 }
 0x96d   : > { %v2939_v13 = vpop.f32.mrf.mxu0 }
 0x96e   : > { %v2940_v25 = vadd.f32 %v2939_v13, %v8517_v28  ;;  %v3003_v54 = vsel %vm517_vm1, %v8581_v24, 0.0  ;;  %v8591_v53 = vadd.f32 %v6874_v3, %v2948_v0 }
 0x96f   : > { %3004 = vadd.xlane.f32.xlu1 %v3003_v54 }
 0x970   : > { %v8589_v42 = vadd.f32 %v6873_v12, %v2940_v25  ;;  %v3012_v28 = vsel %vm517_vm1, %v8591_v53, 0.0 }
 0x972   : > { %v3006_v8 = vsel %vm517_vm1, %v8589_v42, 0.0 }
 0x973   : > { %3010 = vadd.xlane.f32.xlu1 %v3009_v7  ;;  %3007 = vadd.xlane.f32.xlu0 %v3006_v8 }
 0x977   : > { %3013 = vadd.xlane.f32.xlu0 %v3012_v28 }
 0x99f   : > { %v2969_v20 = vpop.xlane.xlu0 %2968 }
 0x9a0   : > { %v3016_v14 = vmul.f32 0.015625, %v2969_v20 }
 0x9a2   : > { %v8600_v40 = vsub.f32 %v8521_v15, %v3016_v14 }
 0x9a3   : > { %v2972_v51 = vpop.xlane.xlu1 %2971  ;;  %v2975_v23 = vpop.xlane.xlu0 %2974 }
 0x9a4   : > { %v3017_v63 = vmul.f32 0.015625, %v2972_v51  ;;  %v3018_v17 = vmul.f32 0.015625, %v2975_v23  ;;  %v3048_v33 = vmul.f32 %v8600_v40, %v8600_v40 }
 0x9a6   : > { %v8605_v18 = vsub.f32 %v8529_v32, %v3017_v63  ;;  %v8608_v41 = vsub.f32 %v8523_v10, %v3018_v17  ;;  %v3064_v43 = vsel %vm517_vm1, %v3048_v33, 0.0 }
 0x9a7   : > { %3065 = vadd.xlane.f32.xlu1 %v3064_v43  ;;  %v2978_v15 = vpop.xlane.xlu0 %2977 }
 0x9a8   : > { %v3019_v61 = vmul.f32 0.015625, %v2978_v15  ;;  %v3049_v46 = vmul.f32 %v8605_v18, %v8605_v18  ;;  %v3050_v48 = vmul.f32 %v8608_v41, %v8608_v41 }
 0x9aa   : > { %v8616_v32 = vsub.f32 %v8531_v9, %v3019_v61  ;;  %v3067_v10 = vsel %vm517_vm1, %v3049_v46, 0.0  ;;  %v3070_v37 = vsel %vm517_vm1, %v3050_v48, 0.0  ;;  %v6515_v9 = vld [vmem:[%s7093_s22 + $0x24] ss:$8 sps:$4 sm:$0xff]  }
 0x9ab   : > { %3068 = vadd.xlane.f32.xlu0 %v3067_v10  ;;  %3071 = vadd.xlane.f32.xlu1 %v3070_v37 }
 0x9ac   : > { %v3051_v21 = vmul.f32 %v8616_v32, %v8616_v32  ;;  %3314 = vmatprep.subr.bf16.mxu1 %v6515_v9 }
 0x9ad   : > { %3315 = vmatpush1.bf16.msra.mxu1 %v6513_v56 }
 0x9ae   : > { %v3073_v59 = vsel %vm517_vm1, %v3051_v21, 0.0  ;;  %3316 = vmatprep.subr.bf16.mxu1 %v6518_v52 }
 0x9af   : > { %3074 = vadd.xlane.f32.xlu0 %v3073_v59 }
 0x9b1   : > { %3317 = vmatpush1.bf16.msra.mxu1 %v6516_v11 }
 0x9b2   : > { %3318 = vmatprep.subr.bf16.mxu1 %v6521_v27 }
 0x9b5   : > { %3319 = vmatpush1.bf16.msra.mxu1 %v6519_v39 }
 0x9d9   : > { %v2981_v58 = vpop.xlane.xlu1 %2980 }
 0x9da   : > { %v3020_v55 = vmul.f32 0.015625, %v2981_v58 }
 0x9dc   : > { %v8632_v22 = vsub.f32 %v8541_v19, %v3020_v55 }
 0x9dd   : > { %v2987_v38 = vpop.xlane.xlu1 %2986  ;;  %v2984_v31 = vpop.xlane.xlu0 %2983 }
 0x9de   : > { %v3022_v30 = vmul.f32 0.015625, %v2987_v38  ;;  %v3021_v35 = vmul.f32 0.015625, %v2984_v31  ;;  %v3052_v4 = vmul.f32 %v8632_v22, %v8632_v22 }
 0x9e0   : > { %v8637_v26 = vsub.f32 %v8543_v16, %v3022_v30  ;;  %v8640_v2 = vsub.f32 %v8549_v1, %v3021_v35  ;;  %v3076_v36 = vsel %vm517_vm1, %v3052_v4, 0.0 }
 0x9e1   : > { %3077 = vadd.xlane.f32.xlu1 %v3076_v36  ;;  %v2990_v47 = vpop.xlane.xlu0 %2989 }
 0x9e2   : > { %v3023_v13 = vmul.f32 0.015625, %v2990_v47  ;;  %v3054_v19 = vmul.f32 %v8637_v26, %v8637_v26  ;;  %v3053_v49 = vmul.f32 %v8640_v2, %v8640_v2 }
 0x9e4   : > { %v8648_v0 = vsub.f32 %v8551_v57, %v3023_v13  ;;  %v3082_v16 = vsel %vm517_vm1, %v3054_v19, 0.0  ;;  %v3079_v25 = vsel %vm517_vm1, %v3053_v49, 0.0  ;;  %v6522_v13 = vld [vmem:[%s7098_s26 + $0x78] sm:$0xff]   ;;  %v6524_v49 = vld [vmem:[%s7098_s26 + $0x70] sm:$0xff]  }
 0x9e5   : > { %3083 = vadd.xlane.f32.xlu1 %v3082_v16  ;;  %3080 = vadd.xlane.f32.xlu0 %v3079_v25  ;;  %v6523_v19 = vld [vmem:[%s7098_s26 + $0x38] sm:$0xff]  }
 0x9e6   : > { %v3055_v1 = vmul.f32 %v8648_v0, %v8648_v0  ;;  %5663 = vmatprep.subr.bf16.mxu0 %v6522_v13  ;;  %6271 = vmatprep.subr.bf16.mxu1 %v6522_v13 }
 0x9e7   : > { %5664 = vmatpush3.bf16.msra.mxu0 %v6523_v19 }
 0x9e8   : > { %v3085_v54 = vsel %vm517_vm1, %v3055_v1, 0.0  ;;  %5665 = vmatprep.subr.bf16.mxu0 %v6524_v49 }
 0x9e9   : > { %3086 = vadd.xlane.f32.xlu0 %v3085_v54  ;;  %v6525_v54 = vld [vmem:[%s7098_s26 + $0x30] sm:$0xff]  }
 0x9eb   : > { %5666 = vmatpush3.bf16.msra.mxu0 %v6525_v54 }
 0x9ec   : > { %v2993_v12 = vpop.xlane.xlu1 %2992 }
 0x9ed   : > { %v3024_v3 = vmul.f32 0.015625, %v2993_v12 }
 0x9ef   : > { %v8656_v7 = vsub.f32 %v8561_v29, %v3024_v3  ;;  %v6526_v3 = vld [vmem:[%s7098_s26 + $0x68] sm:$0xff]  }
 0x9f0   : > { %v2999_v8 = vpop.xlane.xlu1 %2998  ;;  %v2996_v57 = vpop.xlane.xlu0 %2995  ;;  %5667 = vmatprep.subr.bf16.mxu0 %v6526_v3 }
 0x9f1   : > { %v3026_v28 = vmul.f32 0.015625, %v2999_v8  ;;  %v3025_v20 = vmul.f32 0.015625, %v2996_v57  ;;  %v3056_v14 = vmul.f32 %v8656_v7, %v8656_v7  ;;  %v6527_v57 = vld [vmem:[%s7098_s26 + $0x28] sm:$0xff]  }
 0x9f2   : > { %5668 = vmatpush3.bf16.msra.mxu0 %v6527_v57 }
 0x9f3   : > { %v8661_v51 = vsub.f32 %v8563_v62, %v3026_v28  ;;  %v8664_v23 = vsub.f32 %v8569_v50, %v3025_v20  ;;  %v3088_v63 = vsel %vm517_vm1, %v3056_v14, 0.0  ;;  %v6528_v28 = vld [vmem:[%s7098_s26 + $0x60] sm:$0xff]   ;;  %v3178_v20 = vsub.s32 4, %v10316_v34 }
 0x9f4   : > { %3089 = vadd.xlane.f32.xlu1 %v3088_v63  ;;  %v3002_v17 = vpop.xlane.xlu0 %3001  ;;  %v6529_v14 = vld [vmem:[%s7098_s26 + $0x20] sm:$0xff]   ;;  %5669 = vmatprep.subr.bf16.mxu0 %v6528_v28  ;;  %v6530_v63 = vld [vmem:[%s7098_s26 + $0x58] sm:$0xff]  }
 0x9f5   : > { %v3027_v33 = vmul.f32 0.015625, %v3002_v17  ;;  %v3058_v29 = vmul.f32 %v8661_v51, %v8661_v51  ;;  %v3057_v43 = vmul.f32 %v8664_v23, %v8664_v23 }
 0x9f6   : > { %5670 = vmatpush3.bf16.msra.mxu0 %v6529_v14 }
 0x9f7   : > { %v8672_v15 = vsub.f32 %v8571_v6, %v3027_v33  ;;  %v3094_v62 = vsel %vm517_vm1, %v3058_v29, 0.0  ;;  %v3091_v61 = vsel %vm517_vm1, %v3057_v43, 0.0  ;;  %v8714_v33 = vrot.slane %v8514_v60, %v3178_v20  ;;  %5671 = vmatprep.subr.bf16.mxu0 %v6530_v63 }
 0x9f8   : > { %v3005_v50 = vpop.xlane.xlu1 %3004  ;;  %3095 = vadd.xlane.f32.xlu1 %v3094_v62  ;;  %3092 = vadd.xlane.f32.xlu0 %v3091_v61  ;;  %v3198_v43 = vsub.s32 5, %v10316_v34  ;;  %v6531_v62 = vld [vmem:[%s7098_s26 + $0x18] sm:$0xff]  }
 0x9f9   : > { %v3028_v46 = vmul.f32 0.015625, %v3005_v50  ;;  %v3059_v48 = vmul.f32 %v8672_v15, %v8672_v15 }
 0x9fa   : > { %5672 = vmatpush3.bf16.msra.mxu0 %v6531_v62 }
 0x9fb   : > { %v8679_v10 = vsub.f32 %v8581_v24, %v3028_v46  ;;  %v3097_v37 = vsel %vm517_vm1, %v3059_v48, 0.0  ;;  %v8722_v48 = vrot.slane %v8514_v60, %v3198_v43 }
 0x9fc   : > { %v3011_v21 = vpop.xlane.xlu1 %3010  ;;  %3098 = vadd.xlane.f32.xlu0 %v3097_v37  ;;  %v3008_v6 = vpop.xlane.xlu0 %3007 }
 0x9fd   : > { %v3030_v59 = vmul.f32 0.015625, %v3011_v21  ;;  %v3029_v5 = vmul.f32 0.015625, %v3008_v6  ;;  %v3060_v45 = vmul.f32 %v8679_v10, %v8679_v10 }
 0x9ff   : > { %v8685_v9 = vsub.f32 %v8583_v44, %v3030_v59  ;;  %v8688_v56 = vsub.f32 %v8589_v42, %v3029_v5  ;;  %v3100_v52 = vsel %vm517_vm1, %v3060_v45, 0.0 }
 0xa00   : > { %3101 = vadd.xlane.f32.xlu1 %v3100_v52  ;;  %v3014_v24 = vpop.xlane.xlu0 %3013 }
 0xa01   : > { %v3031_v11 = vmul.f32 0.015625, %v3014_v24  ;;  %v3062_v39 = vmul.f32 %v8685_v9, %v8685_v9  ;;  %v3061_v27 = vmul.f32 %v8688_v56, %v8688_v56 }
 0xa03   : > { %v8696_v58 = vsub.f32 %v8591_v53, %v3031_v11  ;;  %v3106_v44 = vsel %vm517_vm1, %v3062_v39, 0.0  ;;  %v3103_v42 = vsel %vm517_vm1, %v3061_v27, 0.0  ;;  %v10317_v11 = vmov 0  }
 0xa04   : > { %3107 = vadd.xlane.f32.xlu1 %v3106_v44  ;;  %3104 = vadd.xlane.f32.xlu0 %v3103_v42 }
 0xa05   : > { %v3063_v55 = vmul.f32 %v8696_v58, %v8696_v58 }
 0xa07   : > { %v3109_v38 = vsel %vm517_vm1, %v3063_v55, 0.0 }
 0xa08   : > { %3110 = vadd.xlane.f32.xlu0 %v3109_v38 }
 0xa30   : > { %v3066_v31 = vpop.xlane.xlu1 %3065 }
 0xa31   : > { %v3112_v30 = vmul.f32 0.015625, %v3066_v31 }
 0xa33   : > { %v3128_v53 = vadd.f32 1e-05, %v3112_v30 }
 0xa34   : > { %v3072_v35 = vpop.xlane.xlu1 %3071  ;;  %v3069_v4 = vpop.xlane.xlu0 %3068 }
 0xa35   : > { %6794 = vrsqrt.f32 %v3128_v53  ;;  %v3114_v36 = vmul.f32 0.015625, %v3072_v35  ;;  %v3113_v47 = vmul.f32 0.015625, %v3069_v4 }
 0xa37   : > { %v3129_v16 = vadd.f32 1e-05, %v3113_v47  ;;  %v3130_v25 = vadd.f32 1e-05, %v3114_v36 }
 0xa38   : > { %v3075_v1 = vpop.xlane.xlu0 %3074 }
 0xa39   : > { %v3115_v12 = vmul.f32 0.015625, %v3075_v1  ;;  %6796 = vrsqrt.f32 %v3129_v16 }
 0xa3a   : > { %6798 = vrsqrt.f32 %v3130_v25 }
 0xa3b   : > { %v3131_v8 = vadd.f32 1e-05, %v3115_v12 }
 0xa3d   : > { %6800 = vrsqrt.f32 %v3131_v8 }
 0xa42   : > { %v6795_v17 = vpop.eup %6794 }
 0xa43   : > { %v3160_v29 = vmul.f32 %v6795_v17, %v8600_v40 }
 0xa45   : > { %v3180_v50 = vmul.f32 %v8714_v33, %v3160_v29 }
 0xa46   : > { %v6797_v61 = vpop.eup %6796 }
 0xa47   : > { %v3161_v46 = vmul.f32 %v6797_v61, %v8605_v18  ;;  %v6799_v37 = vpop.eup %6798  ;;  %v8727_v59 = vadd.f32 %v8722_v48, %v3180_v50 }
 0xa48   : > { %v3162_v45 = vmul.f32 %v6799_v37, %v8608_v41 }
 0xa49   : > { %v3181_v6 = vmul.f32 %v8714_v33, %v3161_v46 }
 0xa4a   : > { %v6801_v21 = vpop.eup %6800  ;;  %v3182_v24 = vmul.f32 %v8714_v33, %v3162_v45 }
 0xa4b   : > { %v3163_v40 = vmul.f32 %v6801_v21, %v8616_v32  ;;  %v8730_v5 = vadd.f32 %v8722_v48, %v3181_v6 }
 0xa4c   : > { %v8743_v39 = vadd.f32 %v8722_v48, %v3182_v24 }
 0xa4d   : > { %v3216_v18 = vpack.c.bf16 %v8730_v5, %v8727_v59  ;;  %v3183_v52 = vmul.f32 %v8714_v33, %v3163_v40 }
 0xa4f   : > { %5392 = vmatmul.mubr.msk.bf16.vlgmr.msra.gmra.mxu1 %vm517_vm1, %v3216_v18  ;;  %v8740_v32 = vadd.f32 %v8722_v48, %v3183_v52 }
 0xa50   : > { %3346 = vmatprep.mubr.bf16.mxu1 %v10317_v11  ;;  %6279 = vmatpush3.bf16.msra.mxu1 %v6523_v19 }
 0xa51   : > { %6272 = vmatprep.subr.bf16.mxu1 %v6524_v49  ;;  %v3217_v41 = vpack.c.bf16 %v8740_v32, %v8743_v39 }
 0xa54   : > { %6280 = vmatpush3.bf16.msra.mxu1 %v6525_v54 }
 0xa55   : > { %6273 = vmatprep.subr.bf16.mxu1 %v6526_v3 }
 0xa57   : > { %5393 = vmatmul.mubr.msk.bf16.gmra.mxu1 %vm517_vm1, %v3217_v41 }
 0xa58   : > { %3356 = vmatprep.mubr.bf16.mxu1 %v10317_v11  ;;  %6281 = vmatpush3.bf16.msra.mxu1 %v6527_v57 }
 0xa59   : > { %6274 = vmatprep.subr.bf16.mxu1 %v6528_v28 }
 0xa5c   : > { %6282 = vmatpush3.bf16.msra.mxu1 %v6529_v14 }
 0xa5d   : > { %6275 = vmatprep.subr.bf16.mxu1 %v6530_v63 }
 0xa60   : > { %6283 = vmatpush3.bf16.msra.mxu1 %v6531_v62 }
 0xa6a   : > { %v3078_v27 = vpop.xlane.xlu1 %3077 }
 0xa6b   : > { %v3116_v44 = vmul.f32 0.015625, %v3078_v27 }
 0xa6d   : > { %v3132_v42 = vadd.f32 1e-05, %v3116_v44 }
 0xa6e   : > { %v3084_v55 = vpop.xlane.xlu1 %3083  ;;  %v3081_v38 = vpop.xlane.xlu0 %3080 }
 0xa6f   : > { %6802 = vrsqrt.f32 %v3132_v42  ;;  %v3118_v31 = vmul.f32 0.015625, %v3084_v55  ;;  %v3117_v30 = vmul.f32 0.015625, %v3081_v38 }
 0xa71   : > { %v3133_v53 = vadd.f32 1e-05, %v3117_v30  ;;  %v3134_v35 = vadd.f32 1e-05, %v3118_v31  ;;  %v6532_v30 = vld [vmem:[%s7098_s26 + $0x50] sm:$0xff]  }
 0xa72   : > { %v3087_v4 = vpop.xlane.xlu0 %3086  ;;  %5673 = vmatprep.subr.bf16.mxu0 %v6532_v30  ;;  %6276 = vmatprep.subr.bf16.mxu1 %v6532_v30 }
 0xa73   : > { %v3119_v36 = vmul.f32 0.015625, %v3087_v4  ;;  %6804 = vrsqrt.f32 %v3133_v53 }
 0xa74   : > { %6806 = vrsqrt.f32 %v3134_v35  ;;  %v6533_v35 = vld [vmem:[%s7098_s26 + $0x10] sm:$0xff]  }
 0xa75   : > { %v3135_v47 = vadd.f32 1e-05, %v3119_v36  ;;  %5674 = vmatpush3.bf16.msra.mxu0 %v6533_v35  ;;  %6284 = vmatpush3.bf16.msra.mxu1 %v6533_v35 }
 0xa77   : > { %6808 = vrsqrt.f32 %v3135_v47 }
 0xa7c   : > { %v6803_v13 = vpop.eup %6802 }
 0xa7d   : > { %v3090_v19 = vpop.xlane.xlu1 %3089  ;;  %v3164_v49 = vmul.f32 %v6803_v13, %v8632_v22 }
 0xa7e   : > { %v3120_v16 = vmul.f32 0.015625, %v3090_v19 }
 0xa7f   : > { %v3184_v3 = vmul.f32 %v8714_v33, %v3164_v49 }
 0xa80   : > { %v3136_v25 = vadd.f32 1e-05, %v3120_v16  ;;  %v6805_v1 = vpop.eup %6804  ;;  %v6535_v16 = vld [vmem:[%s7098_s26 + $0x8] sm:$0xff]  }
 0xa81   : > { %v3096_v54 = vpop.xlane.xlu1 %3095  ;;  %v3093_v12 = vpop.xlane.xlu0 %3092  ;;  %v3165_v28 = vmul.f32 %v6805_v1, %v8640_v2  ;;  %v8755_v61 = vadd.f32 %v8722_v48, %v3184_v3 }
 0xa82   : > { %6810 = vrsqrt.f32 %v3136_v25  ;;  %v3122_v8 = vmul.f32 0.015625, %v3096_v54  ;;  %v3121_v57 = vmul.f32 0.015625, %v3093_v12  ;;  %v6807_v20 = vpop.eup %6806 }
 0xa83   : > { %v3185_v17 = vmul.f32 %v8714_v33, %v3165_v28  ;;  %v3166_v46 = vmul.f32 %v6807_v20, %v8637_v26 }
 0xa84   : > { %v6809_v14 = vpop.eup %6808  ;;  %v3137_v63 = vadd.f32 1e-05, %v3121_v57  ;;  %v3138_v29 = vadd.f32 1e-05, %v3122_v8  ;;  %v6536_v8 = vld [vmem:[%s7098_s26 + $0x40] sm:$0xff]  }
 0xa85   : > { %v3099_v43 = vpop.xlane.xlu0 %3098  ;;  %v3167_v22 = vmul.f32 %v6809_v14, %v8648_v0  ;;  %v8758_v50 = vadd.f32 %v8722_v48, %v3185_v17  ;;  %v3186_v40 = vmul.f32 %v8714_v33, %v3166_v46  ;;  %v6537_v57 = vld [vmem:[%s7098_s26] sm:$0xff]  }
 0xa86   : > { %v3123_v62 = vmul.f32 0.015625, %v3099_v43  ;;  %6812 = vrsqrt.f32 %v3137_v63 }
 0xa87   : > { %v3218_v37 = vpack.c.bf16 %v8758_v50, %v8755_v61  ;;  %v3187_v21 = vmul.f32 %v8714_v33, %v3167_v22  ;;  %6814 = vrsqrt.f32 %v3138_v29  ;;  %v8771_v41 = vadd.f32 %v8722_v48, %v3186_v40 }
 0xa88   : > { %v3139_v2 = vadd.f32 1e-05, %v3123_v62 }
 0xa89   : > { %v3102_v6 = vpop.xlane.xlu1 %3101  ;;  %5394 = vmatmul.mubr.msk.bf16.gmra.mxu1 %vm517_vm1, %v3218_v37  ;;  %v8768_v26 = vadd.f32 %v8722_v48, %v3187_v21 }
 0xa8a   : > { %6816 = vrsqrt.f32 %v3139_v2  ;;  %v3124_v0 = vmul.f32 0.015625, %v3102_v6  ;;  %3366 = vmatprep.mubr.bf16.mxu1 %v10317_v11 }
 0xa8b   : > { %v3219_v42 = vpack.c.bf16 %v8768_v26, %v8771_v41 }
 0xa8c   : > { %v3140_v45 = vadd.f32 1e-05, %v3124_v0 }
 0xa8d   : > { %v3105_v18 = vpop.xlane.xlu0 %3104  ;;  %v3108_v52 = vpop.xlane.xlu1 %3107 }
 0xa8e   : > { %v3125_v24 = vmul.f32 0.015625, %v3105_v18  ;;  %6818 = vrsqrt.f32 %v3140_v45  ;;  %v3126_v55 = vmul.f32 0.015625, %v3108_v52  ;;  %v3234_v52 = vsub.s32 2, %v10316_v34 }
 0xa8f   : > { %v6811_v27 = vpop.eup %6810 }
 0xa90   : > { %v3141_v44 = vadd.f32 1e-05, %v3125_v24  ;;  %v3168_v31 = vmul.f32 %v6811_v27, %v8656_v7  ;;  %v3142_v47 = vadd.f32 1e-05, %v3126_v55  ;;  %v6534_v7 = vld [vmem:[%s7098_s26 + $0x48] sm:$0xff]  }
 0xa91   : > { %v3111_v38 = vpop.xlane.xlu0 %3110  ;;  %5395 = vmatmul.mubr.msk.bf16.gmra.mxu1 %vm517_vm1, %v3219_v42  ;;  %5675 = vmatprep.subr.bf16.mxu0 %v6534_v7  ;;  %v6875_v27 = vld [vmem:[%s7103_s14 + $0x8] sm:$0xff] }
 0xa92   : > { %v3127_v53 = vmul.f32 0.015625, %v3111_v38  ;;  %6820 = vrsqrt.f32 %v3141_v44  ;;  %3376 = vmatprep.mubr.bf16.mxu1 %v10317_v11  ;;  %v3188_v19 = vmul.f32 %v8714_v33, %v3168_v31  ;;  %6277 = vmatprep.subr.bf16.mxu1 %v6534_v7  ;;  %v8840_v44 = vrot.slane %v6875_v27, %v3234_v52 }
 0xa93   : > { %v6813_v4 = vpop.eup %6812  ;;  %5676 = vmatpush3.bf16.msra.mxu0 %v6535_v16  ;;  %6285 = vmatpush3.bf16.msra.mxu1 %v6535_v16 }
 0xa94   : > { %v3143_v36 = vadd.f32 1e-05, %v3127_v53  ;;  %v3169_v13 = vmul.f32 %v6813_v4, %v8664_v23  ;;  %v6815_v49 = vpop.eup %6814  ;;  %v8787_v23 = vadd.f32 %v8722_v48, %v3188_v19  ;;  %5677 = vmatprep.subr.bf16.mxu0 %v6536_v8  ;;  %6278 = vmatprep.subr.bf16.mxu1 %v6536_v8 }
 0xa95   : > { %v3170_v3 = vmul.f32 %v6815_v49, %v8661_v51 }
 0xa96   : > { %6822 = vrsqrt.f32 %v3143_v36  ;;  %v3189_v1 = vmul.f32 %v8714_v33, %v3169_v13 }
 0xa97   : > { %v6817_v25 = vpop.eup %6816  ;;  %6824 = vrsqrt.f32 %v3142_v47  ;;  %5678 = vmatpush3.bf16.msra.mxu0 %v6537_v57  ;;  %6286 = vmatpush3.bf16.msra.mxu1 %v6537_v57 }
 0xa98   : > { %v3171_v54 = vmul.f32 %v6817_v25, %v8672_v15  ;;  %v8790_v12 = vadd.f32 %v8722_v48, %v3189_v1  ;;  %v3190_v15 = vmul.f32 %v8714_v33, %v3170_v3 }
 0xa9a   : > { %v3220_v28 = vpack.c.bf16 %v8790_v12, %v8787_v23  ;;  %v3191_v20 = vmul.f32 %v8714_v33, %v3171_v54  ;;  %v8805_v17 = vadd.f32 %v8722_v48, %v3190_v15 }
 0xa9b   : > { %v6819_v14 = vpop.eup %6818 }
 0xa9c   : > { %5396 = vmatmul.mubr.msk.bf16.gmra.mxu1 %vm517_vm1, %v3220_v28  ;;  %v8802_v51 = vadd.f32 %v8722_v48, %v3191_v20  ;;  %v3172_v29 = vmul.f32 %v6819_v14, %v8679_v10 }
 0xa9d   : > { %3386 = vmatprep.mubr.bf16.mxu1 %v10317_v11 }
 0xa9e   : > { %v3221_v22 = vpack.c.bf16 %v8802_v51, %v8805_v17  ;;  %v3192_v2 = vmul.f32 %v8714_v33, %v3172_v29 }
 0xa9f   : > { %v6821_v63 = vpop.eup %6820 }
 0xaa0   : > { %v3173_v43 = vmul.f32 %v6821_v63, %v8688_v56  ;;  %v8820_v56 = vadd.f32 %v8722_v48, %v3192_v2 }
 0xaa2   : > { %v3193_v62 = vmul.f32 %v8714_v33, %v3173_v43 }
 0xaa3   : > { %v6823_v46 = vpop.eup %6822 }
 0xaa4   : > { %5397 = vmatmul.mubr.msk.bf16.gmra.mxu1 %vm517_vm1, %v3221_v22  ;;  %v6825_v37 = vpop.eup %6824  ;;  %v8816_v21 = vadd.f32 %v8722_v48, %v3193_v62  ;;  %v3175_v10 = vmul.f32 %v6823_v46, %v8696_v58 }
 0xaa5   : > { %3396 = vmatprep.mubr.bf16.mxu1 %v10317_v11  ;;  %v3174_v6 = vmul.f32 %v6825_v37, %v8685_v9 }
 0xaa6   : > { %v3222_v0 = vpack.c.bf16 %v8816_v21, %v8820_v56  ;;  %v3195_v40 = vmul.f32 %v8714_v33, %v3175_v10 }
 0xaa7   : > { %v3194_v45 = vmul.f32 %v8714_v33, %v3174_v6  ;;  %v8843_v33 = vrot.slane %v8514_v60, %v3234_v52 }
 0xaa8   : > { %v8830_v18 = vadd.f32 %v8722_v48, %v3195_v40 }
 0xaa9   : > { %v8833_v58 = vadd.f32 %v8722_v48, %v3194_v45 }
 0xaab   : > { %v3223_v9 = vpack.c.bf16 %v8830_v18, %v8833_v58 }
 0xaac   : > { %5398 = vmatmul.mubr.msk.bf16.gmra.mxu1 %vm517_vm1, %v3222_v0 }
 0xaad   : > { %3406 = vmatprep.mubr.bf16.mxu1 %v10317_v11 }
 0xab4   : > { %5399 = vmatmul.mubr.msk.bf16.gmra.mxu1 %vm517_vm1, %v3223_v9 }
 0xb0f   : > { %v3338_v24 = vpop.f32.mrf.mxu1 }
 0xb10   : > { %v3339_v38 = vadd.f32 %v3338_v24, %v8843_v33 }
 0xb11   : > { %v3340_v11 = vpop.f32.mrf.mxu1 }
 0xb12   : > { %v3341_v55 = vadd.f32 %v3340_v11, %v8840_v44  ;;  %v3417_v47 = vmax.f32 %v3339_v38, 0.0 }
 0xb13   : > { %v3342_v42 = vpop.f32.mrf.mxu1 }
 0xb14   : > { %v3343_v48 = vadd.f32 %v3342_v42, %v8843_v33  ;;  %v3418_v4 = vmax.f32 %v3341_v55, 0.0 }
 0xb15   : > { %v3344_v31 = vpop.f32.mrf.mxu1 }
 0xb16   : > { %v3345_v30 = vadd.f32 %v3344_v31, %v8840_v44  ;;  %v3419_v53 = vmax.f32 %v3343_v48, 0.0 }
 0xb17   : > { %v3348_v35 = vpop.f32.mrf.mxu1 }
 0xb18   : > { %v3420_v36 = vmax.f32 %v3345_v30, 0.0  ;;  %v3449_v60 = vpack.c.bf16 %v3419_v53, %v3417_v47  ;;  %v3349_v25 = vadd.f32 %v3348_v35, %v8843_v33 }
 0xb19   : > { %v3350_v13 = vpop.f32.mrf.mxu1 }
 0xb1a   : > { %v3450_v19 = vpack.c.bf16 %v3420_v36, %v3418_v4  ;;  %v3351_v49 = vadd.f32 %v3350_v13, %v8840_v44  ;;  %v3421_v28 = vmax.f32 %v3349_v25, 0.0 }
 0xb1b   : > { %v3352_v7 = vpop.f32.mrf.mxu1 }
 0xb1c   : > { %v3353_v16 = vadd.f32 %v3352_v7, %v8843_v33  ;;  %3629 = vmatprep.mubr.bf16.mxu0 %v3450_v19  ;;  %v3422_v8 = vmax.f32 %v3351_v49, 0.0 }
 0xb1d   : > { %v3354_v1 = vpop.f32.mrf.mxu1  ;;  %3630 = vmatmul.mubr.bf16.vlgmr.msra.gmra.mxu0 %v3449_v60 }
 0xb1e   : > { %v3355_v54 = vadd.f32 %v3354_v1, %v8840_v44  ;;  %v3423_v3 = vmax.f32 %v3353_v16, 0.0 }
 0xb20   : > { %v3424_v57 = vmax.f32 %v3355_v54, 0.0  ;;  %v3451_v15 = vpack.c.bf16 %v3423_v3, %v3421_v28 }
 0xb22   : > { %v3452_v20 = vpack.c.bf16 %v3424_v57, %v3422_v8 }
 0xb24   : > { %3637 = vmatprep.mubr.bf16.mxu0 %v3452_v20 }
 0xb25   : > { %3638 = vmatmul.mubr.bf16.gmra.mxu0 %v3451_v15 }
 0xb49   : > { %v3358_v14 = vpop.f32.mrf.mxu1 }
 0xb4a   : > { %v3359_v62 = vadd.f32 %v3358_v14, %v8843_v33 }
 0xb4b   : > { %v3360_v63 = vpop.f32.mrf.mxu1 }
 0xb4c   : > { %v3361_v43 = vadd.f32 %v3360_v63, %v8840_v44  ;;  %v3425_v40 = vmax.f32 %v3359_v62, 0.0 }
 0xb4d   : > { %v3362_v29 = vpop.f32.mrf.mxu1 }
 0xb4e   : > { %v3363_v22 = vadd.f32 %v3362_v29, %v8843_v33  ;;  %v3426_v6 = vmax.f32 %v3361_v43, 0.0 }
 0xb4f   : > { %v3364_v46 = vpop.f32.mrf.mxu1 }
 0xb50   : > { %v3365_v2 = vadd.f32 %v3364_v46, %v8840_v44  ;;  %v3427_v37 = vmax.f32 %v3363_v22, 0.0 }
 0xb51   : > { %v3368_v10 = vpop.f32.mrf.mxu1 }
 0xb52   : > { %v3428_v0 = vmax.f32 %v3365_v2, 0.0  ;;  %v3453_v52 = vpack.c.bf16 %v3427_v37, %v3425_v40  ;;  %v3369_v42 = vadd.f32 %v3368_v10, %v8843_v33 }
 0xb53   : > { %v3370_v45 = vpop.f32.mrf.mxu1 }
 0xb54   : > { %v3454_v9 = vpack.c.bf16 %v3428_v0, %v3426_v6  ;;  %v3371_v27 = vadd.f32 %v3370_v45, %v8840_v44  ;;  %v3429_v53 = vmax.f32 %v3369_v42, 0.0 }
 0xb55   : > { %v3372_v24 = vpop.f32.mrf.mxu1 }
 0xb56   : > { %v3373_v11 = vadd.f32 %v3372_v24, %v8843_v33  ;;  %3645 = vmatprep.mubr.bf16.mxu0 %v3454_v9  ;;  %v3430_v31 = vmax.f32 %v3371_v27, 0.0 }
 0xb57   : > { %v3374_v55 = vpop.f32.mrf.mxu1  ;;  %3646 = vmatmul.mubr.bf16.gmra.mxu0 %v3453_v52 }
 0xb58   : > { %v3375_v48 = vadd.f32 %v3374_v55, %v8840_v44  ;;  %v3431_v38 = vmax.f32 %v3373_v11, 0.0 }
 0xb5a   : > { %v3432_v30 = vmax.f32 %v3375_v48, 0.0  ;;  %v3455_v36 = vpack.c.bf16 %v3431_v38, %v3429_v53 }
 0xb5c   : > { %v3456_v35 = vpack.c.bf16 %v3432_v30, %v3430_v31  ;;  %v3378_v4 = vpop.f32.mrf.mxu1 }
 0xb5d   : > { %v3379_v7 = vadd.f32 %v3378_v4, %v8843_v33 }
 0xb5e   : > { %v3380_v47 = vpop.f32.mrf.mxu1  ;;  %3653 = vmatprep.mubr.bf16.mxu0 %v3456_v35 }
 0xb5f   : > { %3654 = vmatmul.mubr.bf16.gmra.mxu0 %v3455_v36  ;;  %v3381_v19 = vadd.f32 %v3380_v47, %v8840_v44  ;;  %v3433_v8 = vmax.f32 %v3379_v7, 0.0 }
 0xb60   : > { %v3382_v13 = vpop.f32.mrf.mxu1 }
 0xb61   : > { %v3383_v60 = vadd.f32 %v3382_v13, %v8843_v33  ;;  %v3434_v54 = vmax.f32 %v3381_v19, 0.0 }
 0xb62   : > { %v3384_v49 = vpop.f32.mrf.mxu1 }
 0xb63   : > { %v3385_v16 = vadd.f32 %v3384_v49, %v8840_v44  ;;  %v3435_v25 = vmax.f32 %v3383_v60, 0.0 }
 0xb64   : > { %v3388_v1 = vpop.f32.mrf.mxu1 }
 0xb65   : > { %v3436_v3 = vmax.f32 %v3385_v16, 0.0  ;;  %v3457_v20 = vpack.c.bf16 %v3435_v25, %v3433_v8  ;;  %v3389_v29 = vadd.f32 %v3388_v1, %v8843_v33 }
 0xb66   : > { %v3390_v57 = vpop.f32.mrf.mxu1 }
 0xb67   : > { %v3458_v28 = vpack.c.bf16 %v3436_v3, %v3434_v54  ;;  %v3391_v14 = vadd.f32 %v3390_v57, %v8840_v44  ;;  %v3437_v10 = vmax.f32 %v3389_v29, 0.0  ;;  %v3499_v3 = vsub.s32 3, %v10316_v34  ;;  %v8879_v57 = vld [vmem:[%s7103_s14] sm:$0xff] }
 0xb68   : > { %v3392_v15 = vpop.f32.mrf.mxu1 }
 0xb69   : > { %v3393_v63 = vadd.f32 %v3392_v15, %v8843_v33  ;;  %3661 = vmatprep.mubr.bf16.mxu0 %v3458_v28  ;;  %v3438_v2 = vmax.f32 %v3391_v14, 0.0  ;;  %v8882_v28 = vrot.slane %v8879_v57, %v3499_v3 }
 0xb6a   : > { %v3394_v43 = vpop.f32.mrf.mxu1  ;;  %3662 = vmatmul.mubr.bf16.gmra.mxu0 %v3457_v20 }
 0xb6b   : > { %v3395_v22 = vadd.f32 %v3394_v43, %v8840_v44  ;;  %v3439_v62 = vmax.f32 %v3393_v63, 0.0 }
 0xb6c   : > { %v3398_v46 = vpop.f32.mrf.mxu1 }
 0xb6d   : > { %v3440_v37 = vmax.f32 %v3395_v22, 0.0  ;;  %v3459_v40 = vpack.c.bf16 %v3439_v62, %v3437_v10  ;;  %v3399_v24 = vadd.f32 %v3398_v46, %v8843_v33 }
 0xb6e   : > { %v3400_v6 = vpop.f32.mrf.mxu1 }
 0xb6f   : > { %v3460_v0 = vpack.c.bf16 %v3440_v37, %v3438_v2  ;;  %v3401_v9 = vadd.f32 %v3400_v6, %v8840_v44  ;;  %v3441_v31 = vmax.f32 %v3399_v24, 0.0 }
 0xb70   : > { %v3402_v45 = vpop.f32.mrf.mxu1 }
 0xb71   : > { %v3403_v52 = vadd.f32 %v3402_v45, %v8843_v33  ;;  %3669 = vmatprep.mubr.bf16.mxu0 %v3460_v0  ;;  %v3442_v48 = vmax.f32 %v3401_v9, 0.0 }
 0xb72   : > { %v3404_v27 = vpop.f32.mrf.mxu1  ;;  %3670 = vmatmul.mubr.bf16.gmra.mxu0 %v3459_v40 }
 0xb73   : > { %v3405_v11 = vadd.f32 %v3404_v27, %v8840_v44  ;;  %v3443_v42 = vmax.f32 %v3403_v52, 0.0 }
 0xb74   : > { %v3408_v55 = vpop.f32.mrf.mxu1 }
 0xb75   : > { %v3444_v38 = vmax.f32 %v3405_v11, 0.0  ;;  %v3461_v35 = vpack.c.bf16 %v3443_v42, %v3441_v31  ;;  %v3409_v13 = vadd.f32 %v3408_v55, %v8843_v33 }
 0xb76   : > { %v3410_v30 = vpop.f32.mrf.mxu1 }
 0xb77   : > { %v3462_v53 = vpack.c.bf16 %v3444_v38, %v3442_v48  ;;  %v3411_v36 = vadd.f32 %v3410_v30, %v8840_v44  ;;  %v3445_v25 = vmax.f32 %v3409_v13, 0.0 }
 0xb78   : > { %v3412_v4 = vpop.f32.mrf.mxu1 }
 0xb79   : > { %v3413_v47 = vadd.f32 %v3412_v4, %v8843_v33  ;;  %3677 = vmatprep.mubr.bf16.mxu0 %v3462_v53  ;;  %v3446_v49 = vmax.f32 %v3411_v36, 0.0 }
 0xb7a   : > { %v3414_v19 = vpop.f32.mrf.mxu1  ;;  %3678 = vmatmul.mubr.bf16.gmra.mxu0 %v3461_v35 }
 0xb7b   : > { %v3415_v60 = vadd.f32 %v3414_v19, %v8840_v44  ;;  %v3447_v7 = vmax.f32 %v3413_v47, 0.0 }
 0xb7d   : > { %v3448_v16 = vmax.f32 %v3415_v60, 0.0  ;;  %v3463_v54 = vpack.c.bf16 %v3447_v7, %v3445_v25 }
 0xb7f   : > { %v3464_v1 = vpack.c.bf16 %v3448_v16, %v3446_v49 }
 0xb81   : > { %3685 = vmatprep.mubr.bf16.mxu1 %v3464_v1 }
 0xb82   : > { %3686 = vmatmul.mubr.bf16.vlgmr.msra.gmra.mxu1 %v3463_v54 }
 0xbdd   : > { %v5679_v8 = vpop.f32.mrf.mxu0 }
 0xbdf   : > { %v5680_v33 = vpop.f32.mrf.mxu0 }
 0xbe0   : > { %v5681_v20 = vadd.f32 %v5680_v33, %v5679_v8 }
 0xbe1   : > { %v5682_v15 = vpop.f32.mrf.mxu0 }
 0xbe2   : > { %v3632_v44 = vadd.f32 %v5681_v20, %v8882_v28 }
 0xbe3   : > { %v5683_v14 = vpop.f32.mrf.mxu0 }
 0xbe4   : > { %v5684_v63 = vadd.f32 %v5683_v14, %v5682_v15  ;;  %v8886_v29 = vadd.f32 %v3632_v44, %v8727_v59 }
 0xbe5   : > { %v5685_v43 = vpop.f32.mrf.mxu0 }
 0xbe6   : > { %v3635_v22 = vadd.f32 %v5684_v63, %v8882_v28  ;;  %v3710_v62 = vsel %vm517_vm1, %v8886_v29, 0.0 }
 0xbe7   : > { %3711 = vadd.xlane.f32.xlu1 %v3710_v62  ;;  %v5686_v46 = vpop.f32.mrf.mxu0 }
 0xbe8   : > { %v5687_v2 = vadd.f32 %v5686_v46, %v5685_v43  ;;  %v8892_v37 = vadd.f32 %v3635_v22, %v8730_v5 }
 0xbe9   : > { %v5688_v10 = vpop.f32.mrf.mxu0 }
 0xbea   : > { %v3640_v6 = vadd.f32 %v5687_v2, %v8882_v28  ;;  %v3713_v0 = vsel %vm517_vm1, %v8892_v37, 0.0 }
 0xbeb   : > { %3714 = vadd.xlane.f32.xlu0 %v3713_v0  ;;  %v5689_v59 = vpop.f32.mrf.mxu0 }
 0xbec   : > { %v5690_v40 = vadd.f32 %v5689_v59, %v5688_v10  ;;  %v8898_v45 = vadd.f32 %v3640_v6, %v8743_v39 }
 0xbee   : > { %v3643_v9 = vadd.f32 %v5690_v40, %v8882_v28  ;;  %v3716_v52 = vsel %vm517_vm1, %v8898_v45, 0.0 }
 0xbef   : > { %3717 = vadd.xlane.f32.xlu1 %v3716_v52 }
 0xbf0   : > { %v8904_v5 = vadd.f32 %v3643_v9, %v8740_v32 }
 0xbf2   : > { %v3719_v24 = vsel %vm517_vm1, %v8904_v5, 0.0 }
 0xbf3   : > { %3720 = vadd.xlane.f32.xlu0 %v3719_v24 }
 0xc17   : > { %v5691_v27 = vpop.f32.mrf.mxu0 }
 0xc19   : > { %v5692_v11 = vpop.f32.mrf.mxu0 }
 0xc1a   : > { %v5693_v42 = vadd.f32 %v5692_v11, %v5691_v27 }
 0xc1b   : > { %v5694_v55 = vpop.f32.mrf.mxu0 }
 0xc1c   : > { %v3648_v39 = vadd.f32 %v5693_v42, %v8882_v28 }
 0xc1d   : > { %v5695_v48 = vpop.f32.mrf.mxu0 }
 0xc1e   : > { %v5696_v38 = vadd.f32 %v5695_v48, %v5694_v55  ;;  %v8910_v31 = vadd.f32 %v3648_v39, %v8755_v61 }
 0xc1f   : > { %v5697_v30 = vpop.f32.mrf.mxu0 }
 0xc20   : > { %v3651_v53 = vadd.f32 %v5696_v38, %v8882_v28  ;;  %v3722_v32 = vsel %vm517_vm1, %v8910_v31, 0.0 }
 0xc21   : > { %3723 = vadd.xlane.f32.xlu1 %v3722_v32  ;;  %v5698_v35 = vpop.f32.mrf.mxu0 }
 0xc22   : > { %v5699_v4 = vadd.f32 %v5698_v35, %v5697_v30  ;;  %v8916_v36 = vadd.f32 %v3651_v53, %v8758_v50 }
 0xc23   : > { %v5700_v47 = vpop.f32.mrf.mxu0 }
 0xc24   : > { %v3656_v13 = vadd.f32 %v5699_v4, %v8882_v28  ;;  %v3725_v19 = vsel %vm517_vm1, %v8916_v36, 0.0 }
 0xc25   : > { %3726 = vadd.xlane.f32.xlu0 %v3725_v19  ;;  %v5701_v61 = vpop.f32.mrf.mxu0 }
 0xc26   : > { %v5702_v60 = vadd.f32 %v5701_v61, %v5700_v47  ;;  %v8922_v7 = vadd.f32 %v3656_v13, %v8771_v41 }
 0xc28   : > { %v3659_v49 = vadd.f32 %v5702_v60, %v8882_v28  ;;  %v3728_v16 = vsel %vm517_vm1, %v8922_v7, 0.0 }
 0xc29   : > { %3729 = vadd.xlane.f32.xlu1 %v3728_v16 }
 0xc2a   : > { %v5703_v50 = vpop.f32.mrf.mxu0  ;;  %v8928_v25 = vadd.f32 %v3659_v49, %v8768_v26 }
 0xc2c   : > { %v5704_v1 = vpop.f32.mrf.mxu0  ;;  %v3731_v54 = vsel %vm517_vm1, %v8928_v25, 0.0 }
 0xc2d   : > { %v5705_v3 = vadd.f32 %v5704_v1, %v5703_v50  ;;  %3732 = vadd.xlane.f32.xlu0 %v3731_v54 }
 0xc2e   : > { %v5706_v8 = vpop.f32.mrf.mxu0 }
 0xc2f   : > { %v3664_v41 = vadd.f32 %v5705_v3, %v8882_v28 }
 0xc30   : > { %v5707_v33 = vpop.f32.mrf.mxu0 }
 0xc31   : > { %v5708_v20 = vadd.f32 %v5707_v33, %v5706_v8  ;;  %v8934_v15 = vadd.f32 %v3664_v41, %v8787_v23 }
 0xc32   : > { %v5709_v44 = vpop.f32.mrf.mxu0 }
 0xc33   : > { %v3667_v14 = vadd.f32 %v5708_v20, %v8882_v28  ;;  %v3734_v26 = vsel %vm517_vm1, %v8934_v15, 0.0 }
 0xc34   : > { %3735 = vadd.xlane.f32.xlu1 %v3734_v26  ;;  %v5710_v63 = vpop.f32.mrf.mxu0 }
 0xc35   : > { %v5711_v43 = vadd.f32 %v5710_v63, %v5709_v44  ;;  %v8940_v22 = vadd.f32 %v3667_v14, %v8790_v12 }
 0xc36   : > { %v5712_v62 = vpop.f32.mrf.mxu0 }
 0xc37   : > { %v3672_v46 = vadd.f32 %v5711_v43, %v8882_v28  ;;  %v3737_v2 = vsel %vm517_vm1, %v8940_v22, 0.0 }
 0xc38   : > { %3738 = vadd.xlane.f32.xlu0 %v3737_v2  ;;  %v5713_v23 = vpop.f32.mrf.mxu0 }
 0xc39   : > { %v5714_v10 = vadd.f32 %v5713_v23, %v5712_v62  ;;  %v8946_v6 = vadd.f32 %v3672_v46, %v8805_v17 }
 0xc3a   : > { %v5715_v0 = vpop.f32.mrf.mxu0 }
 0xc3b   : > { %v3675_v59 = vadd.f32 %v5714_v10, %v8882_v28  ;;  %v3740_v40 = vsel %vm517_vm1, %v8946_v6, 0.0 }
 0xc3c   : > { %3741 = vadd.xlane.f32.xlu1 %v3740_v40  ;;  %v5716_v12 = vpop.f32.mrf.mxu0 }
 0xc3d   : > { %v5717_v9 = vadd.f32 %v5716_v12, %v5715_v0  ;;  %v8952_v52 = vadd.f32 %v3675_v59, %v8802_v51 }
 0xc3e   : > { %v5718_v24 = vpop.f32.mrf.mxu0 }
 0xc3f   : > { %v3680_v27 = vadd.f32 %v5717_v9, %v8882_v28  ;;  %v3743_v11 = vsel %vm517_vm1, %v8952_v52, 0.0 }
 0xc40   : > { %3744 = vadd.xlane.f32.xlu0 %v3743_v11  ;;  %v5719_v17 = vpop.f32.mrf.mxu0 }
 0xc41   : > { %v5720_v42 = vadd.f32 %v5719_v17, %v5718_v24  ;;  %v8958_v55 = vadd.f32 %v3680_v27, %v8820_v56 }
 0xc42   : > { %v5721_v39 = vpop.f32.mrf.mxu1 }
 0xc43   : > { %v3683_v48 = vadd.f32 %v5720_v42, %v8882_v28  ;;  %v3746_v38 = vsel %vm517_vm1, %v8958_v55, 0.0 }
 0xc44   : > { %3747 = vadd.xlane.f32.xlu1 %v3746_v38  ;;  %v5722_v51 = vpop.f32.mrf.mxu1 }
 0xc45   : > { %v5723_v30 = vadd.f32 %v5722_v51, %v5721_v39  ;;  %v8964_v53 = vadd.f32 %v3683_v48, %v8816_v21 }
 0xc46   : > { %v5724_v32 = vpop.f32.mrf.mxu1 }
 0xc47   : > { %v3688_v35 = vadd.f32 %v5723_v30, %v8882_v28  ;;  %v3749_v4 = vsel %vm517_vm1, %v8964_v53, 0.0 }
 0xc48   : > { %3750 = vadd.xlane.f32.xlu0 %v3749_v4  ;;  %v5725_v56 = vpop.f32.mrf.mxu1 }
 0xc49   : > { %v5726_v47 = vadd.f32 %v5725_v56, %v5724_v32  ;;  %v8970_v13 = vadd.f32 %v3688_v35, %v8833_v58 }
 0xc4b   : > { %v3691_v19 = vadd.f32 %v5726_v47, %v8882_v28  ;;  %v3752_v61 = vsel %vm517_vm1, %v8970_v13, 0.0 }
 0xc4c   : > { %3753 = vadd.xlane.f32.xlu1 %v3752_v61 }
 0xc4d   : > { %v8976_v21 = vadd.f32 %v3691_v19, %v8830_v18 }
 0xc4f   : > { %v3755_v60 = vsel %vm517_vm1, %v8976_v21, 0.0 }
 0xc50   : > { %3756 = vadd.xlane.f32.xlu0 %v3755_v60 }
 0xc70   : > { %v3712_v49 = vpop.xlane.xlu1 %3711 }
 0xc71   : > { %v3758_v16 = vmul.f32 0.015625, %v3712_v49 }
 0xc73   : > { %v8981_v50 = vsub.f32 %v8886_v29, %v3758_v16 }
 0xc74   : > { %v3715_v58 = vpop.xlane.xlu0 %3714 }
 0xc75   : > { %v3759_v1 = vmul.f32 0.015625, %v3715_v58  ;;  %v3790_v28 = vmul.f32 %v8981_v50, %v8981_v50 }
 0xc77   : > { %v8986_v54 = vsub.f32 %v8892_v37, %v3759_v1  ;;  %v3806_v18 = vsel %vm517_vm1, %v3790_v28, 0.0 }
 0xc78   : > { %v3718_v3 = vpop.xlane.xlu1 %3717  ;;  %3807 = vadd.xlane.f32.xlu1 %v3806_v18 }
 0xc79   : > { %v3760_v8 = vmul.f32 0.015625, %v3718_v3  ;;  %v3791_v41 = vmul.f32 %v8986_v54, %v8986_v54 }
 0xc7b   : > { %v8992_v33 = vsub.f32 %v8898_v45, %v3760_v8  ;;  %v3809_v29 = vsel %vm517_vm1, %v3791_v41, 0.0 }
 0xc7c   : > { %3810 = vadd.xlane.f32.xlu0 %v3809_v29  ;;  %v3721_v20 = vpop.xlane.xlu0 %3720 }
 0xc7d   : > { %v3761_v44 = vmul.f32 0.015625, %v3721_v20  ;;  %v3792_v37 = vmul.f32 %v8992_v33, %v8992_v33 }
 0xc7f   : > { %v8998_v14 = vsub.f32 %v8904_v5, %v3761_v44  ;;  %v3812_v26 = vsel %vm517_vm1, %v3792_v37, 0.0 }
 0xc80   : > { %3813 = vadd.xlane.f32.xlu1 %v3812_v26 }
 0xc81   : > { %v3793_v63 = vmul.f32 %v8998_v14, %v8998_v14 }
 0xc83   : > { %v3815_v45 = vsel %vm517_vm1, %v3793_v63, 0.0 }
 0xc84   : > { %3816 = vadd.xlane.f32.xlu0 %v3815_v45 }
 0xcaa   : > { %v3724_v43 = vpop.xlane.xlu1 %3723 }
 0xcab   : > { %v3762_v62 = vmul.f32 0.015625, %v3724_v43 }
 0xcad   : > { %v9005_v46 = vsub.f32 %v8910_v31, %v3762_v62 }
 0xcae   : > { %v3727_v2 = vpop.xlane.xlu0 %3726 }
 0xcaf   : > { %v3763_v23 = vmul.f32 0.015625, %v3727_v2  ;;  %v3794_v5 = vmul.f32 %v9005_v46, %v9005_v46 }
 0xcb1   : > { %v9010_v10 = vsub.f32 %v8916_v36, %v3763_v23  ;;  %v3818_v0 = vsel %vm517_vm1, %v3794_v5, 0.0 }
 0xcb2   : > { %v3730_v59 = vpop.xlane.xlu1 %3729  ;;  %3819 = vadd.xlane.f32.xlu1 %v3818_v0 }
 0xcb3   : > { %v3764_v40 = vmul.f32 0.015625, %v3730_v59  ;;  %v3795_v12 = vmul.f32 %v9010_v10, %v9010_v10 }
 0xcb5   : > { %v9016_v9 = vsub.f32 %v8922_v7, %v3764_v40  ;;  %v3821_v31 = vsel %vm517_vm1, %v3795_v12, 0.0 }
 0xcb6   : > { %3822 = vadd.xlane.f32.xlu0 %v3821_v31  ;;  %v3733_v24 = vpop.xlane.xlu0 %3732 }
 0xcb7   : > { %v3765_v27 = vmul.f32 0.015625, %v3733_v24  ;;  %v3796_v36 = vmul.f32 %v9016_v9, %v9016_v9 }
 0xcb9   : > { %v9022_v11 = vsub.f32 %v8928_v25, %v3765_v27  ;;  %v3824_v17 = vsel %vm517_vm1, %v3796_v36, 0.0  ;;  %v3920_v36 = vsub.s32 6, %v10316_v34 }
 0xcba   : > { %3825 = vadd.xlane.f32.xlu1 %v3824_v17 }
 0xcbb   : > { %v3797_v42 = vmul.f32 %v9022_v11, %v9022_v11 }
 0xcbd   : > { %v3736_v39 = vpop.xlane.xlu1 %3735  ;;  %v3827_v7 = vsel %vm517_vm1, %v3797_v42, 0.0  ;;  %v3940_v42 = vsub.s32 7, %v10316_v34 }
 0xcbe   : > { %v3766_v48 = vmul.f32 0.015625, %v3736_v39  ;;  %3828 = vadd.xlane.f32.xlu0 %v3827_v7  ;;  %v9079_v7 = vrot.slane %v8879_v57, %v3920_v36 }
 0xcc0   : > { %v9029_v38 = vsub.f32 %v8934_v15, %v3766_v48 }
 0xcc1   : > { %v3739_v51 = vpop.xlane.xlu0 %3738 }
 0xcc2   : > { %v3767_v30 = vmul.f32 0.015625, %v3739_v51  ;;  %v3798_v25 = vmul.f32 %v9029_v38, %v9029_v38  ;;  %v9082_v51 = vrot.slane %v8879_v57, %v3940_v42 }
 0xcc4   : > { %v9034_v32 = vsub.f32 %v8940_v22, %v3767_v30  ;;  %v3830_v35 = vsel %vm517_vm1, %v3798_v25, 0.0 }
 0xcc5   : > { %v3742_v4 = vpop.xlane.xlu1 %3741  ;;  %3831 = vadd.xlane.f32.xlu1 %v3830_v35 }
 0xcc6   : > { %v3768_v56 = vmul.f32 0.015625, %v3742_v4  ;;  %v3799_v47 = vmul.f32 %v9034_v32, %v9034_v32 }
 0xcc8   : > { %v9040_v19 = vsub.f32 %v8946_v6, %v3768_v56  ;;  %v3833_v15 = vsel %vm517_vm1, %v3799_v47, 0.0 }
 0xcc9   : > { %3834 = vadd.xlane.f32.xlu0 %v3833_v15  ;;  %v3745_v61 = vpop.xlane.xlu0 %3744 }
 0xcca   : > { %v3769_v60 = vmul.f32 0.015625, %v3745_v61  ;;  %v3800_v22 = vmul.f32 %v9040_v19, %v9040_v19 }
 0xccc   : > { %v9046_v49 = vsub.f32 %v8952_v52, %v3769_v60  ;;  %v3836_v16 = vsel %vm517_vm1, %v3800_v22, 0.0 }
 0xccd   : > { %v3748_v58 = vpop.xlane.xlu1 %3747  ;;  %3837 = vadd.xlane.f32.xlu1 %v3836_v16 }
 0xcce   : > { %v3770_v1 = vmul.f32 0.015625, %v3748_v58  ;;  %v3801_v6 = vmul.f32 %v9046_v49, %v9046_v49 }
 0xcd0   : > { %v9052_v28 = vsub.f32 %v8958_v55, %v3770_v1  ;;  %v3839_v18 = vsel %vm517_vm1, %v3801_v6, 0.0 }
 0xcd1   : > { %3840 = vadd.xlane.f32.xlu0 %v3839_v18  ;;  %v3751_v3 = vpop.xlane.xlu0 %3750 }
 0xcd2   : > { %v3771_v8 = vmul.f32 0.015625, %v3751_v3  ;;  %v3802_v52 = vmul.f32 %v9052_v28, %v9052_v28 }
 0xcd4   : > { %v9058_v41 = vsub.f32 %v8964_v53, %v3771_v8  ;;  %v3842_v29 = vsel %vm517_vm1, %v3802_v52, 0.0 }
 0xcd5   : > { %3843 = vadd.xlane.f32.xlu1 %v3842_v29  ;;  %v3754_v20 = vpop.xlane.xlu1 %3753 }
 0xcd6   : > { %v3772_v44 = vmul.f32 0.015625, %v3754_v20  ;;  %v3803_v55 = vmul.f32 %v9058_v41, %v9058_v41 }
 0xcd8   : > { %v9064_v37 = vsub.f32 %v8970_v13, %v3772_v44  ;;  %v3845_v26 = vsel %vm517_vm1, %v3803_v55, 0.0 }
 0xcd9   : > { %3846 = vadd.xlane.f32.xlu0 %v3845_v26  ;;  %v3757_v63 = vpop.xlane.xlu0 %3756 }
 0xcda   : > { %v3773_v45 = vmul.f32 0.015625, %v3757_v63  ;;  %v3804_v53 = vmul.f32 %v9064_v37, %v9064_v37 }
 0xcdc   : > { %v9070_v43 = vsub.f32 %v8976_v21, %v3773_v45  ;;  %v3848_v62 = vsel %vm517_vm1, %v3804_v53, 0.0 }
 0xcdd   : > { %3849 = vadd.xlane.f32.xlu1 %v3848_v62 }
 0xcde   : > { %v3805_v2 = vmul.f32 %v9070_v43, %v9070_v43 }
 0xce0   : > { %v3851_v13 = vsel %vm517_vm1, %v3805_v2, 0.0 }
 0xce1   : > { %3852 = vadd.xlane.f32.xlu0 %v3851_v13 }
 0xd01   : > { %v3808_v23 = vpop.xlane.xlu1 %3807 }
 0xd02   : > { %v3854_v5 = vmul.f32 0.015625, %v3808_v23 }
 0xd04   : > { %v3870_v0 = vadd.f32 1e-05, %v3854_v5 }
 0xd05   : > { %v3811_v59 = vpop.xlane.xlu0 %3810 }
 0xd06   : > { %6826 = vrsqrt.f32 %v3870_v0  ;;  %v3855_v40 = vmul.f32 0.015625, %v3811_v59 }
 0xd08   : > { %v3871_v12 = vadd.f32 1e-05, %v3855_v40 }
 0xd09   : > { %v3814_v31 = vpop.xlane.xlu1 %3813 }
 0xd0a   : > { %6828 = vrsqrt.f32 %v3871_v12  ;;  %v3856_v21 = vmul.f32 0.015625, %v3814_v31 }
 0xd0c   : > { %v3872_v24 = vadd.f32 1e-05, %v3856_v21 }
 0xd0d   : > { %v3817_v27 = vpop.xlane.xlu0 %3816 }
 0xd0e   : > { %6830 = vrsqrt.f32 %v3872_v24  ;;  %v3857_v17 = vmul.f32 0.015625, %v3817_v27 }
 0xd10   : > { %v3873_v39 = vadd.f32 1e-05, %v3857_v17 }
 0xd12   : > { %6832 = vrsqrt.f32 %v3873_v39 }
 0xd13   : > { %v6827_v48 = vpop.eup %6826 }
 0xd14   : > { %v3902_v30 = vmul.f32 %v6827_v48, %v8981_v50 }
 0xd16   : > { %v3922_v25 = vmul.f32 %v9079_v7, %v3902_v30 }
 0xd17   : > { %v6829_v35 = vpop.eup %6828 }
 0xd18   : > { %v9087_v4 = vadd.f32 %v9082_v51, %v3922_v25  ;;  %v3903_v56 = vmul.f32 %v6829_v35, %v8986_v54 }
 0xd1a   : > { %3958 = vst.msk [vmem:[#allocation2] sm:$0xff] %vm517_vm1, %v9087_v4  ;;  %v3923_v34 = vmul.f32 %v9079_v7, %v3903_v56 }
 0xd1b   : > { %v6831_v47 = vpop.eup %6830 }
 0xd1c   : > { %v9094_v15 = vadd.f32 %v9082_v51, %v3923_v34  ;;  %v3904_v57 = vmul.f32 %v6831_v47, %v8992_v33 }
 0xd1e   : > { %3959 = vst.msk [vmem:[#allocation2 + $0x8] sm:$0xff] %vm517_vm1, %v9094_v15  ;;  %v3924_v50 = vmul.f32 %v9079_v7, %v3904_v57 }
 0xd1f   : > { %v6833_v61 = vpop.eup %6832 }
 0xd20   : > { %v9101_v60 = vadd.f32 %v9082_v51, %v3924_v50  ;;  %v3905_v54 = vmul.f32 %v6833_v61, %v8998_v14 }
 0xd22   : > { %3960 = vst.msk [vmem:[#allocation2 + $0x10] sm:$0xff] %vm517_vm1, %v9101_v60  ;;  %v3925_v22 = vmul.f32 %v9079_v7, %v3905_v54 }
 0xd24   : > { %v9108_v16 = vadd.f32 %v9082_v51, %v3925_v22 }
 0xd26   : > { %3961 = vst.msk [vmem:[#allocation2 + $0x18] sm:$0xff] %vm517_vm1, %v9108_v16 }
 0xd3b   : > { %v3820_v33 = vpop.xlane.xlu1 %3819 }
 0xd3c   : > { %v3858_v58 = vmul.f32 0.015625, %v3820_v33 }
 0xd3e   : > { %v3874_v1 = vadd.f32 1e-05, %v3858_v58 }
 0xd3f   : > { %v3823_v6 = vpop.xlane.xlu0 %3822 }
 0xd40   : > { %6834 = vrsqrt.f32 %v3874_v1  ;;  %v3859_v18 = vmul.f32 0.015625, %v3823_v6 }
 0xd42   : > { %v3875_v3 = vadd.f32 1e-05, %v3859_v18 }
 0xd43   : > { %v3826_v8 = vpop.xlane.xlu1 %3825 }
 0xd44   : > { %6836 = vrsqrt.f32 %v3875_v3  ;;  %v3860_v14 = vmul.f32 0.015625, %v3826_v8 }
 0xd46   : > { %v3876_v52 = vadd.f32 1e-05, %v3860_v14 }
 0xd47   : > { %v3829_v29 = vpop.xlane.xlu0 %3828 }
 0xd48   : > { %6838 = vrsqrt.f32 %v3876_v52  ;;  %v3861_v20 = vmul.f32 0.015625, %v3829_v29 }
 0xd4a   : > { %v3877_v44 = vadd.f32 1e-05, %v3861_v20 }
 0xd4c   : > { %6840 = vrsqrt.f32 %v3877_v44 }
 0xd4d   : > { %v6835_v55 = vpop.eup %6834 }
 0xd4e   : > { %v3906_v26 = vmul.f32 %v6835_v55, %v9005_v46  ;;  %v3832_v63 = vpop.xlane.xlu1 %3831 }
 0xd4f   : > { %v3862_v45 = vmul.f32 0.015625, %v3832_v63 }
 0xd50   : > { %v3926_v53 = vmul.f32 %v9079_v7, %v3906_v26 }
 0xd51   : > { %v6837_v62 = vpop.eup %6836  ;;  %v3878_v2 = vadd.f32 1e-05, %v3862_v45 }
 0xd52   : > { %v9115_v13 = vadd.f32 %v9082_v51, %v3926_v53  ;;  %v3907_v23 = vmul.f32 %v6837_v62, %v9010_v10  ;;  %v3835_v5 = vpop.xlane.xlu0 %3834 }
 0xd53   : > { %6842 = vrsqrt.f32 %v3878_v2  ;;  %v3863_v0 = vmul.f32 0.015625, %v3835_v5 }
 0xd54   : > { %3962 = vst.msk [vmem:[#allocation2 + $0x20] sm:$0xff] %vm517_vm1, %v9115_v13  ;;  %v3927_v59 = vmul.f32 %v9079_v7, %v3907_v23 }
 0xd55   : > { %v6839_v46 = vpop.eup %6838  ;;  %v3879_v40 = vadd.f32 1e-05, %v3863_v0 }
 0xd56   : > { %v9122_v12 = vadd.f32 %v9082_v51, %v3927_v59  ;;  %v3908_v31 = vmul.f32 %v6839_v46, %v9016_v9  ;;  %v3838_v21 = vpop.xlane.xlu1 %3837 }
 0xd57   : > { %6844 = vrsqrt.f32 %v3879_v40  ;;  %v3864_v24 = vmul.f32 0.015625, %v3838_v21 }
 0xd58   : > { %3963 = vst.msk [vmem:[#allocation2 + $0x28] sm:$0xff] %vm517_vm1, %v9122_v12  ;;  %v3928_v10 = vmul.f32 %v9079_v7, %v3908_v31 }
 0xd59   : > { %v6841_v27 = vpop.eup %6840  ;;  %v3880_v36 = vadd.f32 1e-05, %v3864_v24 }
 0xd5a   : > { %v9129_v17 = vadd.f32 %v9082_v51, %v3928_v10  ;;  %v3909_v42 = vmul.f32 %v6841_v27, %v9022_v11  ;;  %v3841_v39 = vpop.xlane.xlu0 %3840 }
 0xd5b   : > { %6846 = vrsqrt.f32 %v3880_v36  ;;  %v3865_v48 = vmul.f32 0.015625, %v3841_v39 }
 0xd5c   : > { %3964 = vst.msk [vmem:[#allocation2 + $0x30] sm:$0xff] %vm517_vm1, %v9129_v17  ;;  %v3929_v9 = vmul.f32 %v9079_v7, %v3909_v42 }
 0xd5d   : > { %v3881_v30 = vadd.f32 1e-05, %v3865_v48 }
 0xd5e   : > { %v9136_v25 = vadd.f32 %v9082_v51, %v3929_v9  ;;  %v3844_v35 = vpop.xlane.xlu1 %3843 }
 0xd5f   : > { %6848 = vrsqrt.f32 %v3881_v30  ;;  %v3866_v56 = vmul.f32 0.015625, %v3844_v35 }
 0xd60   : > { %v6843_v34 = vpop.eup %6842  ;;  %3965 = vst.msk [vmem:[#allocation2 + $0x38] sm:$0xff] %vm517_vm1, %v9136_v25 }
 0xd61   : > { %v3910_v11 = vmul.f32 %v6843_v34, %v9029_v38  ;;  %v3882_v47 = vadd.f32 1e-05, %v3866_v56 }
 0xd62   : > { %v3847_v57 = vpop.xlane.xlu0 %3846 }
 0xd63   : > { %v3930_v50 = vmul.f32 %v9079_v7, %v3910_v11  ;;  %6850 = vrsqrt.f32 %v3882_v47  ;;  %v3867_v61 = vmul.f32 0.015625, %v3847_v57 }
 0xd64   : > { %v6845_v54 = vpop.eup %6844 }
 0xd65   : > { %v9143_v22 = vadd.f32 %v9082_v51, %v3930_v50  ;;  %v3911_v33 = vmul.f32 %v6845_v54, %v9034_v32  ;;  %v3883_v58 = vadd.f32 1e-05, %v3867_v61 }
 0xd66   : > { %v3850_v1 = vpop.xlane.xlu1 %3849 }
 0xd67   : > { %3966 = vst.msk [vmem:[#allocation2 + $0x40] sm:$0xff] %vm517_vm1, %v9143_v22  ;;  %v3931_v6 = vmul.f32 %v9079_v7, %v3911_v33  ;;  %6852 = vrsqrt.f32 %v3883_v58  ;;  %v3868_v38 = vmul.f32 0.015625, %v3850_v1 }
 0xd68   : > { %v6847_v18 = vpop.eup %6846 }
 0xd69   : > { %v9150_v3 = vadd.f32 %v9082_v51, %v3931_v6  ;;  %v3912_v8 = vmul.f32 %v6847_v18, %v9040_v19  ;;  %v3884_v14 = vadd.f32 1e-05, %v3868_v38 }
 0xd6a   : > { %v3853_v52 = vpop.xlane.xlu0 %3852 }
 0xd6b   : > { %3967 = vst.msk [vmem:[#allocation2 + $0x48] sm:$0xff] %vm517_vm1, %v9150_v3  ;;  %v3932_v32 = vmul.f32 %v9079_v7, %v3912_v8  ;;  %6854 = vrsqrt.f32 %v3884_v14  ;;  %v3869_v29 = vmul.f32 0.015625, %v3853_v52 }
 0xd6c   : > { %v6849_v20 = vpop.eup %6848 }
 0xd6d   : > { %v9157_v44 = vadd.f32 %v9082_v51, %v3932_v32  ;;  %v3913_v55 = vmul.f32 %v6849_v20, %v9046_v49  ;;  %v3885_v26 = vadd.f32 1e-05, %v3869_v29 }
 0xd6f   : > { %3968 = vst.msk [vmem:[#allocation2 + $0x50] sm:$0xff] %vm517_vm1, %v9157_v44  ;;  %v3933_v19 = vmul.f32 %v9079_v7, %v3913_v55  ;;  %6856 = vrsqrt.f32 %v3885_v26 }
 0xd70   : > { %v6851_v63 = vpop.eup %6850 }
 0xd71   : > { %v3953_v45 = vadd.f32 %v9082_v51, %v3933_v19  ;;  %v3914_v53 = vmul.f32 %v6851_v63, %v9052_v28 }
 0xd73   : > { %3969 = vst.msk [vmem:[#allocation2 + $0x58] sm:$0xff] %vm517_vm1, %v3953_v45  ;;  %v3934_v62 = vmul.f32 %v9079_v7, %v3914_v53 }
 0xd74   : > { %v6853_v2 = vpop.eup %6852 }
 0xd75   : > { %v3954_v23 = vadd.f32 %v9082_v51, %v3934_v62  ;;  %v3915_v49 = vmul.f32 %v6853_v2, %v9058_v41 }
 0xd77   : > { %3970 = vst.msk [vmem:[#allocation2 + $0x60] sm:$0xff] %vm517_vm1, %v3954_v23  ;;  %v3935_v5 = vmul.f32 %v9079_v7, %v3915_v49 }
 0xd78   : > { %v6855_v0 = vpop.eup %6854 }
 0xd79   : > { %v3955_v59 = vadd.f32 %v9082_v51, %v3935_v5  ;;  %v3916_v46 = vmul.f32 %v6855_v0, %v9064_v37 }
 0xd7b   : > { %3971 = vst.msk [vmem:[#allocation2 + $0x68] sm:$0xff] %vm517_vm1, %v3955_v59  ;;  %v3936_v28 = vmul.f32 %v9079_v7, %v3916_v46 }
 0xd7c   : > { %v6857_v40 = vpop.eup %6856 }
 0xd7d   : > { %v3956_v31 = vadd.f32 %v9082_v51, %v3936_v28  ;;  %v3917_v21 = vmul.f32 %v6857_v40, %v9070_v43 }
 0xd7f   : > { %3972 = vst.msk [vmem:[#allocation2 + $0x70] sm:$0xff] %vm517_vm1, %v3956_v31  ;;  %v3937_v41 = vmul.f32 %v9079_v7, %v3917_v21  ;;  %3977 = sbr.rel (%p5416_p5) target bundleno = 4004 (0xfa4), region = 60 }
 0xd81   : > { %v3957_v24 = vadd.f32 %v9082_v51, %v3937_v41 }
 0xd83   : > { %3973 = vst.msk [vmem:[#allocation2 + $0x78] sm:$0xff] %vm517_vm1, %v3957_v24 }
 0xd84   : > { %v9185_v37 = vld [vmem:[%s10161_s1 + $0x78] sm:$0xff]  ;;  %v9190_v43 = vld [vmem:[%s10162_s2] ss:$0 sm:$0xff]  ;;  %v9195_v7 = vld [vmem:[%s10161_s1 + $0x8] sm:$0xff]  ;;  %vm5207_vm5 = vcmask 0  }
 0xd85   : > { %6159 = vmatprep.subr.msk.mxu1 %vm517_vm1, %v9185_v37  ;;  %v9200_v51 = vmul.f32 %v9190_v43, %v3957_v24  ;;  %v4098_v10 = vmul.f32 %v9195_v7, %v9195_v7  ;;  %v9207_v27 = vld [vmem:[%s10161_s1] sm:$0xff]  ;;  %v9212_v36 = vld [vmem:[%s10161_s1 + $0x70] sm:$0xff]  ;;  %v9215_v42 = vmul.f32 %v9190_v43, %v3956_v31  ;;  %v9219_v39 = vmul.f32 %v9190_v43, %v9094_v15  ;;  %v9275_v47 = vld [vmem:[%s10161_s1 + $0x68] sm:$0xff] }
 0xd86   : > { %6160 = vmatpush3.xpose.msk.msra.mxu1 %vm517_vm1, %v9185_v37  ;;  %v4097_v48 = vmul.f32 %v9207_v27, %v9207_v27  ;;  %v9227_v9 = vmul.f32 %v9190_v43, %v9087_v4  ;;  %v9230_v30 = vmul.f32 %v9190_v43, %v3955_v59  ;;  %v9235_v35 = vld [vmem:[%s10161_s1 + $0x10] sm:$0xff]  ;;  %v9238_v15 = vmul.f32 %v9190_v43, %v3954_v23  ;;  %v9387_v52 = vld [vmem:[%s10161_s1 + $0x20] sm:$0xff]  ;;  %v9439_v55 = vld [vmem:[%s10161_s1 + $0x28] sm:$0xff] }
 0xd87   : > { %4016 = vst.msk [vmem:[%s10168_s8 + $0x78] sm:$0xff] %vm517_vm1, %v9200_v51  ;;  %6103 = vmatprep.subr.msk.mxu0 %vm2752_vm3, %v9200_v51  ;;  %v4116_v4 = vsel %vm517_vm1, %v4098_v10, 0.0  ;;  %6161 = vmatprep.subr.msk.mxu1 %vm517_vm1, %v9212_v36  ;;  %4015 = vst.msk [vmem:[%s10168_s8 + $0x70] sm:$0xff] %vm517_vm1, %v9215_v42  ;;  %v4034_v56 = vmul.f32 %v9219_v39, %v9219_v39  ;;  %v9289_v57 = vmul.f32 %v9190_v43, %v9101_v60  ;;  %v9305_v60 = vld [vmem:[%s10161_s1 + $0x18] sm:$0xff]  ;;  %v9450_v19 = vld [vmem:[%s10161_s1 + $0x50] sm:$0xff] }
 0xd88   : > { %4002 = vst.msk [vmem:[%s10168_s8 + $0x8] sm:$0xff] %vm517_vm1, %v9219_v39  ;;  %4117 = vadd.xlane.f32.xlu1 %v4116_v4  ;;  %v4113_v34 = vsel %vm517_vm1, %v4097_v48, 0.0  ;;  %6104 = vmatpush3.xpose.msk.msra.mxu0 %vm2752_vm3, %v9200_v51  ;;  %v4033_v11 = vmul.f32 %v9227_v9, %v9227_v9  ;;  %4001 = vst.msk [vmem:[%s10168_s8] sm:$0xff] %vm517_vm1, %v9227_v9  ;;  %v9292_v50 = vmul.f32 %v9190_v43, %v3953_v45  ;;  %v9463_v62 = vld [vmem:[%s10161_s1 + $0x30] sm:$0xff]  ;;  %v9474_v23 = vld [vmem:[%s10161_s1 + $0x48] sm:$0xff] }
 0xd89   : > { %4014 = vst.msk [vmem:[%s10168_s8 + $0x68] sm:$0xff] %vm517_vm1, %v9230_v30  ;;  %4013 = vst.msk [vmem:[%s10168_s8 + $0x60] sm:$0xff] %vm517_vm1, %v9238_v15  ;;  %4114 = vadd.xlane.f32.xlu0 %v4113_v34  ;;  %6105 = vmatprep.subr.msk.mxu0 %vm2752_vm3, %v9215_v42  ;;  %v4052_v61 = vsel %vm2752_vm3, %v4034_v56, 0.0  ;;  %v4099_v54 = vmul.f32 %v9235_v35, %v9235_v35  ;;  %v4035_v58 = vmul.f32 %v9289_v57, %v9289_v57  ;;  %v9487_v59 = vld [vmem:[%s10161_s1 + $0x38] sm:$0xff]  ;;  %v9498_v28 = vld [vmem:[%s10161_s1 + $0x40] sm:$0xff] }
 0xd8a   : > { %6162 = vmatpush3.xpose.msk.msra.mxu1 %vm517_vm1, %v9212_v36  ;;  %v4049_v33 = vsel %vm2752_vm3, %v4033_v11, 0.0  ;;  %4003 = vst.msk [vmem:[%s10168_s8 + $0x10] sm:$0xff] %vm517_vm1, %v9289_v57  ;;  %4012 = vst.msk [vmem:[%s10168_s8 + $0x58] sm:$0xff] %vm517_vm1, %v9292_v50  ;;  %v9321_v1 = vmul.f32 %v9190_v43, %v9108_v16  ;;  %v9325_v6 = vmul.f32 %v9190_v43, %v9157_v44  ;;  %6191 = vmatprep.mubr.msk.f32.mxu1 %vm517_vm1, %v9207_v27  ;;  %v9346_v16 = vld [vmem:[%s10161_s1 + $0x60] sm:$0xff] }
 0xd8b   : > { %6163 = vmatprep.subr.msk.mxu1 %vm517_vm1, %v9275_v47  ;;  %v9333_v38 = vmul.f32 %v9190_v43, %v9115_v13  ;;  %v9337_v18 = vmul.f32 %v9190_v43, %v9150_v3  ;;  %6135 = vmatprep.mubr.msk.f32.mxu0 %vm2752_vm3, %v9227_v9  ;;  %v9360_v13 = vmul.f32 %v9190_v43, %v9122_v12  ;;  %v4119_v3 = vsel %vm517_vm1, %v4099_v54, 0.0 }
 0xd8c   : > { %6106 = vmatpush3.xpose.msk.msra.mxu0 %vm2752_vm3, %v9215_v42  ;;  %4053 = vadd.xlane.f32.xlu1 %v4052_v61  ;;  %4004 = vst.msk [vmem:[%s10168_s8 + $0x18] sm:$0xff] %vm517_vm1, %v9321_v1  ;;  %4011 = vst.msk [vmem:[%s10168_s8 + $0x50] sm:$0xff] %vm517_vm1, %v9325_v6  ;;  %v4100_v8 = vmul.f32 %v9305_v60, %v9305_v60  ;;  %v9379_v12 = vmul.f32 %v9190_v43, %v9143_v22  ;;  %v4055_v14 = vsel %vm2752_vm3, %v4035_v58, 0.0 }
 0xd8d   : > { %4050 = vadd.xlane.f32.xlu0 %v4049_v33  ;;  %6107 = vmatprep.subr.msk.mxu0 %vm2752_vm3, %v9230_v30  ;;  %4005 = vst.msk [vmem:[%s10168_s8 + $0x20] sm:$0xff] %vm517_vm1, %v9333_v38  ;;  %4010 = vst.msk [vmem:[%s10168_s8 + $0x48] sm:$0xff] %vm517_vm1, %v9337_v18  ;;  %v4036_v32 = vmul.f32 %v9321_v1, %v9321_v1  ;;  %v9398_v22 = vmul.f32 %v9190_v43, %v9129_v17  ;;  %v9416_v17 = vld [vmem:[%s10161_s1 + $0x58] sm:$0xff] }
 0xd8e   : > { %6164 = vmatpush3.xpose.msk.msra.mxu1 %vm517_vm1, %v9275_v47  ;;  %4006 = vst.msk [vmem:[%s10168_s8 + $0x28] sm:$0xff] %vm517_vm1, %v9360_v13  ;;  %4009 = vst.msk [vmem:[%s10168_s8 + $0x40] sm:$0xff] %vm517_vm1, %v9379_v12  ;;  %v9409_v29 = vmul.f32 %v9190_v43, %v9136_v25  ;;  %v4122_v25 = vsel %vm517_vm1, %v4100_v8, 0.0  ;;  %v4101_v20 = vmul.f32 %v9387_v52, %v9387_v52 }
 0xd8f   : > { %6165 = vmatprep.subr.msk.mxu1 %vm517_vm1, %v9346_v16  ;;  %4007 = vst.msk [vmem:[%s10168_s8 + $0x30] sm:$0xff] %vm517_vm1, %v9398_v22  ;;  %v4058_v44 = vsel %vm2752_vm3, %v4036_v32, 0.0  ;;  %v4037_v26 = vmul.f32 %v9333_v38, %v9333_v38  ;;  %v4102_v45 = vmul.f32 %v9439_v55, %v9439_v55  ;;  %v4038_v2 = vmul.f32 %v9360_v13, %v9360_v13 }
 0xd90   : > { %6108 = vmatpush3.xpose.msk.msra.mxu0 %vm2752_vm3, %v9230_v30  ;;  %4120 = vadd.xlane.f32.xlu1 %v4119_v3  ;;  %4008 = vst.msk [vmem:[%s10168_s8 + $0x38] sm:$0xff] %vm517_vm1, %v9409_v29  ;;  %v4125_v63 = vsel %vm517_vm1, %v4101_v20, 0.0  ;;  %v4103_v5 = vmul.f32 %v9463_v62, %v9463_v62  ;;  %v4039_v46 = vmul.f32 %v9398_v22, %v9398_v22 }
 0xd91   : > { %6109 = vmatprep.subr.msk.mxu0 %vm2752_vm3, %v9238_v15  ;;  %4056 = vadd.xlane.f32.xlu0 %v4055_v14  ;;  %v4061_v53 = vsel %vm2752_vm3, %v4037_v26, 0.0  ;;  %v4128_v49 = vsel %vm517_vm1, %v4102_v45, 0.0  ;;  %v4064_v0 = vsel %vm2752_vm3, %v4038_v2, 0.0  ;;  %v4104_v31 = vmul.f32 %v9487_v59, %v9487_v59 }
 0xd92   : > { %6166 = vmatpush3.xpose.msk.msra.mxu1 %vm517_vm1, %v9346_v16  ;;  %v4131_v40 = vsel %vm517_vm1, %v4103_v5, 0.0  ;;  %v4067_v21 = vsel %vm2752_vm3, %v4039_v46, 0.0  ;;  %v4040_v41 = vmul.f32 %v9409_v29, %v9409_v29  ;;  %v4105_v43 = vmul.f32 %v9498_v28, %v9498_v28 }
 0xd93   : > { %6167 = vmatprep.subr.msk.mxu1 %vm517_vm1, %v9416_v17  ;;  %v4134_v24 = vsel %vm517_vm1, %v4104_v31, 0.0  ;;  %v4041_v48 = vmul.f32 %v9379_v12, %v9379_v12  ;;  %v4106_v56 = vmul.f32 %v9474_v23, %v9474_v23  ;;  %v4042_v11 = vmul.f32 %v9337_v18, %v9337_v18 }
 0xd94   : > { %6110 = vmatpush3.xpose.msk.msra.mxu0 %vm2752_vm3, %v9238_v15  ;;  %4123 = vadd.xlane.f32.xlu1 %v4122_v25  ;;  %v4070_v10 = vsel %vm2752_vm3, %v4040_v41, 0.0  ;;  %v4137_v4 = vsel %vm517_vm1, %v4105_v43, 0.0  ;;  %v4107_v54 = vmul.f32 %v9450_v19, %v9450_v19  ;;  %v4043_v58 = vmul.f32 %v9325_v6, %v9325_v6 }
 0xd95   : > { %6111 = vmatprep.subr.msk.mxu0 %vm2752_vm3, %v9292_v50  ;;  %4059 = vadd.xlane.f32.xlu0 %v4058_v44  ;;  %v4073_v34 = vsel %vm2752_vm3, %v4041_v48, 0.0  ;;  %v4140_v61 = vsel %vm517_vm1, %v4106_v56, 0.0  ;;  %v4076_v33 = vsel %vm2752_vm3, %v4042_v11, 0.0  ;;  %v4108_v8 = vmul.f32 %v9416_v17, %v9416_v17 }
 0xd96   : > { %6168 = vmatpush3.xpose.msk.msra.mxu1 %vm517_vm1, %v9416_v17  ;;  %v4143_v3 = vsel %vm517_vm1, %v4107_v54, 0.0  ;;  %v4079_v14 = vsel %vm2752_vm3, %v4043_v58, 0.0  ;;  %v4044_v32 = vmul.f32 %v9292_v50, %v9292_v50  ;;  %v4109_v20 = vmul.f32 %v9346_v16, %v9346_v16 }
 0xd97   : > { %6169 = vmatprep.subr.msk.mxu1 %vm517_vm1, %v9450_v19  ;;  %v4146_v25 = vsel %vm517_vm1, %v4108_v8, 0.0  ;;  %v4045_v26 = vmul.f32 %v9238_v15, %v9238_v15  ;;  %v4110_v45 = vmul.f32 %v9275_v47, %v9275_v47  ;;  %v4046_v2 = vmul.f32 %v9230_v30, %v9230_v30 }
 0xd98   : > { %6112 = vmatpush3.xpose.msk.msra.mxu0 %vm2752_vm3, %v9292_v50  ;;  %4126 = vadd.xlane.f32.xlu1 %v4125_v63  ;;  %v4082_v44 = vsel %vm2752_vm3, %v4044_v32, 0.0  ;;  %v4149_v63 = vsel %vm517_vm1, %v4109_v20, 0.0  ;;  %v4111_v5 = vmul.f32 %v9212_v36, %v9212_v36  ;;  %v4047_v46 = vmul.f32 %v9215_v42, %v9215_v42 }
 0xd99   : > { %6113 = vmatprep.subr.msk.mxu0 %vm2752_vm3, %v9325_v6  ;;  %4062 = vadd.xlane.f32.xlu0 %v4061_v53  ;;  %v4085_v53 = vsel %vm2752_vm3, %v4045_v26, 0.0  ;;  %v4112_v31 = vmul.f32 %v9185_v37, %v9185_v37  ;;  %v4048_v41 = vmul.f32 %v9200_v51, %v9200_v51 }
 0xd9a   : > { %6170 = vmatpush3.xpose.msk.msra.mxu1 %vm517_vm1, %v9450_v19 }
 0xd9b   : > { %6171 = vmatprep.subr.msk.mxu1 %vm517_vm1, %v9474_v23  ;;  %v4094_v43 = vsel %vm2752_vm3, %v4048_v41, 0.0 }
 0xd9c   : > { %6114 = vmatpush3.xpose.msk.msra.mxu0 %vm2752_vm3, %v9325_v6  ;;  %4129 = vadd.xlane.f32.xlu1 %v4128_v49  ;;  %v4152_v49 = vsel %vm517_vm1, %v4110_v45, 0.0 }
 0xd9d   : > { %6115 = vmatprep.subr.msk.mxu0 %vm2752_vm3, %v9337_v18  ;;  %4065 = vadd.xlane.f32.xlu0 %v4064_v0  ;;  %v4088_v0 = vsel %vm2752_vm3, %v4046_v2, 0.0 }
 0xd9e   : > { %6172 = vmatpush3.xpose.msk.msra.mxu1 %vm517_vm1, %v9474_v23 }
 0xd9f   : > { %6173 = vmatprep.subr.msk.mxu1 %vm517_vm1, %v9498_v28 }
 0xda0   : > { %6116 = vmatpush3.xpose.msk.msra.mxu0 %vm2752_vm3, %v9337_v18  ;;  %4132 = vadd.xlane.f32.xlu1 %v4131_v40  ;;  %v4155_v40 = vsel %vm517_vm1, %v4111_v5, 0.0 }
 0xda1   : > { %6117 = vmatprep.subr.msk.mxu0 %vm2752_vm3, %v9379_v12  ;;  %4068 = vadd.xlane.f32.xlu0 %v4067_v21  ;;  %v4091_v21 = vsel %vm2752_vm3, %v4047_v46, 0.0 }
 0xda2   : > { %6174 = vmatpush3.xpose.msk.msra.mxu1 %vm517_vm1, %v9498_v28 }
 0xda3   : > { %6175 = vmatprep.subr.msk.mxu1 %vm517_vm1, %v9487_v59 }
 0xda4   : > { %6118 = vmatpush3.xpose.msk.msra.mxu0 %vm2752_vm3, %v9379_v12  ;;  %4135 = vadd.xlane.f32.xlu1 %v4134_v24  ;;  %v4158_v24 = vsel %vm517_vm1, %v4112_v31, 0.0 }
 0xda5   : > { %6119 = vmatprep.subr.msk.mxu0 %vm2752_vm3, %v9409_v29  ;;  %4071 = vadd.xlane.f32.xlu0 %v4070_v10 }
 0xda6   : > { %6176 = vmatpush3.xpose.msk.msra.mxu1 %vm517_vm1, %v9487_v59 }
 0xda7   : > { %6177 = vmatprep.subr.msk.mxu1 %vm517_vm1, %v9463_v62 }
 0xda8   : > { %6120 = vmatpush3.xpose.msk.msra.mxu0 %vm2752_vm3, %v9409_v29  ;;  %4138 = vadd.xlane.f32.xlu1 %v4137_v4 }
 0xda9   : > { %6121 = vmatprep.subr.msk.mxu0 %vm2752_vm3, %v9398_v22  ;;  %4074 = vadd.xlane.f32.xlu0 %v4073_v34 }
 0xdaa   : > { %6178 = vmatpush3.xpose.msk.msra.mxu1 %vm517_vm1, %v9463_v62 }
 0xdab   : > { %6179 = vmatprep.subr.msk.mxu1 %vm517_vm1, %v9439_v55 }
 0xdac   : > { %6122 = vmatpush3.xpose.msk.msra.mxu0 %vm2752_vm3, %v9398_v22  ;;  %4141 = vadd.xlane.f32.xlu1 %v4140_v61 }
 0xdad   : > { %6123 = vmatprep.subr.msk.mxu0 %vm2752_vm3, %v9360_v13  ;;  %4077 = vadd.xlane.f32.xlu0 %v4076_v33  ;;  %v10318_v33 = vld [vmem:[#allocation7_spill] sm:$0xff] }
 0xdae   : > { %6180 = vmatpush3.xpose.msk.msra.mxu1 %vm517_vm1, %v9439_v55 }
 0xdaf   : > { %6181 = vmatprep.subr.msk.mxu1 %vm517_vm1, %v9387_v52 }
 0xdb0   : > { %6124 = vmatpush3.xpose.msk.msra.mxu0 %vm2752_vm3, %v9360_v13  ;;  %4144 = vadd.xlane.f32.xlu1 %v4143_v3 }
 0xdb1   : > { %6125 = vmatprep.subr.msk.mxu0 %vm2752_vm3, %v9333_v38  ;;  %4080 = vadd.xlane.f32.xlu0 %v4079_v14 }
 0xdb2   : > { %6182 = vmatpush3.xpose.msk.msra.mxu1 %vm517_vm1, %v9387_v52 }
 0xdb3   : > { %6183 = vmatprep.subr.msk.mxu1 %vm517_vm1, %v9305_v60 }
 0xdb4   : > { %6126 = vmatpush3.xpose.msk.msra.mxu0 %vm2752_vm3, %v9333_v38  ;;  %4147 = vadd.xlane.f32.xlu1 %v4146_v25 }
 0xdb5   : > { %6127 = vmatprep.subr.msk.mxu0 %vm2752_vm3, %v9321_v1  ;;  %4083 = vadd.xlane.f32.xlu0 %v4082_v44 }
 0xdb6   : > { %6184 = vmatpush3.xpose.msk.msra.mxu1 %vm517_vm1, %v9305_v60 }
 0xdb7   : > { %6185 = vmatprep.subr.msk.mxu1 %vm517_vm1, %v9235_v35 }
 0xdb8   : > { %6128 = vmatpush3.xpose.msk.msra.mxu0 %vm2752_vm3, %v9321_v1  ;;  %4150 = vadd.xlane.f32.xlu1 %v4149_v63 }
 0xdb9   : > { %6129 = vmatprep.subr.msk.mxu0 %vm2752_vm3, %v9289_v57  ;;  %4086 = vadd.xlane.f32.xlu0 %v4085_v53 }
 0xdba   : > { %6186 = vmatpush3.xpose.msk.msra.mxu1 %vm517_vm1, %v9235_v35 }
 0xdbb   : > { %6187 = vmatprep.subr.msk.mxu1 %vm517_vm1, %v9195_v7 }
 0xdbc   : > { %6130 = vmatpush3.xpose.msk.msra.mxu0 %vm2752_vm3, %v9289_v57  ;;  %4153 = vadd.xlane.f32.xlu1 %v4152_v49 }
 0xdbd   : > { %6131 = vmatprep.subr.msk.mxu0 %vm2752_vm3, %v9219_v39  ;;  %4089 = vadd.xlane.f32.xlu0 %v4088_v0 }
 0xdbe   : > { %6188 = vmatpush3.xpose.msk.msra.mxu1 %vm517_vm1, %v9195_v7 }
 0xdbf   : > { %6189 = vmatprep.subr.msk.mxu1 %vm517_vm1, %v9207_v27 }
 0xdc0   : > { %6132 = vmatpush3.xpose.msk.msra.mxu0 %vm2752_vm3, %v9219_v39  ;;  %4156 = vadd.xlane.f32.xlu1 %v4155_v40 }
 0xdc1   : > { %6133 = vmatprep.subr.msk.mxu0 %vm2752_vm3, %v9227_v9  ;;  %4092 = vadd.xlane.f32.xlu0 %v4091_v21 }
 0xdc2   : > { %6190 = vmatpush3.xpose.msk.msra.mxu1 %vm517_vm1, %v9207_v27 }
 0xdc3   : > { %6287 = vmatprep.subr.msk.mxu1 %vm2752_vm3, %v9185_v37 }
 0xdc4   : > { %4159 = vadd.xlane.f32.xlu1 %v4158_v24  ;;  %6134 = vmatpush3.xpose.msk.msra.mxu0 %vm2752_vm3, %v9227_v9 }
 0xdc5   : > { %6192 = vmatmul.mubr.msk.f32.vlgmr.msra.gmra.mxu1 %vm517_vm1, %v9195_v7  ;;  %6215 = vmatprep.subr.msk.mxu0 %vm2752_vm3, %v9185_v37 }
 0xdc6   : > { %6303 = vmatpush3.xpose.msk.msra.mxu1 %vm2752_vm3, %v9185_v37  ;;  %6194 = vmatprep.mubr.msk.f32.mxu1 %vm517_vm1, %v9235_v35 }
 0xdc7   : > { %6136 = vmatmul.mubr.msk.f32.vlgmr.msra.gmra.mxu0 %vm2752_vm3, %v9219_v39  ;;  %4095 = vadd.xlane.f32.xlu0 %v4094_v43 }
 0xdc8   : > { %6216 = vmatpush3.xpose.msk.msra.mxu0 %vm2752_vm3, %v9185_v37  ;;  %6288 = vmatprep.subr.msk.mxu1 %vm2752_vm3, %v9212_v36 }
 0xdc9   : > { %6195 = vmatmul.mubr.msk.f32.gmra.mxu1 %vm517_vm1, %v9305_v60  ;;  %6138 = vmatprep.mubr.msk.f32.mxu0 %vm2752_vm3, %v9289_v57 }
 0xdca   : > { %6304 = vmatpush3.xpose.msk.msra.mxu1 %vm2752_vm3, %v9212_v36  ;;  %6217 = vmatprep.subr.msk.mxu0 %vm2752_vm3, %v9212_v36 }
 0xdcb   : > { %6139 = vmatmul.mubr.msk.f32.gmra.mxu0 %vm2752_vm3, %v9321_v1  ;;  %6197 = vmatprep.mubr.msk.f32.mxu1 %vm517_vm1, %v9387_v52 }
 0xdcc   : > { %6218 = vmatpush3.xpose.msk.msra.mxu0 %vm2752_vm3, %v9212_v36  ;;  %6289 = vmatprep.subr.msk.mxu1 %vm2752_vm3, %v9275_v47 }
 0xdcd   : > { %6198 = vmatmul.mubr.msk.f32.gmra.mxu1 %vm517_vm1, %v9439_v55  ;;  %6141 = vmatprep.mubr.msk.f32.mxu0 %vm2752_vm3, %v9333_v38 }
 0xdce   : > { %6305 = vmatpush3.xpose.msk.msra.mxu1 %vm2752_vm3, %v9275_v47  ;;  %6219 = vmatprep.subr.msk.mxu0 %vm2752_vm3, %v9275_v47 }
 0xdcf   : > { %6142 = vmatmul.mubr.msk.f32.gmra.mxu0 %vm2752_vm3, %v9360_v13  ;;  %6200 = vmatprep.mubr.msk.f32.mxu1 %vm517_vm1, %v9463_v62 }
 0xdd0   : > { %6220 = vmatpush3.xpose.msk.msra.mxu0 %vm2752_vm3, %v9275_v47  ;;  %6290 = vmatprep.subr.msk.mxu1 %vm2752_vm3, %v9346_v16 }
 0xdd1   : > { %6201 = vmatmul.mubr.msk.f32.gmra.mxu1 %vm517_vm1, %v9487_v59  ;;  %6144 = vmatprep.mubr.msk.f32.mxu0 %vm2752_vm3, %v9398_v22 }
 0xdd2   : > { %6306 = vmatpush3.xpose.msk.msra.mxu1 %vm2752_vm3, %v9346_v16  ;;  %6221 = vmatprep.subr.msk.mxu0 %vm2752_vm3, %v9346_v16 }
 0xdd3   : > { %6145 = vmatmul.mubr.msk.f32.gmra.mxu0 %vm2752_vm3, %v9409_v29  ;;  %6203 = vmatprep.mubr.msk.f32.mxu1 %vm517_vm1, %v9498_v28 }
 0xdd4   : > { %6222 = vmatpush3.xpose.msk.msra.mxu0 %vm2752_vm3, %v9346_v16  ;;  %6291 = vmatprep.subr.msk.mxu1 %vm2752_vm3, %v9416_v17 }
 0xdd5   : > { %6204 = vmatmul.mubr.msk.f32.gmra.mxu1 %vm517_vm1, %v9474_v23  ;;  %6147 = vmatprep.mubr.msk.f32.mxu0 %vm2752_vm3, %v9379_v12 }
 0xdd6   : > { %6307 = vmatpush3.xpose.msk.msra.mxu1 %vm2752_vm3, %v9416_v17  ;;  %6223 = vmatprep.subr.msk.mxu0 %vm2752_vm3, %v9416_v17 }
 0xdd7   : > { %6148 = vmatmul.mubr.msk.f32.gmra.mxu0 %vm2752_vm3, %v9337_v18  ;;  %6206 = vmatprep.mubr.msk.f32.mxu1 %vm517_vm1, %v9450_v19 }
 0xdd8   : > { %6224 = vmatpush3.xpose.msk.msra.mxu0 %vm2752_vm3, %v9416_v17  ;;  %6292 = vmatprep.subr.msk.mxu1 %vm2752_vm3, %v9450_v19 }
 0xdd9   : > { %6207 = vmatmul.mubr.msk.f32.gmra.mxu1 %vm517_vm1, %v9416_v17  ;;  %6150 = vmatprep.mubr.msk.f32.mxu0 %vm2752_vm3, %v9325_v6 }
 0xdda   : > { %6308 = vmatpush3.xpose.msk.msra.mxu1 %vm2752_vm3, %v9450_v19  ;;  %6225 = vmatprep.subr.msk.mxu0 %vm2752_vm3, %v9450_v19 }
 0xddb   : > { %6151 = vmatmul.mubr.msk.f32.gmra.mxu0 %vm2752_vm3, %v9292_v50  ;;  %6209 = vmatprep.mubr.msk.f32.mxu1 %vm517_vm1, %v9346_v16 }
 0xddc   : > { %6226 = vmatpush3.xpose.msk.msra.mxu0 %vm2752_vm3, %v9450_v19  ;;  %6293 = vmatprep.subr.msk.mxu1 %vm2752_vm3, %v9474_v23 }
 0xddd   : > { %6210 = vmatmul.mubr.msk.f32.gmra.mxu1 %vm517_vm1, %v9275_v47  ;;  %6153 = vmatprep.mubr.msk.f32.mxu0 %vm2752_vm3, %v9238_v15 }
 0xdde   : > { %6309 = vmatpush3.xpose.msk.msra.mxu1 %vm2752_vm3, %v9474_v23  ;;  %6227 = vmatprep.subr.msk.mxu0 %vm2752_vm3, %v9474_v23 }
 0xddf   : > { %6154 = vmatmul.mubr.msk.f32.gmra.mxu0 %vm2752_vm3, %v9230_v30  ;;  %6212 = vmatprep.mubr.msk.f32.mxu1 %vm517_vm1, %v9212_v36 }
 0xde0   : > { %6228 = vmatpush3.xpose.msk.msra.mxu0 %vm2752_vm3, %v9474_v23  ;;  %6294 = vmatprep.subr.msk.mxu1 %vm2752_vm3, %v9498_v28 }
 0xde1   : > { %6213 = vmatmul.mubr.msk.f32.gmra.mxu1 %vm517_vm1, %v9185_v37  ;;  %6156 = vmatprep.mubr.msk.f32.mxu0 %vm2752_vm3, %v9215_v42 }
 0xde2   : > { %6310 = vmatpush3.xpose.msk.msra.mxu1 %vm2752_vm3, %v9498_v28  ;;  %6229 = vmatprep.subr.msk.mxu0 %vm2752_vm3, %v9498_v28 }
 0xde3   : > { %6157 = vmatmul.mubr.msk.f32.gmra.mxu0 %vm2752_vm3, %v9200_v51  ;;  %6295 = vmatprep.subr.msk.mxu1 %vm2752_vm3, %v9487_v59 }
 0xde4   : > { %6230 = vmatpush3.xpose.msk.msra.mxu0 %vm2752_vm3, %v9498_v28  ;;  %6259 = vmatprep.mubr.msk.f32.mxu1 %vm2752_vm3, %v9379_v12 }
 0xde5   : > { %6231 = vmatprep.subr.msk.mxu0 %vm2752_vm3, %v9487_v59  ;;  %6247 = vmatprep.mubr.msk.f32.mxu0 %vm2752_vm3, %v9227_v9 }
 0xde6   : > { %6311 = vmatpush3.xpose.msk.msra.mxu1 %vm2752_vm3, %v9487_v59 }
 0xde7   : > { %6296 = vmatprep.subr.msk.mxu1 %vm2752_vm3, %v9463_v62 }
 0xde8   : > { %6232 = vmatpush3.xpose.msk.msra.mxu0 %vm2752_vm3, %v9487_v59 }
 0xde9   : > { %6233 = vmatprep.subr.msk.mxu0 %vm2752_vm3, %v9463_v62 }
 0xdea   : > { %6312 = vmatpush3.xpose.msk.msra.mxu1 %vm2752_vm3, %v9463_v62 }
 0xdeb   : > { %6297 = vmatprep.subr.msk.mxu1 %vm2752_vm3, %v9439_v55 }
 0xdec   : > { %6234 = vmatpush3.xpose.msk.msra.mxu0 %vm2752_vm3, %v9463_v62 }
 0xded   : > { %6235 = vmatprep.subr.msk.mxu0 %vm2752_vm3, %v9439_v55 }
 0xdee   : > { %6313 = vmatpush3.xpose.msk.msra.mxu1 %vm2752_vm3, %v9439_v55 }
 0xdef   : > { %6298 = vmatprep.subr.msk.mxu1 %vm2752_vm3, %v9387_v52 }
 0xdf0   : > { %6236 = vmatpush3.xpose.msk.msra.mxu0 %vm2752_vm3, %v9439_v55 }
 0xdf1   : > { %6237 = vmatprep.subr.msk.mxu0 %vm2752_vm3, %v9387_v52 }
 0xdf2   : > { %6314 = vmatpush3.xpose.msk.msra.mxu1 %vm2752_vm3, %v9387_v52 }
 0xdf3   : > { %6299 = vmatprep.subr.msk.mxu1 %vm2752_vm3, %v9305_v60 }
 0xdf4   : > { %6238 = vmatpush3.xpose.msk.msra.mxu0 %vm2752_vm3, %v9387_v52 }
 0xdf5   : > { %6239 = vmatprep.subr.msk.mxu0 %vm2752_vm3, %v9305_v60 }
 0xdf6   : > { %6315 = vmatpush3.xpose.msk.msra.mxu1 %vm2752_vm3, %v9305_v60 }
 0xdf7   : > { %6300 = vmatprep.subr.msk.mxu1 %vm2752_vm3, %v9235_v35 }
 0xdf8   : > { %6240 = vmatpush3.xpose.msk.msra.mxu0 %vm2752_vm3, %v9305_v60 }
 0xdf9   : > { %6241 = vmatprep.subr.msk.mxu0 %vm2752_vm3, %v9235_v35 }
 0xdfa   : > { %6316 = vmatpush3.xpose.msk.msra.mxu1 %vm2752_vm3, %v9235_v35 }
 0xdfb   : > { %6301 = vmatprep.subr.msk.mxu1 %vm2752_vm3, %v9195_v7 }
 0xdfc   : > { %6242 = vmatpush3.xpose.msk.msra.mxu0 %vm2752_vm3, %v9235_v35 }
 0xdfd   : > { %6243 = vmatprep.subr.msk.mxu0 %vm2752_vm3, %v9195_v7 }
 0xdfe   : > { %6317 = vmatpush3.xpose.msk.msra.mxu1 %vm2752_vm3, %v9195_v7 }
 0xdff   : > { %6302 = vmatprep.subr.msk.mxu1 %vm2752_vm3, %v9207_v27 }
 0xe00   : > { %6244 = vmatpush3.xpose.msk.msra.mxu0 %vm2752_vm3, %v9195_v7 }
 0xe01   : > { %6245 = vmatprep.subr.msk.mxu0 %vm2752_vm3, %v9207_v27 }
 0xe02   : > { %6318 = vmatpush3.xpose.msk.msra.mxu1 %vm2752_vm3, %v9207_v27 }
 0xe04   : > { %6246 = vmatpush3.xpose.msk.msra.mxu0 %vm2752_vm3, %v9207_v27 }
 0xe05   : > { %6260 = vmatmul.mubr.msk.f32.vlgmr.msra.gmra.mxu1 %vm2752_vm3, %v9337_v18 }
 0xe06   : > { %6262 = vmatprep.mubr.msk.f32.mxu1 %vm2752_vm3, %v9325_v6 }
 0xe07   : > { %6248 = vmatmul.mubr.msk.f32.vlgmr.msra.gmra.mxu0 %vm2752_vm3, %v9219_v39 }
 0xe08   : > { %6250 = vmatprep.mubr.msk.f32.mxu0 %vm2752_vm3, %v9289_v57 }
 0xe09   : > { %6263 = vmatmul.mubr.msk.f32.gmra.mxu1 %vm2752_vm3, %v9292_v50 }
 0xe0a   : > { %6265 = vmatprep.mubr.msk.f32.mxu1 %vm2752_vm3, %v9238_v15 }
 0xe0b   : > { %6251 = vmatmul.mubr.msk.f32.gmra.mxu0 %vm2752_vm3, %v9321_v1 }
 0xe0c   : > { %6253 = vmatprep.mubr.msk.f32.mxu0 %vm2752_vm3, %v9333_v38 }
 0xe0d   : > { %6266 = vmatmul.mubr.msk.f32.gmra.mxu1 %vm2752_vm3, %v9230_v30 }
 0xe0e   : > { %6268 = vmatprep.mubr.msk.f32.mxu1 %vm2752_vm3, %v9215_v42 }
 0xe0f   : > { %6254 = vmatmul.mubr.msk.f32.gmra.mxu0 %vm2752_vm3, %v9360_v13 }
 0xe10   : > { %6256 = vmatprep.mubr.msk.f32.mxu0 %vm2752_vm3, %v9398_v22 }
 0xe11   : > { %v9850_v37 = vpop.xlane.xlu1 %4117  ;;  %6269 = vmatmul.mubr.msk.f32.gmra.mxu1 %vm2752_vm3, %v9200_v51 }
 0xe12   : > { %v9854_v7 = vpop.xlane.xlu0 %4114 }
 0xe13   : > { %4193 = vxpose.xlu1.b32.start [1/16] (narrow) %v9854_v7, 8  ;;  %6257 = vmatmul.mubr.msk.f32.gmra.mxu0 %vm2752_vm3, %v9409_v29 }
 0xe15   : > { %v9859_v27 = vpop.xlane.xlu1 %4053 }
 0xe16   : > { %v9861_v36 = vpop.xlane.xlu0 %4050 }
 0xe17   : > { %4194 = vxpose.xlu1.b32.cont [2/16] (narrow) %v9850_v37, 8  ;;  %4161 = vxpose.xlu0.b32.start [1/16] (narrow) %v9861_v36, 8 }
 0xe19   : > { %v9865_v42 = vpop.xlane.xlu1 %4120 }
 0xe1a   : > { %v9867_v39 = vpop.xlane.xlu0 %4056 }
 0xe1b   : > { %4195 = vxpose.xlu1.b32.cont [3/16] (narrow) %v9865_v42, 8  ;;  %4162 = vxpose.xlu0.b32.cont [2/16] (narrow) %v9859_v27, 8 }
 0xe1d   : > { %v9871_v51 = vpop.xlane.xlu1 %4123 }
 0xe1e   : > { %v9873_v9 = vpop.xlane.xlu0 %4059 }
 0xe1f   : > { %4196 = vxpose.xlu1.b32.cont [4/16] (narrow) %v9871_v51, 8  ;;  %4163 = vxpose.xlu0.b32.cont [3/16] (narrow) %v9867_v39, 8 }
 0xe21   : > { %v9877_v30 = vpop.xlane.xlu1 %4126 }
 0xe22   : > { %v9879_v35 = vpop.xlane.xlu0 %4062 }
 0xe23   : > { %4197 = vxpose.xlu1.b32.cont [5/16] (narrow) %v9877_v30, 8  ;;  %4164 = vxpose.xlu0.b32.cont [4/16] (narrow) %v9873_v9, 8 }
 0xe25   : > { %v9883_v15 = vpop.xlane.xlu1 %4129 }
 0xe26   : > { %v9885_v47 = vpop.xlane.xlu0 %4065 }
 0xe27   : > { %4198 = vxpose.xlu1.b32.cont [6/16] (narrow) %v9883_v15, 8  ;;  %4165 = vxpose.xlu0.b32.cont [5/16] (narrow) %v9879_v35, 8 }
 0xe29   : > { %v9889_v57 = vpop.xlane.xlu1 %4132 }
 0xe2a   : > { %v9891_v50 = vpop.xlane.xlu0 %4068 }
 0xe2b   : > { %4199 = vxpose.xlu1.b32.cont [7/16] (narrow) %v9889_v57, 8  ;;  %4166 = vxpose.xlu0.b32.cont [6/16] (narrow) %v9885_v47, 8 }
 0xe2d   : > { %v9895_v60 = vpop.xlane.xlu1 %4135 }
 0xe2e   : > { %v9897_v1 = vpop.xlane.xlu0 %4071 }
 0xe2f   : > { %4200 = vxpose.xlu1.b32.cont [8/16] (narrow) %v9895_v60, 8  ;;  %4167 = vxpose.xlu0.b32.cont [7/16] (narrow) %v9891_v50, 8 }
 0xe31   : > { %v9901_v6 = vpop.xlane.xlu1 %4138 }
 0xe32   : > { %v9903_v38 = vpop.xlane.xlu0 %4074 }
 0xe33   : > { %4201 = vxpose.xlu1.b32.cont [9/16] (narrow) %v9901_v6, 8  ;;  %4168 = vxpose.xlu0.b32.cont [8/16] (narrow) %v9897_v1, 8 }
 0xe35   : > { %v9907_v18 = vpop.xlane.xlu1 %4141 }
 0xe36   : > { %v9909_v16 = vpop.xlane.xlu0 %4077 }
 0xe37   : > { %4202 = vxpose.xlu1.b32.cont [10/16] (narrow) %v9907_v18, 8  ;;  %4169 = vxpose.xlu0.b32.cont [9/16] (narrow) %v9903_v38, 8 }
 0xe39   : > { %v9913_v13 = vpop.xlane.xlu1 %4144 }
 0xe3a   : > { %v9915_v12 = vpop.xlane.xlu0 %4080 }
 0xe3b   : > { %4203 = vxpose.xlu1.b32.cont [11/16] (narrow) %v9913_v13, 8  ;;  %4170 = vxpose.xlu0.b32.cont [10/16] (narrow) %v9909_v16, 8 }
 0xe3d   : > { %v9919_v52 = vpop.xlane.xlu1 %4147 }
 0xe3e   : > { %v9921_v22 = vpop.xlane.xlu0 %4083 }
 0xe3f   : > { %4204 = vxpose.xlu1.b32.cont [12/16] (narrow) %v9919_v52, 8  ;;  %4171 = vxpose.xlu0.b32.cont [11/16] (narrow) %v9915_v12, 8 }
 0xe41   : > { %v9925_v29 = vpop.xlane.xlu1 %4150 }
 0xe42   : > { %v9927_v17 = vpop.xlane.xlu0 %4086 }
 0xe43   : > { %4205 = vxpose.xlu1.b32.cont [13/16] (narrow) %v9925_v29, 8  ;;  %4172 = vxpose.xlu0.b32.cont [12/16] (narrow) %v9921_v22, 8 }
 0xe45   : > { %v9931_v55 = vpop.xlane.xlu1 %4153 }
 0xe46   : > { %v9933_v19 = vpop.xlane.xlu0 %4089 }
 0xe47   : > { %4206 = vxpose.xlu1.b32.cont [14/16] (narrow) %v9931_v55, 8  ;;  %4173 = vxpose.xlu0.b32.cont [13/16] (narrow) %v9927_v17, 8 }
 0xe49   : > { %v9937_v62 = vpop.xlane.xlu1 %4156 }
 0xe4a   : > { %v9939_v23 = vpop.xlane.xlu0 %4092 }
 0xe4b   : > { %4207 = vxpose.xlu1.b32.cont [15/16] (narrow) %v9937_v62, 8  ;;  %4174 = vxpose.xlu0.b32.cont [14/16] (narrow) %v9933_v19, 8 }
 0xe4d   : > { %v9943_v59 = vpop.xlane.xlu1 %4159 }
 0xe4f   : > { %4208 = vxpose.xlu1.b32.end [16/16] (narrow) %v9943_v59, 8  ;;  %4175 = vxpose.xlu0.b32.cont [15/16] (narrow) %v9939_v23, 8 }
 0xe50   : > { %v9947_v28 = vpop.xlane.xlu0 %4095 }
 0xe53   : > { %4176 = vxpose.xlu0.b32.end [16/16] (narrow) %v9947_v28, 8 }
 0xe85   : > { %v6193_v10 = vpop.f32.mrf.mxu1 }
 0xe86   : > { %v4772_v8 = vmul.f32 2.0, %v6193_v10 }
 0xe87   : > { %v4672_v48 = vpop.f32.mrf.mxu1  ;;  %v6137_v4 = vpop.f32.mrf.mxu0 }
 0xe88   : > { %v4771_v14 = vmul.f32 2.0, %v4672_v48  ;;  %v4439_v24 = vmul.f32 2.0, %v6137_v4 }
 0xe89   : > { %v6196_v56 = vpop.f32.mrf.mxu1  ;;  %v4339_v34 = vpop.f32.mrf.mxu0 }
 0xe8a   : > { %v4774_v45 = vmul.f32 2.0, %v6196_v56 }
 0xe8b   : > { %v4682_v61 = vpop.f32.mrf.mxu1  ;;  %v6140_v54 = vpop.f32.mrf.mxu0 }
 0xe8c   : > { %v4773_v25 = vmul.f32 2.0, %v4682_v61  ;;  %v9966_v56 = vmul.f32 2.0, %v6140_v54 }
 0xe8d   : > { %v6199_v3 = vpop.f32.mrf.mxu1  ;;  %v4349_v32 = vpop.f32.mrf.mxu0 }
 0xe8f   : > { %v4209_v11 = vpop.trf.xlu1  ;;  %v4692_v63 = vpop.f32.mrf.mxu1 }
 0xe90   : > { %v9951_v58 = vrot.slane %v4209_v11, %v10318_v33  ;;  %v6143_v2 = vpop.f32.mrf.mxu0  ;;  %v4775_v40 = vmul.f32 2.0, %v4692_v63  ;;  %v4440_v11 = vmul.f32 2.0, %v4349_v32 }
 0xe92   : > { %v4755_v20 = vadd.f32 %v9951_v58, %v9854_v7  ;;  %v4756_v44 = vadd.f32 %v9951_v58, %v9850_v37  ;;  %v4757_v26 = vadd.f32 %v9951_v58, %v9865_v42  ;;  %v4758_v53 = vadd.f32 %v9951_v58, %v9871_v51  ;;  %v4359_v37 = vpop.f32.mrf.mxu0 }
 0xe93   : > { %v4759_v46 = vadd.f32 %v9951_v58, %v9877_v30  ;;  %v4177_v31 = vpop.trf.xlu0  ;;  %v4438_v51 = vmul.f32 2.0, %v4339_v34  ;;  %v4776_v30 = vmul.f32 2.0, %v6199_v3  ;;  %v4760_v4 = vadd.f32 %v9951_v58, %v9883_v15 }
 0xe94   : > { %v4787_v49 = vsub.f32 %v4755_v20, %v4771_v14  ;;  %v4788_v5 = vsub.f32 %v4756_v44, %v4772_v8  ;;  %v4789_v0 = vsub.f32 %v4757_v26, %v4773_v25  ;;  %v4790_v43 = vsub.f32 %v4758_v53, %v4774_v45  ;;  %v6202_v8 = vpop.f32.mrf.mxu1  ;;  %v6146_v54 = vpop.f32.mrf.mxu0 }
 0xe95   : > { %v9964_v48 = vrot.slane %v4177_v31, %v10318_v33  ;;  %v4791_v61 = vsub.f32 %v4759_v46, %v4775_v40  ;;  %v9968_v14 = vmul.f32 2.0, %v6143_v2  ;;  %v4761_v44 = vadd.f32 %v9951_v58, %v9889_v57 }
 0xe96   : > { %v4803_v21 = vmax.f32 %v4787_v49, 0.0  ;;  %v4804_v41 = vmax.f32 %v4788_v5, 0.0  ;;  %v4805_v7 = vmax.f32 %v4789_v0, 0.0  ;;  %v9976_v33 = vadd.f32 %v9951_v58, %v9895_v60  ;;  %v4702_v63 = vpop.f32.mrf.mxu1 }
 0xe97   : > { %v4806_v34 = vmax.f32 %v4790_v43, 0.0  ;;  %v9980_v32 = vadd.f32 %v9951_v58, %v9901_v6  ;;  %v9984_v3 = vadd.f32 %v9951_v58, %v9907_v18  ;;  %v4422_v15 = vadd.f32 %v9964_v48, %v9861_v36 }
 0xe98   : > { %v4819_v42 = vmul.f32 -0.5, %v4803_v21  ;;  %v4820_v10 = vmul.f32 -0.5, %v4804_v41  ;;  %v4821_v26 = vmul.f32 -0.5, %v4805_v7  ;;  %v9990_v57 = vadd.f32 %v9951_v58, %v9913_v13 }
 0xe99   : > { %v4807_v60 = vmax.f32 %v4791_v61, 0.0  ;;  %v4423_v45 = vadd.f32 %v9964_v48, %v9859_v27  ;;  %v9996_v6 = vadd.f32 %v9951_v58, %v9919_v52  ;;  %v10000_v18 = vadd.f32 %v9951_v58, %v9925_v29  ;;  %v4369_v52 = vpop.f32.mrf.mxu0 }
 0xe9a   : > { %v4835_v25 = vmul.f32 1.442695, %v4819_v42  ;;  %v4837_v20 = vmul.f32 1.442695, %v4820_v10  ;;  %v4424_v53 = vadd.f32 %v9964_v48, %v9867_v39  ;;  %v10006_v13 = vadd.f32 %v9951_v58, %v9931_v55  ;;  %v6205_v10 = vpop.f32.mrf.mxu1 }
 0xe9b   : > { %v10010_v2 = vadd.f32 %v9951_v58, %v9937_v62  ;;  %v4792_v49 = vsub.f32 %v4760_v4, %v4776_v30  ;;  %v4822_v5 = vmul.f32 -0.5, %v4806_v34  ;;  %v4839_v0 = vmul.f32 1.442695, %v4821_v26  ;;  %v6149_v30 = vpop.f32.mrf.mxu0 }
 0xe9c   : > { %6877 = vpow2.f32 %v4835_v25  ;;  %v4778_v46 = vmul.f32 2.0, %v6202_v8  ;;  %v4777_v40 = vmul.f32 2.0, %v4702_v63  ;;  %v4454_v29 = vsub.f32 %v4422_v15, %v4438_v51 }
 0xe9d   : > { %6879 = vpow2.f32 %v4837_v20  ;;  %v4823_v31 = vmul.f32 -0.5, %v4807_v60  ;;  %v4429_v21 = vadd.f32 %v9964_v48, %v9897_v1  ;;  %v4445_v41 = vmul.f32 2.0, %v6146_v54  ;;  %v4712_v60 = vpop.f32.mrf.mxu1 }
 0xe9e   : > { %v4455_v43 = vsub.f32 %v4423_v45, %v4439_v24  ;;  %v10016_v55 = vadd.f32 %v9951_v58, %v9943_v59  ;;  %v10020_v62 = vadd.f32 %v9951_v58, %v9861_v36  ;;  %v4425_v7 = vadd.f32 %v9964_v48, %v9873_v9  ;;  %v4379_v45 = vpop.f32.mrf.mxu0 }
 0xe9f   : > { %v4456_v42 = vsub.f32 %v4424_v53, %v4440_v11  ;;  %v10026_v51 = vadd.f32 %v9951_v58, %v9859_v27  ;;  %v4841_v61 = vmul.f32 1.442695, %v4822_v5  ;;  %v4808_v8 = vmax.f32 %v4792_v49, 0.0 }
 0xea0   : > { %v4470_v24 = vmax.f32 %v4454_v29, 0.0  ;;  %6881 = vpow2.f32 %v4839_v0  ;;  %v4442_v59 = vmul.f32 2.0, %v4359_v37  ;;  %v4793_v25 = vsub.f32 %v4761_v44, %v4777_v40 }
 0xea1   : > { %v4471_v20 = vmax.f32 %v4455_v43, 0.0  ;;  %v4843_v4 = vmul.f32 1.442695, %v4823_v31  ;;  %v4794_v36 = vsub.f32 %v9976_v33, %v4778_v46  ;;  %v4461_v34 = vsub.f32 %v4429_v21, %v4445_v41  ;;  %v6208_v43 = vpop.f32.mrf.mxu1 }
 0xea2   : > { %v4426_v11 = vadd.f32 %v9964_v48, %v9879_v35  ;;  %v4457_v54 = vsub.f32 %v4425_v7, %v9966_v56  ;;  %v4472_v26 = vmax.f32 %v4456_v42, 0.0  ;;  %v4486_v27 = vmul.f32 -0.5, %v4470_v24 }
 0xea3   : > { %v4487_v15 = vmul.f32 -0.5, %v4471_v20  ;;  %6883 = vpow2.f32 %v4841_v61  ;;  %v4824_v63 = vmul.f32 -0.5, %v4808_v8  ;;  %v4427_v37 = vadd.f32 %v9964_v48, %v9885_v47  ;;  %v6152_v61 = vpop.f32.mrf.mxu0 }
 0xea4   : > { %v4428_v44 = vadd.f32 %v9964_v48, %v9891_v50  ;;  %v4809_v33 = vmax.f32 %v4793_v25, 0.0  ;;  %v4444_v53 = vmul.f32 2.0, %v4369_v52  ;;  %v4502_v49 = vmul.f32 1.442695, %v4486_v27 }
 0xea5   : > { %v4504_v5 = vmul.f32 1.442695, %v4487_v15  ;;  %v10038_v56 = vadd.f32 %v9951_v58, %v9867_v39  ;;  %v10042_v0 = vadd.f32 %v9951_v58, %v9873_v9  ;;  %v4810_v46 = vmax.f32 %v4794_v36, 0.0 }
 0xea6   : > { %v4477_v40 = vmax.f32 %v4461_v34, 0.0  ;;  %6885 = vpow2.f32 %v4843_v4  ;;  %v4458_v31 = vsub.f32 %v4426_v11, %v4442_v59  ;;  %v4473_v21 = vmax.f32 %v4457_v54, 0.0  ;;  %v4722_v54 = vpop.f32.mrf.mxu1 }
 0xea7   : > { %v4488_v41 = vmul.f32 -0.5, %v4472_v26  ;;  %v10046_v52 = vadd.f32 %v9951_v58, %v9879_v35  ;;  %v4845_v42 = vmul.f32 1.442695, %v4824_v63  ;;  %v4459_v39 = vsub.f32 %v4427_v37, %v9968_v14  ;;  %v4389_v63 = vpop.f32.mrf.mxu0 }
 0xea8   : > { %6887 = vpow2.f32 %v4502_v49  ;;  %v4825_v9 = vmul.f32 -0.5, %v4809_v33  ;;  %v4460_v8 = vsub.f32 %v4428_v44, %v4444_v53  ;;  %v4780_v24 = vmul.f32 2.0, %v6205_v10 }
 0xea9   : > { %v6878_v29 = vpop.eup %6877  ;;  %6889 = vpow2.f32 %v4504_v5  ;;  %v10051_v59 = vadd.f32 %v9951_v58, %v9885_v47  ;;  %v4826_v25 = vmul.f32 -0.5, %v4810_v46  ;;  %v4493_v20 = vmul.f32 -0.5, %v4477_v40 }
 0xeaa   : > { %v6880_v7 = vpop.eup %6879  ;;  %v4447_v4 = vmul.f32 2.0, %v6149_v30  ;;  %v4474_v34 = vmax.f32 %v4458_v31, 0.0  ;;  %v4489_v35 = vmul.f32 -0.5, %v4473_v21  ;;  %v4506_v11 = vmul.f32 1.442695, %v4488_v41  ;;  %v6155_v41 = vpop.f32.mrf.mxu0 }
 0xeab   : > { %v4867_v36 = vadd.f32 %v6880_v7, %v6878_v29  ;;  %v4475_v26 = vmax.f32 %v4459_v39, 0.0  ;;  %v4431_v14 = vadd.f32 %v9964_v48, %v9909_v16  ;;  %v4779_v27 = vmul.f32 2.0, %v4712_v60  ;;  %v6211_v29 = vpop.f32.mrf.mxu1 }
 0xeac   : > { %v4446_v15 = vmul.f32 2.0, %v4379_v45  ;;  %6891 = vpow2.f32 %v4845_v42  ;;  %v4847_v10 = vmul.f32 1.442695, %v4825_v9  ;;  %v4476_v37 = vmax.f32 %v4460_v8, 0.0 }
 0xead   : > { %v4796_v47 = vsub.f32 %v9984_v3, %v4780_v24  ;;  %v6882_v44 = vpop.eup %6881  ;;  %v4849_v33 = vmul.f32 1.442695, %v4826_v25  ;;  %v4463_v30 = vsub.f32 %v4431_v14, %v4447_v4  ;;  %v4430_v53 = vadd.f32 %v9964_v48, %v9903_v38  ;;  %v4732_v4 = vpop.f32.mrf.mxu1 }
 0xeae   : > { %v4782_v49 = vmul.f32 2.0, %v6208_v43  ;;  %v4868_v5 = vadd.f32 %v6882_v44, %v4867_v36  ;;  %v4490_v46 = vmul.f32 -0.5, %v4474_v34  ;;  %6893 = vpow2.f32 %v4506_v11 }
 0xeaf   : > { %v4508_v40 = vmul.f32 1.442695, %v4489_v35  ;;  %v4491_v60 = vmul.f32 -0.5, %v4475_v26  ;;  %v4795_v45 = vsub.f32 %v9980_v32, %v4779_v27  ;;  %v4462_v31 = vsub.f32 %v4430_v53, %v4446_v15  ;;  %v4399_v26 = vpop.f32.mrf.mxu0  ;;  %v6214_v53 = vpop.f32.mrf.mxu1 }
 0xeb0   : > { %v4449_v21 = vmul.f32 2.0, %v6152_v61  ;;  %v6884_v7 = vpop.eup %6883  ;;  %v4516_v3 = vmul.f32 1.442695, %v4493_v20  ;;  %6895 = vpow2.f32 %v4847_v10  ;;  %v4492_v42 = vmul.f32 -0.5, %v4476_v37 }
 0xeb1   : > { %v4812_v39 = vmax.f32 %v4796_v47, 0.0  ;;  %v4479_v9 = vmax.f32 %v4463_v30, 0.0  ;;  %v4798_v8 = vsub.f32 %v9996_v6, %v4782_v49  ;;  %v4433_v43 = vadd.f32 %v9964_v48, %v9921_v22 }
 0xeb2   : > { %v4781_v24 = vmul.f32 2.0, %v4722_v54  ;;  %v10064_v25 = vadd.f32 %v9951_v58, %v9891_v50  ;;  %v4869_v32 = vadd.f32 %v6884_v7, %v4868_v5  ;;  %6897 = vpow2.f32 %v4508_v40 }
 0xeb3   : > { %v4510_v61 = vmul.f32 1.442695, %v4490_v46  ;;  %v6886_v36 = vpop.eup %6885  ;;  %v4512_v20 = vmul.f32 1.442695, %v4491_v60  ;;  %v4811_v34 = vmax.f32 %v4795_v45, 0.0  ;;  %v4478_v35 = vmax.f32 %v4462_v31, 0.0  ;;  %v6158_v46 = vpop.f32.mrf.mxu0 }
 0xeb4   : > { %v4465_v11 = vsub.f32 %v4433_v43, %v4449_v21  ;;  %6899 = vpow2.f32 %v4849_v33  ;;  %v4514_v6 = vmul.f32 1.442695, %v4492_v42  ;;  %v4828_v27 = vmul.f32 -0.5, %v4812_v39 }
 0xeb5   : > { %v6888_v14 = vpop.eup %6887  ;;  %v4448_v15 = vmul.f32 2.0, %v4389_v63  ;;  %6901 = vpow2.f32 %v4516_v3  ;;  %v4495_v10 = vmul.f32 -0.5, %v4479_v9  ;;  %v4814_v50 = vmax.f32 %v4798_v8, 0.0  ;;  %v4742_v9 = vpop.f32.mrf.mxu1 }
 0xeb6   : > { %v6890_v54 = vpop.eup %6889  ;;  %v4797_v37 = vsub.f32 %v9990_v57, %v4781_v24  ;;  %v4870_v47 = vadd.f32 %v6886_v36, %v4869_v32  ;;  %6903 = vpow2.f32 %v4510_v61  ;;  %v4432_v44 = vadd.f32 %v9964_v48, %v9915_v12  ;;  %v4409_v36 = vpop.f32.mrf.mxu0 }
 0xeb7   : > { %v4784_v30 = vmul.f32 2.0, %v6211_v29  ;;  %6905 = vpow2.f32 %v4512_v20  ;;  %v4827_v49 = vmul.f32 -0.5, %v4811_v34  ;;  %v4494_v5 = vmul.f32 -0.5, %v4478_v35 }
 0xeb8   : > { %v4481_v33 = vmax.f32 %v4465_v11, 0.0  ;;  %6907 = vpow2.f32 %v4514_v6  ;;  %v4534_v63 = vadd.f32 %v6890_v54, %v6888_v14  ;;  %v4853_v40 = vmul.f32 1.442695, %v4828_v27 }
 0xeb9   : > { %v4464_v60 = vsub.f32 %v4432_v44, %v4448_v15  ;;  %v6892_v45 = vpop.eup %6891  ;;  %v4520_v31 = vmul.f32 1.442695, %v4495_v10  ;;  %v4830_v21 = vmul.f32 -0.5, %v4814_v50  ;;  %v4813_v57 = vmax.f32 %v4797_v37, 0.0 }
 0xeba   : > { %v4451_v7 = vmul.f32 2.0, %v6155_v41  ;;  %v4871_v3 = vadd.f32 %v6892_v45, %v4870_v47  ;;  %v4800_v42 = vsub.f32 %v10006_v13, %v4784_v30  ;;  %v4783_v39 = vmul.f32 2.0, %v4732_v4 }
 0xebb   : > { %v4450_v29 = vmul.f32 2.0, %v4399_v26  ;;  %v6894_v8 = vpop.eup %6893  ;;  %v4851_v43 = vmul.f32 1.442695, %v4827_v49  ;;  %v4518_v24 = vmul.f32 1.442695, %v4494_v5  ;;  %v4497_v32 = vmul.f32 -0.5, %v4481_v33 }
 0xebc   : > { %v4435_v61 = vadd.f32 %v9964_v48, %v9933_v19  ;;  %v4535_v20 = vadd.f32 %v6894_v8, %v4534_v63  ;;  %6909 = vpow2.f32 %v4853_v40  ;;  %v4480_v34 = vmax.f32 %v4464_v60, 0.0 }
 0xebd   : > { %v4434_v41 = vadd.f32 %v9964_v48, %v9927_v17  ;;  %v6896_v35 = vpop.eup %6895  ;;  %v4857_v11 = vmul.f32 1.442695, %v4830_v21  ;;  %v4829_v13 = vmul.f32 -0.5, %v4813_v57  ;;  %v4785_v26 = vmul.f32 2.0, %v4742_v9 }
 0xebe   : > { %v4467_v4 = vsub.f32 %v4435_v61, %v4451_v7  ;;  %6911 = vpow2.f32 %v4520_v31  ;;  %v4816_v6 = vmax.f32 %v4800_v42, 0.0  ;;  %v4799_v27 = vsub.f32 %v10000_v18, %v4783_v39 }
 0xebf   : > { %v4466_v15 = vsub.f32 %v4434_v41, %v4450_v29  ;;  %v6898_v54 = vpop.eup %6897  ;;  %v10075_v10 = vadd.f32 %v6896_v35, %v4871_v3  ;;  %6913 = vpow2.f32 %v4851_v43  ;;  %v4524_v50 = vmul.f32 1.442695, %v4497_v32 }
 0xec0   : > { %v4786_v37 = vmul.f32 2.0, %v6214_v53  ;;  %v4536_v44 = vadd.f32 %v6898_v54, %v4535_v20  ;;  %6915 = vpow2.f32 %v4518_v24  ;;  %v4496_v30 = vmul.f32 -0.5, %v4480_v34 }
 0xec1   : > { %v4801_v49 = vsub.f32 %v10010_v2, %v4785_v26  ;;  %v10078_v5 = vpop.eup %6899  ;;  %6917 = vpow2.f32 %v4857_v11  ;;  %v4855_v33 = vmul.f32 1.442695, %v4829_v13  ;;  %v4483_v63 = vmax.f32 %v4467_v4, 0.0 }
 0xec2   : > { %v4452_v40 = vmul.f32 2.0, %v4409_v36  ;;  %v10080_v18 = vpop.eup %6901  ;;  %v4832_v60 = vmul.f32 -0.5, %v4816_v6  ;;  %v4815_v45 = vmax.f32 %v4799_v27, 0.0  ;;  %v4482_v31 = vmax.f32 %v4466_v15, 0.0 }
 0xec3   : > { %v6904_v7 = vpop.eup %6903  ;;  %6919 = vpow2.f32 %v4524_v50  ;;  %v4802_v3 = vsub.f32 %v10016_v55, %v4786_v37  ;;  %v4453_v2 = vmul.f32 2.0, %v6158_v46  ;;  %v4436_v42 = vadd.f32 %v9964_v48, %v9939_v23 }
 0xec4   : > { %v6906_v39 = vpop.eup %6905  ;;  %v4537_v29 = vadd.f32 %v6904_v7, %v4536_v44  ;;  %v4522_v9 = vmul.f32 1.442695, %v4496_v30  ;;  %v4817_v8 = vmax.f32 %v4801_v49, 0.0  ;;  %v4499_v32 = vmul.f32 -0.5, %v4483_v63 }
 0xec5   : > { %v10082_v21 = vpop.f32.mrf.mxu1  ;;  %v6908_v24 = vpop.eup %6907  ;;  %v4437_v61 = vadd.f32 %v9964_v48, %v9947_v28  ;;  %v4468_v36 = vsub.f32 %v4436_v42, %v4452_v40  ;;  %6921 = vpow2.f32 %v4855_v33  ;;  %v4861_v34 = vmul.f32 1.442695, %v4832_v60 }
 0xec6   : > { %v4831_v55 = vmul.f32 -0.5, %v4815_v45  ;;  %v4498_v46 = vmul.f32 -0.5, %v4482_v31  ;;  %v4818_v11 = vmax.f32 %v4802_v3, 0.0  ;;  %6923 = vpow2.f32 %v4522_v9 }
 0xec7   : > { %v6249_v14 = vpop.f32.mrf.mxu0  ;;  %v10090_v41 = vpop.f32.mrf.mxu1  ;;  %v4469_v13 = vsub.f32 %v4437_v61, %v4453_v2  ;;  %v4528_v48 = vmul.f32 1.442695, %v4499_v32  ;;  %v4484_v15 = vmax.f32 %v4468_v36, 0.0  ;;  %v10098_v37 = vadd.f32 %v9951_v58, %v9897_v1 }
 0xec8   : > { %v5086_v53 = vmul.f32 2.0, %v6249_v14  ;;  %v4833_v14 = vmul.f32 -0.5, %v4817_v8  ;;  %6925 = vpow2.f32 %v4861_v34  ;;  %v4526_v33 = vmul.f32 1.442695, %v4498_v46 }
 0xec9   : > { %v4990_v47 = vpop.f32.mrf.mxu0  ;;  %v10093_v27 = vpop.eup %6909  ;;  %v4834_v63 = vmul.f32 -0.5, %v4818_v11  ;;  %v4485_v40 = vmax.f32 %v4469_v13, 0.0  ;;  %6927 = vpow2.f32 %v4528_v48  ;;  %v4500_v7 = vmul.f32 -0.5, %v4484_v15 }
 0xeca   : > { %v5102_v43 = vsub.f32 %v10026_v51, %v5086_v53  ;;  %v5085_v20 = vmul.f32 2.0, %v4990_v47  ;;  %v4538_v51 = vadd.f32 %v6906_v39, %v4537_v29  ;;  %v10102_v47 = vadd.f32 %v9951_v58, %v9903_v38  ;;  %v10104_v44 = vpop.f32.mrf.mxu1 }
 0xecb   : > { %v6252_v57 = vpop.f32.mrf.mxu0  ;;  %v10106_v49 = vpop.eup %6911  ;;  %v4863_v31 = vmul.f32 1.442695, %v4833_v14  ;;  %v4873_v38 = vadd.f32 %v10078_v5, %v10075_v10  ;;  %v4501_v32 = vmul.f32 -0.5, %v4485_v40  ;;  %v5079_v14 = vadd.f32 %v9951_v58, %v9915_v12 }
 0xecc   : > { %v5101_v4 = vsub.f32 %v10020_v62, %v5085_v20  ;;  %v5088_v26 = vmul.f32 2.0, %v6252_v57  ;;  %v5118_v6 = vmax.f32 %v5102_v43, 0.0  ;;  %v4859_v62 = vmul.f32 1.442695, %v4831_v55  ;;  %v5040_v39 = vpop.f32.mrf.mxu1 }
 0xecd   : > { %v5000_v35 = vpop.f32.mrf.mxu0  ;;  %v4539_v45 = vadd.f32 %v6908_v24, %v4538_v51  ;;  %v5078_v43 = vadd.f32 %v9951_v58, %v9909_v16  ;;  %v4865_v24 = vmul.f32 1.442695, %v4834_v63  ;;  %v4530_v20 = vmul.f32 1.442695, %v4500_v7 }
 0xece   : > { %v5117_v54 = vmax.f32 %v5101_v4, 0.0  ;;  %v5104_v50 = vsub.f32 %v10042_v0, %v5088_v26  ;;  %v6914_v0 = vpop.eup %6913  ;;  %v5134_v1 = vmul.f32 -0.5, %v5118_v6  ;;  %v5087_v53 = vmul.f32 2.0, %v5000_v35  ;;  %v6267_v11 = vpop.f32.mrf.mxu1 }
 0xecf   : > { %v6255_v30 = vpop.f32.mrf.mxu0  ;;  %v6916_v57 = vpop.eup %6915  ;;  %6929 = vpow2.f32 %v4859_v62  ;;  %v4540_v10 = vadd.f32 %v10080_v18, %v4539_v45  ;;  %v4874_v46 = vadd.f32 %v6914_v0, %v4873_v38  ;;  %v5094_v35 = vmul.f32 2.0, %v10082_v21 }
 0xed0   : > { %v5133_v60 = vmul.f32 -0.5, %v5117_v54  ;;  %v5120_v3 = vmax.f32 %v5104_v50, 0.0  ;;  %v6918_v2 = vpop.eup %6917  ;;  %v5103_v29 = vsub.f32 %v10038_v56, %v5087_v53  ;;  %v5090_v9 = vmul.f32 2.0, %v6255_v30 }
 0xed1   : > { %v5010_v8 = vpop.f32.mrf.mxu0  ;;  %6931 = vpow2.f32 %v4526_v33  ;;  %v10113_v61 = vpop.eup %6919  ;;  %v5151_v5 = vmul.f32 1.442695, %v5134_v1  ;;  %v4532_v4 = vmul.f32 1.442695, %v4501_v32  ;;  %v5093_v26 = vmul.f32 2.0, %v10090_v41 }
 0xed2   : > { %v5149_v42 = vmul.f32 1.442695, %v5133_v60  ;;  %6933 = vpow2.f32 %v4863_v31  ;;  %v5119_v36 = vmax.f32 %v5103_v29, 0.0  ;;  %v5136_v34 = vmul.f32 -0.5, %v5120_v3  ;;  %v6922_v13 = vpop.eup %6921  ;;  %v5050_v41 = vpop.f32.mrf.mxu1 }
 0xed3   : > { %v5106_v55 = vsub.f32 %v10051_v59, %v5090_v9  ;;  %v5089_v56 = vmul.f32 2.0, %v5010_v8  ;;  %v6258_v51 = vpop.f32.mrf.mxu0  ;;  %v4541_v6 = vadd.f32 %v6916_v57, %v4540_v10  ;;  %v6924_v48 = vpop.eup %6923  ;;  %v5080_v50 = vadd.f32 %v9951_v58, %v9921_v22 }
 0xed4   : > { %6935 = vpow2.f32 %v5149_v42  ;;  %v5135_v16 = vmul.f32 -0.5, %v5119_v36  ;;  %v5155_v21 = vmul.f32 1.442695, %v5136_v34  ;;  %v5110_v62 = vsub.f32 %v5078_v43, %v5094_v35  ;;  %v6270_v57 = vpop.f32.mrf.mxu1 }
 0xed5   : > { %6937 = vpow2.f32 %v4865_v24  ;;  %v5105_v18 = vsub.f32 %v10046_v52, %v5089_v56  ;;  %v5122_v15 = vmax.f32 %v5106_v55, 0.0  ;;  %v4875_v52 = vadd.f32 %v10093_v27, %v4874_v46  ;;  %v6926_v30 = vpop.eup %6925  ;;  %v5020_v40 = vpop.f32.mrf.mxu0 }
 0xed6   : > { %6939 = vpow2.f32 %v5151_v5  ;;  %v5153_v59 = vmul.f32 1.442695, %v5135_v16  ;;  %v5109_v12 = vsub.f32 %v10102_v47, %v5093_v26  ;;  %v5095_v33 = vmul.f32 2.0, %v5040_v39  ;;  %v6928_v53 = vpop.eup %6927 }
 0xed7   : > { %6941 = vpow2.f32 %v4530_v20  ;;  %v5121_v54 = vmax.f32 %v5105_v18, 0.0  ;;  %v10128_v60 = vadd.f32 %v9951_v58, %v9927_v17  ;;  %v10132_v0 = vadd.f32 %v9951_v58, %v9933_v19  ;;  %v5060_v20 = vpop.f32.mrf.mxu1 }
 0xed8   : > { %6943 = vpow2.f32 %v5153_v59  ;;  %v4876_v22 = vadd.f32 %v6922_v13, %v4875_v52  ;;  %v5092_v45 = vmul.f32 2.0, %v6258_v51  ;;  %v5138_v31 = vmul.f32 -0.5, %v5122_v15 }
 0xed9   : > { %6945 = vpow2.f32 %v4532_v4  ;;  %v5137_v63 = vmul.f32 -0.5, %v5121_v54  ;;  %v4542_v1 = vadd.f32 %v10106_v49, %v4541_v6  ;;  %v5096_v47 = vmul.f32 2.0, %v10104_v44 }
 0xeda   : > { %6947 = vpow2.f32 %v5155_v21  ;;  %v4877_v38 = vadd.f32 %v6918_v2, %v4876_v22  ;;  %v5108_v7 = vsub.f32 %v10098_v37, %v5092_v45  ;;  %v5091_v17 = vmul.f32 2.0, %v5020_v40 }
 0xedb   : > { %v5157_v27 = vmul.f32 1.442695, %v5137_v63  ;;  %v5126_v42 = vmax.f32 %v5110_v62, 0.0  ;;  %v5125_v39 = vmax.f32 %v5109_v12, 0.0  ;;  %v5111_v19 = vsub.f32 %v5079_v14, %v5095_v33 }
 0xedc   : > { %v6930_v3 = vpop.eup %6929  ;;  %v4543_v29 = vadd.f32 %v6924_v48, %v4542_v1  ;;  %v5097_v8 = vmul.f32 2.0, %v5050_v41  ;;  %v5124_v24 = vmax.f32 %v5108_v7, 0.0  ;;  %v5083_v49 = vadd.f32 %v9951_v58, %v9939_v23 }
 0xedd   : > { %6949 = vpow2.f32 %v5157_v27  ;;  %v4878_v43 = vadd.f32 %v6930_v3, %v4877_v38  ;;  %v5159_v44 = vmul.f32 1.442695, %v5138_v31  ;;  %v5107_v2 = vsub.f32 %v10064_v25, %v5091_v17 }
 0xede   : > { %v6932_v9 = vpop.eup %6931  ;;  %v4544_v37 = vadd.f32 %v10113_v61, %v4543_v29  ;;  %v5084_v10 = vadd.f32 %v9951_v58, %v9947_v28  ;;  %v5112_v5 = vsub.f32 %v5080_v50, %v5096_v47  ;;  %v5098_v36 = vmul.f32 2.0, %v6267_v11 }
 0xedf   : > { %v6934_v32 = vpop.eup %6933  ;;  %v4879_v34 = vadd.f32 %v6926_v30, %v4878_v43  ;;  %v5142_v56 = vmul.f32 -0.5, %v5126_v42  ;;  %v5140_v46 = vmul.f32 -0.5, %v5124_v24  ;;  %v5123_v35 = vmax.f32 %v5107_v2, 0.0 }
 0xee0   : > { %v4545_v16 = vadd.f32 %v6932_v9, %v4544_v37  ;;  %v5141_v4 = vmul.f32 -0.5, %v5125_v39  ;;  %v5127_v23 = vmax.f32 %v5111_v19, 0.0  ;;  %v5113_v26 = vsub.f32 %v10128_v60, %v5097_v8 }
 0xee1   : > { %v6936_v55 = vpop.eup %6935  ;;  %v4880_v25 = vadd.f32 %v6934_v32, %v4879_v34  ;;  %6951 = vpow2.f32 %v5159_v44  ;;  %v5099_v61 = vmul.f32 2.0, %v5060_v20  ;;  %v5139_v51 = vmul.f32 -0.5, %v5123_v35 }
 0xee2   : > { %v6938_v13 = vpop.eup %6937  ;;  %v4546_v28 = vadd.f32 %v6928_v53, %v4545_v16  ;;  %v5128_v14 = vmax.f32 %v5112_v5, 0.0  ;;  %v5114_v6 = vsub.f32 %v10132_v0, %v5098_v36  ;;  %v5100_v21 = vmul.f32 2.0, %v6270_v57 }
 0xee3   : > { %v6940_v18 = vpop.eup %6939  ;;  %v4881_v59 = vadd.f32 %v6938_v13, %v4880_v25  ;;  %v5163_v15 = vmul.f32 1.442695, %v5140_v46  ;;  %v5161_v54 = vmul.f32 1.442695, %v5139_v51  ;;  %v5165_v41 = vmul.f32 1.442695, %v5141_v4 }
 0xee4   : > { %v6942_v58 = vpop.eup %6941  ;;  %v5181_v11 = vadd.f32 %v6940_v18, %v6936_v55  ;;  %v5143_v52 = vmul.f32 -0.5, %v5127_v23  ;;  %v5129_v33 = vmax.f32 %v5113_v26, 0.0  ;;  %v5115_v63 = vsub.f32 %v5083_v49, %v5099_v61 }
 0xee5   : > { %v6944_v48 = vpop.eup %6943  ;;  %v4547_v50 = vadd.f32 %v6942_v58, %v4546_v28  ;;  %v4882_v12 = vrot.slane %v4881_v59, 4  ;;  %6953 = vpow2.f32 %v5161_v54  ;;  %v5167_v22 = vmul.f32 1.442695, %v5142_v56 }
 0xee6   : > { %v6946_v62 = vpop.eup %6945  ;;  %v5182_v30 = vadd.f32 %v6944_v48, %v5181_v11  ;;  %v5144_v45 = vmul.f32 -0.5, %v5128_v14  ;;  %v5130_v31 = vmax.f32 %v5114_v6, 0.0  ;;  %v5116_v1 = vsub.f32 %v5084_v10, %v5100_v21 }
 0xee7   : > { %v4548_v40 = vadd.f32 %v6946_v62, %v4547_v50  ;;  %v6948_v60 = vpop.eup %6947  ;;  %v4883_v0 = vadd.f32 %v4882_v12, %v4881_v59  ;;  %6955 = vpow2.f32 %v5163_v15  ;;  %v5169_v38 = vmul.f32 1.442695, %v5143_v52 }
 0xee8   : > { %v5183_v27 = vadd.f32 %v6948_v60, %v5182_v30  ;;  %6957 = vpow2.f32 %v5165_v41  ;;  %v5145_v7 = vmul.f32 -0.5, %v5129_v33  ;;  %v5131_v17 = vmax.f32 %v5115_v63, 0.0 }
 0xee9   : > { %v4549_v53 = vrot.slane %v4548_v40, 4  ;;  %v4884_v47 = vrot.slane %v4883_v0, 2  ;;  %6959 = vpow2.f32 %v5167_v22  ;;  %v5171_v42 = vmul.f32 1.442695, %v5144_v45 }
 0xeea   : > { %v6950_v57 = vpop.eup %6949  ;;  %v5146_v19 = vmul.f32 -0.5, %v5130_v31  ;;  %v5132_v9 = vmax.f32 %v5116_v1, 0.0  ;;  %6961 = vpow2.f32 %v5169_v38  ;;  %v5173_v24 = vmul.f32 1.442695, %v5145_v7 }
 0xeeb   : > { %v4550_v3 = vadd.f32 %v4549_v53, %v4548_v40  ;;  %v4885_v39 = vadd.f32 %v4884_v47, %v4883_v0  ;;  %v5184_v29 = vadd.f32 %v6950_v57, %v5183_v27  ;;  %v5147_v32 = vmul.f32 -0.5, %v5131_v17 }
 0xeec   : > { %6963 = vpow2.f32 %v5171_v42  ;;  %v5175_v37 = vmul.f32 1.442695, %v5146_v19  ;;  %v5148_v10 = vmul.f32 -0.5, %v5132_v9 }
 0xeed   : > { %v4551_v8 = vrot.slane %v4550_v3, 2  ;;  %v4886_v43 = vrot.slane %v4885_v39, 1  ;;  %6965 = vpow2.f32 %v5173_v24  ;;  %v5177_v20 = vmul.f32 1.442695, %v5147_v32 }
 0xeee   : > { %v6952_v44 = vpop.eup %6951  ;;  %6967 = vpow2.f32 %v5175_v37  ;;  %v5179_v56 = vmul.f32 1.442695, %v5148_v10 }
 0xeef   : > { %v4552_v49 = vadd.f32 %v4551_v8, %v4550_v3  ;;  %v4887_v2 = vadd.f32 %v4886_v43, %v4885_v39  ;;  %v5185_v5 = vadd.f32 %v6952_v44, %v5184_v29  ;;  %6969 = vpow2.f32 %v5177_v20 }
 0xef0   : > { %6971 = vpow2.f32 %v5179_v56 }
 0xef1   : > { %v4553_v36 = vrot.slane %v4552_v49, 1  ;;  %4888 = vadd.xlane.f32.xlu1 %v4887_v2 }
 0xef2   : > { %v6954_v55 = vpop.eup %6953 }
 0xef3   : > { %v4554_v34 = vadd.f32 %v4553_v36, %v4552_v49  ;;  %v5186_v46 = vadd.f32 %v6954_v55, %v5185_v5 }
 0xef4   : > { %v6956_v35 = vpop.eup %6955 }
 0xef5   : > { %4555 = vadd.xlane.f32.xlu0 %v4554_v34  ;;  %v6958_v16 = vpop.eup %6957  ;;  %v5187_v13 = vadd.f32 %v6956_v35, %v5186_v46 }
 0xef6   : > { %v6960_v4 = vpop.eup %6959 }
 0xef7   : > { %v5188_v23 = vadd.f32 %v6958_v16, %v5187_v13  ;;  %v6962_v25 = vpop.eup %6961 }
 0xef9   : > { %v5189_v26 = vadd.f32 %v6960_v4, %v5188_v23  ;;  %v6964_v18 = vpop.eup %6963 }
 0xefa   : > { %v6966_v28 = vpop.eup %6965 }
 0xefb   : > { %v5190_v61 = vadd.f32 %v6962_v25, %v5189_v26  ;;  %v6968_v11 = vpop.eup %6967 }
 0xefc   : > { %v6970_v6 = vpop.eup %6969 }
 0xefd   : > { %v5191_v51 = vadd.f32 %v6964_v18, %v5190_v61  ;;  %v6972_v48 = vpop.eup %6971 }
 0xeff   : > { %v5192_v58 = vadd.f32 %v6966_v28, %v5191_v51 }
 0xf01   : > { %v5193_v14 = vadd.f32 %v6968_v11, %v5192_v58 }
 0xf03   : > { %v5194_v59 = vadd.f32 %v6970_v6, %v5193_v14 }
 0xf05   : > { %v5195_v21 = vadd.f32 %v6972_v48, %v5194_v59 }
 0xf07   : > { %v5196_v15 = vrot.slane %v5195_v21, 4 }
 0xf09   : > { %v5197_v54 = vadd.f32 %v5196_v15, %v5195_v21 }
 0xf0b   : > { %v5198_v50 = vrot.slane %v5197_v54, 2 }
 0xf0d   : > { %v5199_v62 = vadd.f32 %v5198_v50, %v5197_v54 }
 0xf0f   : > { %v5200_v41 = vrot.slane %v5199_v62, 1 }
 0xf11   : > { %v5201_v52 = vadd.f32 %v5200_v41, %v5199_v62 }
 0xf13   : > { %5202 = vadd.xlane.f32.xlu0 %v5201_v52 }
 0xf7a   : > { %v4889_v12 = vpop.xlane.xlu1 %4888 }
 0xf7b   : > { %v4890_v40 = vmul.f32 6.1035156e-05, %v4889_v12 }
 0xf7e   : > { %v4556_v30 = vpop.xlane.xlu0 %4555 }
 0xf7f   : > { %v4557_v33 = vmul.f32 6.1035156e-05, %v4556_v30 }
 0xf81   : > { %v4891_v22 = vadd.f32 %v4890_v40, %v4557_v33 }
 0xf9c   : > { %v5203_v63 = vpop.xlane.xlu0 %5202 }
 0xf9d   : > { %v5204_v60 = vmul.f32 6.1035156e-05, %v5203_v63 }
 0xf9f   : > { %v5205_v45 = vmul.f32 2.0, %v5204_v60 }
 0xfa1   : > { %v5206_v31 = vsub.f32 %v4891_v22, %v5205_v45 }
 0xfa3   : > { %5208 = vst.msk [vmem:[#allocation3] sm:$0x1] %vm5207_vm5, %v5206_v31 }
 0xfa4 PF: > { %p6355_p6 = scmp.eq.s32.totalorder %s7074_s10, 3  ;;  %s7017_s15 = smov [#allocation3]  }
 0xfa5   : > { %s5219_s12 = sshll.u32 %s7017_s15, 4  ;;  %s5220_s12 = int_to_ptr.vmem [resolvable:$true] %s5219_s12 }
 0xfa6   : > { %s6973_s17 = scalar_lea.vmem %s5220_s12, 16  ;;  %s6979_s16 = scalar_lea.vmem %s5220_s12, 32 }
 0xfa7   : > { %p6974_p7 = scmp.ne.s32.totalorder %s5220_s12, %s6973_s17  ;;  %p6980_p10 = scmp.lt.s32.totalorder %s5220_s12, %s5220_s12 }
 0xfa8   : > { %p6981_p11 = scmp.lt.s32.totalorder %s6979_s16, %s6973_s17 }
 0xfa9   : > { %p6975_p8 = pnand %p6974_p7, %p6355_p6 }
 0xfaa   : > { %p6982_p12 = por %p6981_p11, %p6980_p10 }
 0xfab   : > { %p6976_p9 = pneg %p6975_p8 }
 0xfad   : > { %p6983_p13 = pnand %p6982_p12, %p6976_p9 }
 0xfaf   : > { %6986 = shalt.err (!%p6983_p13)
}
 0xfb0   : > { %6352 = dma.vmem_to_hbm [thread:$0]  (%p6355_p6), %s5220_s12, 16, %s10169_s9, [#allocation4]  }
 0xfb1   : > { %7002 = dma.done.wait (%p6355_p6), [#allocation4], 16  }
 0xfb2   : > { %7004 = vsyncadd (%p6355_p6), [#allocation4], 4294967280 }
 0xfb3 PF: > { %s21_s30 = sadd.s32 1, %s7007_s30  }
 0xfb4   : > { %p18_p0 = scmp.ge.s32.totalorder %s21_s30, 6  }
 0xfb6   :  { %20 = sbr.rel (!%p18_p0) target bundleno = 1 (0x1), region = 107 }
 0xfbb   :  { %5235 = vsyncpa [#allocation4], 1 }
 0xfbc   :  { %5237 = vsyncpa [#allocation4 + $0x1], 1 }

</bundles_post_ra>
